<compile_context>
chip_gen: v5e
topology: v5e:2x2
jax: 0.10.0
libtpu: 0.0.40
codegen_flags: <defaults>
</compile_context>

<pallas_src>
import jax
import jax.numpy as jnp
from jax.experimental import pallas as pl
from jax.experimental.pallas import tpu as pltpu

# conv1 / pool1 static geometry
C1_OUT, K1, H1 = 8, 48, 63            # Cout, Cin*kh*kw, conv1 output H=W
M1_PAD = 4096                         # 63*63=3969 lane-padded to 128-multiple
P1_K, P1_S, P1_P, P1_O = 8, 8, 4, 8   # pool1 kernel/stride/pad/output size

# conv2 / pool2 / dense static geometry
C2_OUT, K2, H2 = 16, 32, 9
M2_PAD = 128                          # 9*9=81 lane-padded to 128
P2_K, P2_S, P2_P, P2_O = 4, 4, 2, 3
N_CLS = 20


# ------------------------------ Pallas kernels ------------------------------

def conv1_pool1_kernel(p_ref, w_ref, b_ref, o_ref):
    # p_ref: (48, 4096) bf16 im2col patches, flat spatial index oh*63+ow
    # w_ref: (8, 48) bf16    b_ref: (8, 1) f32
    # o_ref: (8, 64) f32, flat pooled index po*8+pw
    c = jnp.dot(w_ref[...], p_ref[...], preferred_element_type=jnp.float32)
    c = jnp.maximum(c + b_ref[...], 0.0)                      # (8, 4096) f32
    for po in range(P1_O):
        # valid (unpadded) rows of this pooling window -- clipping the window
        # to the valid region is exactly PyTorch's -inf padding semantics.
        h_lo = max(0, po * P1_S - P1_P)
        h_hi = min(H1, po * P1_S - P1_P + P1_K)
        hm = c[:, h_lo * H1:h_lo * H1 + H1]                   # (8, 63)
        for h in range(h_lo + 1, h_hi):
            hm = jnp.maximum(hm, c[:, h * H1:h * H1 + H1])
        for pw in range(P1_O):
            w_lo = max(0, pw * P1_S - P1_P)
            w_hi = min(H1, pw * P1_S - P1_P + P1_K)
            col = jnp.max(hm[:, w_lo:w_hi], axis=1, keepdims=True)   # (8, 1)
            j = po * P1_O + pw
            o_ref[:, j:j + 1] = col


def conv2_dense_kernel(p_ref, w2_ref, b2_ref, w3_ref, b3_ref, o_ref):
    # p_ref: (32, 128) bf16 im2col patches, flat spatial index oh*9+ow
    # w2_ref: (16, 32) bf16   b2_ref: (16, 1) f32
    # w3_ref: (9, 20, 16) f32 per-pool2-position dense weight slices
    # b3_ref: (20, 1) f32     o_ref: (20, 1) f32 log-probabilities
    c = jnp.dot(w2_ref[...], p_ref[...], preferred_element_type=jnp.float32)
    c = jnp.maximum(c + b2_ref[...], 0.0)                     # (16, 128) f32
    y = b3_ref[...]                                           # (20, 1)
    for po in range(P2_O):
        h_lo = max(0, po * P2_S - P2_P)
        h_hi = min(H2, po * P2_S - P2_P + P2_K)
        hm = c[:, h_lo * H2:h_lo * H2 + H2]                   # (16, 9)
        for h in range(h_lo + 1, h_hi):
            hm = jnp.maximum(hm, c[:, h * H2:h * H2 + H2])
        for pw in range(P2_O):
            w_lo = max(0, pw * P2_S - P2_P)
            w_hi = min(H2, pw * P2_S - P2_P + P2_K)
            pj = jnp.max(hm[:, w_lo:w_hi], axis=1, keepdims=True)    # (16, 1)
            j = po * P2_O + pw
            # Linear: accumulate W3[:, c*9+j] @ pooled features at position j.
            y = y + jnp.dot(w3_ref[j], pj, preferred_element_type=jnp.float32)
    y = jnp.maximum(y, 0.0)                                   # Linear + ReLU
    m = jnp.max(y, axis=0, keepdims=True)                     # LogSoftmax(dim=1)
    z = y - m
    lse = jnp.log(jnp.sum(jnp.exp(z), axis=0, keepdims=True))
    o_ref[...] = (z - lse).astype(o_ref.dtype)


# ------------------------------ Pallas wrappers ------------------------------

def conv1_relu_pool1(patches, w1f, b1c):
    N = patches.shape[0]
    return pl.pallas_call(
        conv1_pool1_kernel,
        out_shape=jax.ShapeDtypeStruct((N, C1_OUT, P1_O * P1_O), jnp.float32),
        grid=(N,),
        in_specs=[
            pl.BlockSpec((None, K1, M1_PAD), lambda n: (n, 0, 0)),
            pl.BlockSpec((C1_OUT, K1), lambda n: (0, 0)),
            pl.BlockSpec((C1_OUT, 1), lambda n: (0, 0)),
        ],
        out_specs=pl.BlockSpec((None, C1_OUT, P1_O * P1_O), lambda n: (n, 0, 0)),
        compiler_params=pltpu.CompilerParams(dimension_semantics=("parallel",)),
    )(patches, w1f, b1c)


def conv2_relu_pool2_dense_lsm(patches, w2f, b2c, w3r, b3c):
    N = patches.shape[0]
    return pl.pallas_call(
        conv2_dense_kernel,
        out_shape=jax.ShapeDtypeStruct((N, N_CLS, 1), jnp.float32),
        grid=(N,),
        in_specs=[
            pl.BlockSpec((None, K2, M2_PAD), lambda n: (n, 0, 0)),
            pl.BlockSpec((C2_OUT, K2), lambda n: (0, 0)),
            pl.BlockSpec((C2_OUT, 1), lambda n: (0, 0)),
            pl.BlockSpec((P2_O * P2_O, N_CLS, C2_OUT), lambda n: (0, 0, 0)),
            pl.BlockSpec((N_CLS, 1), lambda n: (0, 0)),
        ],
        out_specs=pl.BlockSpec((None, N_CLS, 1), lambda n: (n, 0, 0)),
        compiler_params=pltpu.CompilerParams(dimension_semantics=("parallel",)),
    )(patches, w2f, b2c, w3r, b3c)


# ------------------------------ plain-JAX glue ------------------------------

def im2col_flat(x, kh, kw, pad, m_pad):
    # x: (N, C, H, W) -> (N, C*kh*kw, m_pad) patches with flat spatial index
    # oh*Wo+ow in the lane dim (zero-padded to m_pad, a multiple of 128).
    # K ordering (Cin, kh, kw) matches torch weight.reshape(Cout, -1).
    N, C, H, W = x.shape
    xp = jnp.pad(x, ((0, 0), (0, 0), (pad, pad), (pad, pad)))
    Ho = H + 2 * pad - kh + 1
    Wo = W + 2 * pad - kw + 1
    cols = []
    for dh in range(kh):
        for dw in range(kw):
            cols.append(xp[:, :, dh:dh + Ho, dw:dw + Wo])      # (N, C, Ho, Wo)
    p = jnp.stack(cols, axis=2)                                # (N, C, kh*kw, Ho, Wo)
    p = p.reshape(N, C * kh * kw, Ho * Wo)
    return jnp.pad(p, ((0, 0), (0, 0), (0, m_pad - Ho * Wo)))


# ------------------------------ full forward ------------------------------

def cnn_forward(x, params):
    w1, b1, w2, b2, w3, b3 = params
    N = x.shape[0]

    # conv1 + ReLU + maxpool1 (fused kernel 1); patches/weights in bf16.
    p1 = im2col_flat(x, 4, 4, 1, M1_PAD).astype(jnp.bfloat16)        # (N, 48, 4096)
    m1 = conv1_relu_pool1(p1,
                          w1.reshape(C1_OUT, -1).astype(jnp.bfloat16),
                          b1.reshape(C1_OUT, 1))                     # (N, 8, 64)

    # conv2 + ReLU + maxpool2 + Linear + ReLU + LogSoftmax (fused kernel 2).
    m1r = m1.reshape(N, C1_OUT, P1_O, P1_O)                          # (N, 8, 8, 8)
    p2 = im2col_flat(m1r, 2, 2, 1, M2_PAD).astype(jnp.bfloat16)      # (N, 32, 128)
    w3r = w3.reshape(N_CLS, C2_OUT, P2_O * P2_O).transpose(2, 0, 1)  # (9, 20, 16)
    out = conv2_relu_pool2_dense_lsm(
        p2, w2.reshape(C2_OUT, -1).astype(jnp.bfloat16),
        b2.reshape(C2_OUT, 1), w3r, b3.reshape(N_CLS, 1))            # (N, 20, 1)
    return out[..., 0]                                               # (N, 20)


# ------------------------------ pure-JAX reference ------------------------------

def cnn_reference(x, params):
    w1, b1, w2, b2, w3, b3 = params

    def conv_relu(h, w, b, pad):
        y = jax.lax.conv_general_dilated(
            h, w, (1, 1), ((pad, pad), (pad, pad)),
            dimension_numbers=("NCHW", "OIHW", "NCHW"))
        return jax.nn.relu(y + b[None, :, None, None])

    def maxpool(h, k, s, pad):
        return jax.lax.reduce_window(
            h, -jnp.inf, jax.lax.max, (1, 1, k, k), (1, 1, s, s),
            ((0, 0), (0, 0), (pad, pad), (pad, pad)))

    h = maxpool(conv_relu(x, w1, b1, 1), 8, 8, 4)
    h = maxpool(conv_relu(h, w2, b2, 1), 4, 4, 2)
    h = jax.nn.relu(h.reshape(x.shape[0], -1) @ w3.T + b3)
    return jax.nn.log_softmax(h, axis=1)


# ------------------------------ main ------------------------------

if __name__ == "__main__":
    key = jax.random.PRNGKey(0)
    ks = jax.random.split(key, 7)

    # Deterministic synthetic parameters (shapes from the torch module).
    w1 = 0.1 * jax.random.normal(ks[0], (8, 3, 4, 4), jnp.float32)
    b1 = 0.1 * jax.random.normal(ks[1], (8,), jnp.float32)
    w2 = 0.1 * jax.random.normal(ks[2], (16, 8, 2, 2), jnp.float32)
    b2 = 0.1 * jax.random.normal(ks[3], (16,), jnp.float32)
    w3 = 0.1 * jax.random.normal(ks[4], (20, 144), jnp.float32)
    b3 = 0.1 * jax.random.normal(ks[5], (20,), jnp.float32)
    params = (w1, b1, w2, b2, w3, b3)

    # Input: batch=2, channels=3, 64x64 (smallest "nice" spatial size that
    # satisfies the module's 16*3*3 flatten constraint).
    x = jax.random.normal(ks[6], (2, 3, 64, 64), jnp.float32)

    out = jax.block_until_ready(jax.jit(cnn_forward)(x, params))

    assert out.shape == (2, 20), out.shape
    assert bool(jnp.all(jnp.isfinite(out)))
    # log-softmax rows should exponentiate-sum to 1
    assert bool(jnp.allclose(jnp.exp(out).sum(axis=1), 1.0, atol=1e-4))
    # compare against an f32 XLA reference (loose tol: kernels use bf16 convs)
    ref = cnn_reference(x, params)
    assert bool(jnp.allclose(out, ref, atol=5e-2)), (out, ref)

    print("KERNEL_OK")
</pallas_src>

<mosaic_0001>
module attributes {stable_mosaic.version = 11 : i64} {
  func.func @conv1_pool1_kernel(%arg0: i32, %arg1: memref<1x48x4096xbf16, #tpu.memory_space<vmem>>, %arg2: memref<8x48xbf16, #tpu.memory_space<vmem>>, %arg3: memref<8x1xf32, #tpu.memory_space<vmem>>, %arg4: memref<1x8x64xf32, #tpu.memory_space<vmem>>) attributes {dimension_semantics = [#tpu.dimension_semantics<parallel>], iteration_bounds = array<i64: 2>, scalar_prefetch = 0 : i64, scratch_operands = 0 : i64, tpu.core_type = #tpu.core_type<tc>, window_params = [{transform_indices = @transform_0, window_bounds = array<i64: 1, 48, 4096>}, {pipeline_mode = #tpu.pipeline_mode<synchronous>, transform_indices = @transform_1, window_bounds = array<i64: 8, 48>}, {pipeline_mode = #tpu.pipeline_mode<synchronous>, transform_indices = @transform_2, window_bounds = array<i64: 8, 1>}, {transform_indices = @transform_3, window_bounds = array<i64: 1, 8, 64>}]} {
    %c0 = arith.constant 0 : index
    %c0_0 = arith.constant 0 : index
    %0 = vector.load %arg2[%c0, %c0_0] : memref<8x48xbf16, #tpu.memory_space<vmem>>, vector<8x48xbf16>
    %c0_1 = arith.constant 0 : index
    %c0_2 = arith.constant 0 : index
    %c0_3 = arith.constant 0 : index
    %1 = vector.load %arg1[%c0_1, %c0_2, %c0_3] : memref<1x48x4096xbf16, #tpu.memory_space<vmem>>, vector<1x48x4096xbf16>
    %2 = vector.shape_cast %1 : vector<1x48x4096xbf16> to vector<48x4096xbf16>
    %cst = arith.constant dense<0.000000e+00> : vector<8x4096xf32>
    %3 = tpu.matmul %0, %2, %cst {dimension_numbers = #tpu.dot_dimension_numbers<[1], [0], [0], [1], [0, 0, 1, 1], [], []>} : vector<8x48xbf16>, vector<48x4096xbf16>, vector<8x4096xf32> -> vector<8x4096xf32>
    %c0_4 = arith.constant 0 : index
    %c0_5 = arith.constant 0 : index
    %4 = vector.load %arg3[%c0_4, %c0_5] : memref<8x1xf32, #tpu.memory_space<vmem>>, vector<8x1xf32>
    %5 = vector.broadcast %4 : vector<8x1xf32> to vector<8x4096xf32>
    %6 = arith.addf %3, %5 : vector<8x4096xf32>
    %cst_6 = arith.constant 0.000000e+00 : f32
    %7 = vector.broadcast %cst_6 : f32 to vector<8x4096xf32>
    %8 = arith.maximumf %6, %7 : vector<8x4096xf32>
    %9 = vector.extract_strided_slice %8 {offsets = [0, 0], sizes = [8, 63], strides = [1, 1]} : vector<8x4096xf32> to vector<8x63xf32>
    %10 = vector.extract_strided_slice %8 {offsets = [0, 63], sizes = [8, 63], strides = [1, 1]} : vector<8x4096xf32> to vector<8x63xf32>
    %11 = arith.maximumf %9, %10 : vector<8x63xf32>
    %12 = vector.extract_strided_slice %8 {offsets = [0, 126], sizes = [8, 63], strides = [1, 1]} : vector<8x4096xf32> to vector<8x63xf32>
    %13 = arith.maximumf %11, %12 : vector<8x63xf32>
    %14 = vector.extract_strided_slice %8 {offsets = [0, 189], sizes = [8, 63], strides = [1, 1]} : vector<8x4096xf32> to vector<8x63xf32>
    %15 = arith.maximumf %13, %14 : vector<8x63xf32>
    %16 = vector.extract_strided_slice %15 {offsets = [0, 0], sizes = [8, 4], strides = [1, 1]} : vector<8x63xf32> to vector<8x4xf32>
    %cst_7 = arith.constant dense<0xFF800000> : vector<8xf32>
    %17 = vector.multi_reduction <maximumf>, %16, %cst_7 [1] : vector<8x4xf32> to vector<8xf32>
    %18 = vector.shape_cast %17 : vector<8xf32> to vector<8x1xf32>
    %c0_8 = arith.constant 0 : index
    %c0_9 = arith.constant 0 : index
    %c0_10 = arith.constant 0 : index
    %19 = vector.load %arg4[%c0_8, %c0_9, %c0_10] : memref<1x8x64xf32, #tpu.memory_space<vmem>>, vector<1x8x1xf32>
    %20 = vector.shape_cast %19 : vector<1x8x1xf32> to vector<8x1xf32>
    %21 = vector.shape_cast %18 : vector<8x1xf32> to vector<1x8x1xf32>
    tpu.vector_store %arg4[%c0_8, %c0_9, %c0_10], %21 {strides = array<i32>} : memref<1x8x64xf32, #tpu.memory_space<vmem>>, vector<1x8x1xf32>,
    %22 = vector.extract_strided_slice %15 {offsets = [0, 4], sizes = [8, 8], strides = [1, 1]} : vector<8x63xf32> to vector<8x8xf32>
    %cst_11 = arith.constant dense<0xFF800000> : vector<8xf32>
    %23 = vector.multi_reduction <maximumf>, %22, %cst_11 [1] : vector<8x8xf32> to vector<8xf32>
    %24 = vector.shape_cast %23 : vector<8xf32> to vector<8x1xf32>
    %c0_12 = arith.constant 0 : index
    %c0_13 = arith.constant 0 : index
    %c1 = arith.constant 1 : index
    %25 = vector.load %arg4[%c0_12, %c0_13, %c1] : memref<1x8x64xf32, #tpu.memory_space<vmem>>, vector<1x8x1xf32>
    %26 = vector.shape_cast %25 : vector<1x8x1xf32> to vector<8x1xf32>
    %27 = vector.shape_cast %24 : vector<8x1xf32> to vector<1x8x1xf32>
    tpu.vector_store %arg4[%c0_12, %c0_13, %c1], %27 {strides = array<i32>} : memref<1x8x64xf32, #tpu.memory_space<vmem>>, vector<1x8x1xf32>,
    %28 = vector.extract_strided_slice %15 {offsets = [0, 12], sizes = [8, 8], strides = [1, 1]} : vector<8x63xf32> to vector<8x8xf32>
    %cst_14 = arith.constant dense<0xFF800000> : vector<8xf32>
    %29 = vector.multi_reduction <maximumf>, %28, %cst_14 [1] : vector<8x8xf32> to vector<8xf32>
    %30 = vector.shape_cast %29 : vector<8xf32> to vector<8x1xf32>
    %c0_15 = arith.constant 0 : index
    %c0_16 = arith.constant 0 : index
    %c2 = arith.constant 2 : index
    %31 = vector.load %arg4[%c0_15, %c0_16, %c2] : memref<1x8x64xf32, #tpu.memory_space<vmem>>, vector<1x8x1xf32>
    %32 = vector.shape_cast %31 : vector<1x8x1xf32> to vector<8x1xf32>
    %33 = vector.shape_cast %30 : vector<8x1xf32> to vector<1x8x1xf32>
    tpu.vector_store %arg4[%c0_15, %c0_16, %c2], %33 {strides = array<i32>} : memref<1x8x64xf32, #tpu.memory_space<vmem>>, vector<1x8x1xf32>,
    %34 = vector.extract_strided_slice %15 {offsets = [0, 20], sizes = [8, 8], strides = [1, 1]} : vector<8x63xf32> to vector<8x8xf32>
    %cst_17 = arith.constant dense<0xFF800000> : vector<8xf32>
    %35 = vector.multi_reduction <maximumf>, %34, %cst_17 [1] : vector<8x8xf32> to vector<8xf32>
    %36 = vector.shape_cast %35 : vector<8xf32> to vector<8x1xf32>
    %c0_18 = arith.constant 0 : index
    %c0_19 = arith.constant 0 : index
    %c3 = arith.constant 3 : index
    %37 = vector.load %arg4[%c0_18, %c0_19, %c3] : memref<1x8x64xf32, #tpu.memory_space<vmem>>, vector<1x8x1xf32>
    %38 = vector.shape_cast %37 : vector<1x8x1xf32> to vector<8x1xf32>
    %39 = vector.shape_cast %36 : vector<8x1xf32> to vector<1x8x1xf32>
    tpu.vector_store %arg4[%c0_18, %c0_19, %c3], %39 {strides = array<i32>} : memref<1x8x64xf32, #tpu.memory_space<vmem>>, vector<1x8x1xf32>,
    %40 = vector.extract_strided_slice %15 {offsets = [0, 28], sizes = [8, 8], strides = [1, 1]} : vector<8x63xf32> to vector<8x8xf32>
    %cst_20 = arith.constant dense<0xFF800000> : vector<8xf32>
    %41 = vector.multi_reduction <maximumf>, %40, %cst_20 [1] : vector<8x8xf32> to vector<8xf32>
    %42 = vector.shape_cast %41 : vector<8xf32> to vector<8x1xf32>
    %c0_21 = arith.constant 0 : index
    %c0_22 = arith.constant 0 : index
    %c4 = arith.constant 4 : index
    %43 = vector.load %arg4[%c0_21, %c0_22, %c4] : memref<1x8x64xf32, #tpu.memory_space<vmem>>, vector<1x8x1xf32>
    %44 = vector.shape_cast %43 : vector<1x8x1xf32> to vector<8x1xf32>
    %45 = vector.shape_cast %42 : vector<8x1xf32> to vector<1x8x1xf32>
    tpu.vector_store %arg4[%c0_21, %c0_22, %c4], %45 {strides = array<i32>} : memref<1x8x64xf32, #tpu.memory_space<vmem>>, vector<1x8x1xf32>,
    %46 = vector.extract_strided_slice %15 {offsets = [0, 36], sizes = [8, 8], strides = [1, 1]} : vector<8x63xf32> to vector<8x8xf32>
    %cst_23 = arith.constant dense<0xFF800000> : vector<8xf32>
    %47 = vector.multi_reduction <maximumf>, %46, %cst_23 [1] : vector<8x8xf32> to vector<8xf32>
    %48 = vector.shape_cast %47 : vector<8xf32> to vector<8x1xf32>
    %c0_24 = arith.constant 0 : index
    %c0_25 = arith.constant 0 : index
    %c5 = arith.constant 5 : index
    %49 = vector.load %arg4[%c0_24, %c0_25, %c5] : memref<1x8x64xf32, #tpu.memory_space<vmem>>, vector<1x8x1xf32>
    %50 = vector.shape_cast %49 : vector<1x8x1xf32> to vector<8x1xf32>
    %51 = vector.shape_cast %48 : vector<8x1xf32> to vector<1x8x1xf32>
    tpu.vector_store %arg4[%c0_24, %c0_25, %c5], %51 {strides = array<i32>} : memref<1x8x64xf32, #tpu.memory_space<vmem>>, vector<1x8x1xf32>,
    %52 = vector.extract_strided_slice %15 {offsets = [0, 44], sizes = [8, 8], strides = [1, 1]} : vector<8x63xf32> to vector<8x8xf32>
    %cst_26 = arith.constant dense<0xFF800000> : vector<8xf32>
    %53 = vector.multi_reduction <maximumf>, %52, %cst_26 [1] : vector<8x8xf32> to vector<8xf32>
    %54 = vector.shape_cast %53 : vector<8xf32> to vector<8x1xf32>
    %c0_27 = arith.constant 0 : index
    %c0_28 = arith.constant 0 : index
    %c6 = arith.constant 6 : index
    %55 = vector.load %arg4[%c0_27, %c0_28, %c6] : memref<1x8x64xf32, #tpu.memory_space<vmem>>, vector<1x8x1xf32>
    %56 = vector.shape_cast %55 : vector<1x8x1xf32> to vector<8x1xf32>
    %57 = vector.shape_cast %54 : vector<8x1xf32> to vector<1x8x1xf32>
    tpu.vector_store %arg4[%c0_27, %c0_28, %c6], %57 {strides = array<i32>} : memref<1x8x64xf32, #tpu.memory_space<vmem>>, vector<1x8x1xf32>,
    %58 = vector.extract_strided_slice %15 {offsets = [0, 52], sizes = [8, 8], strides = [1, 1]} : vector<8x63xf32> to vector<8x8xf32>
    %cst_29 = arith.constant dense<0xFF800000> : vector<8xf32>
    %59 = vector.multi_reduction <maximumf>, %58, %cst_29 [1] : vector<8x8xf32> to vector<8xf32>
    %60 = vector.shape_cast %59 : vector<8xf32> to vector<8x1xf32>
    %c0_30 = arith.constant 0 : index
    %c0_31 = arith.constant 0 : index
    %c7 = arith.constant 7 : index
    %61 = vector.load %arg4[%c0_30, %c0_31, %c7] : memref<1x8x64xf32, #tpu.memory_space<vmem>>, vector<1x8x1xf32>
    %62 = vector.shape_cast %61 : vector<1x8x1xf32> to vector<8x1xf32>
    %63 = vector.shape_cast %60 : vector<8x1xf32> to vector<1x8x1xf32>
    tpu.vector_store %arg4[%c0_30, %c0_31, %c7], %63 {strides = array<i32>} : memref<1x8x64xf32, #tpu.memory_space<vmem>>, vector<1x8x1xf32>,
    %64 = vector.extract_strided_slice %8 {offsets = [0, 252], sizes = [8, 63], strides = [1, 1]} : vector<8x4096xf32> to vector<8x63xf32>
    %65 = vector.extract_strided_slice %8 {offsets = [0, 315], sizes = [8, 63], strides = [1, 1]} : vector<8x4096xf32> to vector<8x63xf32>
    %66 = arith.maximumf %64, %65 : vector<8x63xf32>
    %67 = vector.extract_strided_slice %8 {offsets = [0, 378], sizes = [8, 63], strides = [1, 1]} : vector<8x4096xf32> to vector<8x63xf32>
    %68 = arith.maximumf %66, %67 : vector<8x63xf32>
    %69 = vector.extract_strided_slice %8 {offsets = [0, 441], sizes = [8, 63], strides = [1, 1]} : vector<8x4096xf32> to vector<8x63xf32>
    %70 = arith.maximumf %68, %69 : vector<8x63xf32>
    %71 = vector.extract_strided_slice %8 {offsets = [0, 504], sizes = [8, 63], strides = [1, 1]} : vector<8x4096xf32> to vector<8x63xf32>
    %72 = arith.maximumf %70, %71 : vector<8x63xf32>
    %73 = vector.extract_strided_slice %8 {offsets = [0, 567], sizes = [8, 63], strides = [1, 1]} : vector<8x4096xf32> to vector<8x63xf32>
    %74 = arith.maximumf %72, %73 : vector<8x63xf32>
    %75 = vector.extract_strided_slice %8 {offsets = [0, 630], sizes = [8, 63], strides = [1, 1]} : vector<8x4096xf32> to vector<8x63xf32>
    %76 = arith.maximumf %74, %75 : vector<8x63xf32>
    %77 = vector.extract_strided_slice %8 {offsets = [0, 693], sizes = [8, 63], strides = [1, 1]} : vector<8x4096xf32> to vector<8x63xf32>
    %78 = arith.maximumf %76, %77 : vector<8x63xf32>
    %79 = vector.extract_strided_slice %78 {offsets = [0, 0], sizes = [8, 4], strides = [1, 1]} : vector<8x63xf32> to vector<8x4xf32>
    %cst_32 = arith.constant dense<0xFF800000> : vector<8xf32>
    %80 = vector.multi_reduction <maximumf>, %79, %cst_32 [1] : vector<8x4xf32> to vector<8xf32>
    %81 = vector.shape_cast %80 : vector<8xf32> to vector<8x1xf32>
    %c0_33 = arith.constant 0 : index
    %c0_34 = arith.constant 0 : index
    %c8 = arith.constant 8 : index
    %82 = vector.load %arg4[%c0_33, %c0_34, %c8] : memref<1x8x64xf32, #tpu.memory_space<vmem>>, vector<1x8x1xf32>
    %83 = vector.shape_cast %82 : vector<1x8x1xf32> to vector<8x1xf32>
    %84 = vector.shape_cast %81 : vector<8x1xf32> to vector<1x8x1xf32>
    tpu.vector_store %arg4[%c0_33, %c0_34, %c8], %84 {strides = array<i32>} : memref<1x8x64xf32, #tpu.memory_space<vmem>>, vector<1x8x1xf32>,
    %85 = vector.extract_strided_slice %78 {offsets = [0, 4], sizes = [8, 8], strides = [1, 1]} : vector<8x63xf32> to vector<8x8xf32>
    %cst_35 = arith.constant dense<0xFF800000> : vector<8xf32>
    %86 = vector.multi_reduction <maximumf>, %85, %cst_35 [1] : vector<8x8xf32> to vector<8xf32>
    %87 = vector.shape_cast %86 : vector<8xf32> to vector<8x1xf32>
    %c0_36 = arith.constant 0 : index
    %c0_37 = arith.constant 0 : index
    %c9 = arith.constant 9 : index
    %88 = vector.load %arg4[%c0_36, %c0_37, %c9] : memref<1x8x64xf32, #tpu.memory_space<vmem>>, vector<1x8x1xf32>
    %89 = vector.shape_cast %88 : vector<1x8x1xf32> to vector<8x1xf32>
    %90 = vector.shape_cast %87 : vector<8x1xf32> to vector<1x8x1xf32>
    tpu.vector_store %arg4[%c0_36, %c0_37, %c9], %90 {strides = array<i32>} : memref<1x8x64xf32, #tpu.memory_space<vmem>>, vector<1x8x1xf32>,
    %91 = vector.extract_strided_slice %78 {offsets = [0, 12], sizes = [8, 8], strides = [1, 1]} : vector<8x63xf32> to vector<8x8xf32>
    %cst_38 = arith.constant dense<0xFF800000> : vector<8xf32>
    %92 = vector.multi_reduction <maximumf>, %91, %cst_38 [1] : vector<8x8xf32> to vector<8xf32>
    %93 = vector.shape_cast %92 : vector<8xf32> to vector<8x1xf32>
    %c0_39 = arith.constant 0 : index
    %c0_40 = arith.constant 0 : index
    %c10 = arith.constant 10 : index
    %94 = vector.load %arg4[%c0_39, %c0_40, %c10] : memref<1x8x64xf32, #tpu.memory_space<vmem>>, vector<1x8x1xf32>
    %95 = vector.shape_cast %94 : vector<1x8x1xf32> to vector<8x1xf32>
    %96 = vector.shape_cast %93 : vector<8x1xf32> to vector<1x8x1xf32>
    tpu.vector_store %arg4[%c0_39, %c0_40, %c10], %96 {strides = array<i32>} : memref<1x8x64xf32, #tpu.memory_space<vmem>>, vector<1x8x1xf32>,
    %97 = vector.extract_strided_slice %78 {offsets = [0, 20], sizes = [8, 8], strides = [1, 1]} : vector<8x63xf32> to vector<8x8xf32>
    %cst_41 = arith.constant dense<0xFF800000> : vector<8xf32>
    %98 = vector.multi_reduction <maximumf>, %97, %cst_41 [1] : vector<8x8xf32> to vector<8xf32>
    %99 = vector.shape_cast %98 : vector<8xf32> to vector<8x1xf32>
    %c0_42 = arith.constant 0 : index
    %c0_43 = arith.constant 0 : index
    %c11 = arith.constant 11 : index
    %100 = vector.load %arg4[%c0_42, %c0_43, %c11] : memref<1x8x64xf32, #tpu.memory_space<vmem>>, vector<1x8x1xf32>
    %101 = vector.shape_cast %100 : vector<1x8x1xf32> to vector<8x1xf32>
    %102 = vector.shape_cast %99 : vector<8x1xf32> to vector<1x8x1xf32>
    tpu.vector_store %arg4[%c0_42, %c0_43, %c11], %102 {strides = array<i32>} : memref<1x8x64xf32, #tpu.memory_space<vmem>>, vector<1x8x1xf32>,
    %103 = vector.extract_strided_slice %78 {offsets = [0, 28], sizes = [8, 8], strides = [1, 1]} : vector<8x63xf32> to vector<8x8xf32>
    %cst_44 = arith.constant dense<0xFF800000> : vector<8xf32>
    %104 = vector.multi_reduction <maximumf>, %103, %cst_44 [1] : vector<8x8xf32> to vector<8xf32>
    %105 = vector.shape_cast %104 : vector<8xf32> to vector<8x1xf32>
    %c0_45 = arith.constant 0 : index
    %c0_46 = arith.constant 0 : index
    %c12 = arith.constant 12 : index
    %106 = vector.load %arg4[%c0_45, %c0_46, %c12] : memref<1x8x64xf32, #tpu.memory_space<vmem>>, vector<1x8x1xf32>
    %107 = vector.shape_cast %106 : vector<1x8x1xf32> to vector<8x1xf32>
    %108 = vector.shape_cast %105 : vector<8x1xf32> to vector<1x8x1xf32>
    tpu.vector_store %arg4[%c0_45, %c0_46, %c12], %108 {strides = array<i32>} : memref<1x8x64xf32, #tpu.memory_space<vmem>>, vector<1x8x1xf32>,
    %109 = vector.extract_strided_slice %78 {offsets = [0, 36], sizes = [8, 8], strides = [1, 1]} : vector<8x63xf32> to vector<8x8xf32>
    %cst_47 = arith.constant dense<0xFF800000> : vector<8xf32>
    %110 = vector.multi_reduction <maximumf>, %109, %cst_47 [1] : vector<8x8xf32> to vector<8xf32>
    %111 = vector.shape_cast %110 : vector<8xf32> to vector<8x1xf32>
    %c0_48 = arith.constant 0 : index
    %c0_49 = arith.constant 0 : index
    %c13 = arith.constant 13 : index
    %112 = vector.load %arg4[%c0_48, %c0_49, %c13] : memref<1x8x64xf32, #tpu.memory_space<vmem>>, vector<1x8x1xf32>
    %113 = vector.shape_cast %112 : vector<1x8x1xf32> to vector<8x1xf32>
    %114 = vector.shape_cast %111 : vector<8x1xf32> to vector<1x8x1xf32>
    tpu.vector_store %arg4[%c0_48, %c0_49, %c13], %114 {strides = array<i32>} : memref<1x8x64xf32, #tpu.memory_space<vmem>>, vector<1x8x1xf32>,
    %115 = vector.extract_strided_slice %78 {offsets = [0, 44], sizes = [8, 8], strides = [1, 1]} : vector<8x63xf32> to vector<8x8xf32>
    %cst_50 = arith.constant dense<0xFF800000> : vector<8xf32>
    %116 = vector.multi_reduction <maximumf>, %115, %cst_50 [1] : vector<8x8xf32> to vector<8xf32>
    %117 = vector.shape_cast %116 : vector<8xf32> to vector<8x1xf32>
    %c0_51 = arith.constant 0 : index
    %c0_52 = arith.constant 0 : index
    %c14 = arith.constant 14 : index
    %118 = vector.load %arg4[%c0_51, %c0_52, %c14] : memref<1x8x64xf32, #tpu.memory_space<vmem>>, vector<1x8x1xf32>
    %119 = vector.shape_cast %118 : vector<1x8x1xf32> to vector<8x1xf32>
    %120 = vector.shape_cast %117 : vector<8x1xf32> to vector<1x8x1xf32>
    tpu.vector_store %arg4[%c0_51, %c0_52, %c14], %120 {strides = array<i32>} : memref<1x8x64xf32, #tpu.memory_space<vmem>>, vector<1x8x1xf32>,
    %121 = vector.extract_strided_slice %78 {offsets = [0, 52], sizes = [8, 8], strides = [1, 1]} : vector<8x63xf32> to vector<8x8xf32>
    %cst_53 = arith.constant dense<0xFF800000> : vector<8xf32>
    %122 = vector.multi_reduction <maximumf>, %121, %cst_53 [1] : vector<8x8xf32> to vector<8xf32>
    %123 = vector.shape_cast %122 : vector<8xf32> to vector<8x1xf32>
    %c0_54 = arith.constant 0 : index
    %c0_55 = arith.constant 0 : index
    %c15 = arith.constant 15 : index
    %124 = vector.load %arg4[%c0_54, %c0_55, %c15] : memref<1x8x64xf32, #tpu.memory_space<vmem>>, vector<1x8x1xf32>
    %125 = vector.shape_cast %124 : vector<1x8x1xf32> to vector<8x1xf32>
    %126 = vector.shape_cast %123 : vector<8x1xf32> to vector<1x8x1xf32>
    tpu.vector_store %arg4[%c0_54, %c0_55, %c15], %126 {strides = array<i32>} : memref<1x8x64xf32, #tpu.memory_space<vmem>>, vector<1x8x1xf32>,
    %127 = vector.extract_strided_slice %8 {offsets = [0, 756], sizes = [8, 63], strides = [1, 1]} : vector<8x4096xf32> to vector<8x63xf32>
    %128 = vector.extract_strided_slice %8 {offsets = [0, 819], sizes = [8, 63], strides = [1, 1]} : vector<8x4096xf32> to vector<8x63xf32>
    %129 = arith.maximumf %127, %128 : vector<8x63xf32>
    %130 = vector.extract_strided_slice %8 {offsets = [0, 882], sizes = [8, 63], strides = [1, 1]} : vector<8x4096xf32> to vector<8x63xf32>
    %131 = arith.maximumf %129, %130 : vector<8x63xf32>
    %132 = vector.extract_strided_slice %8 {offsets = [0, 945], sizes = [8, 63], strides = [1, 1]} : vector<8x4096xf32> to vector<8x63xf32>
    %133 = arith.maximumf %131, %132 : vector<8x63xf32>
    %134 = vector.extract_strided_slice %8 {offsets = [0, 1008], sizes = [8, 63], strides = [1, 1]} : vector<8x4096xf32> to vector<8x63xf32>
    %135 = arith.maximumf %133, %134 : vector<8x63xf32>
    %136 = vector.extract_strided_slice %8 {offsets = [0, 1071], sizes = [8, 63], strides = [1, 1]} : vector<8x4096xf32> to vector<8x63xf32>
    %137 = arith.maximumf %135, %136 : vector<8x63xf32>
    %138 = vector.extract_strided_slice %8 {offsets = [0, 1134], sizes = [8, 63], strides = [1, 1]} : vector<8x4096xf32> to vector<8x63xf32>
    %139 = arith.maximumf %137, %138 : vector<8x63xf32>
    %140 = vector.extract_strided_slice %8 {offsets = [0, 1197], sizes = [8, 63], strides = [1, 1]} : vector<8x4096xf32> to vector<8x63xf32>
    %141 = arith.maximumf %139, %140 : vector<8x63xf32>
    %142 = vector.extract_strided_slice %141 {offsets = [0, 0], sizes = [8, 4], strides = [1, 1]} : vector<8x63xf32> to vector<8x4xf32>
    %cst_56 = arith.constant dense<0xFF800000> : vector<8xf32>
    %143 = vector.multi_reduction <maximumf>, %142, %cst_56 [1] : vector<8x4xf32> to vector<8xf32>
    %144 = vector.shape_cast %143 : vector<8xf32> to vector<8x1xf32>
    %c0_57 = arith.constant 0 : index
    %c0_58 = arith.constant 0 : index
    %c16 = arith.constant 16 : index
    %145 = vector.load %arg4[%c0_57, %c0_58, %c16] : memref<1x8x64xf32, #tpu.memory_space<vmem>>, vector<1x8x1xf32>
    %146 = vector.shape_cast %145 : vector<1x8x1xf32> to vector<8x1xf32>
    %147 = vector.shape_cast %144 : vector<8x1xf32> to vector<1x8x1xf32>
    tpu.vector_store %arg4[%c0_57, %c0_58, %c16], %147 {strides = array<i32>} : memref<1x8x64xf32, #tpu.memory_space<vmem>>, vector<1x8x1xf32>,
    %148 = vector.extract_strided_slice %141 {offsets = [0, 4], sizes = [8, 8], strides = [1, 1]} : vector<8x63xf32> to vector<8x8xf32>
    %cst_59 = arith.constant dense<0xFF800000> : vector<8xf32>
    %149 = vector.multi_reduction <maximumf>, %148, %cst_59 [1] : vector<8x8xf32> to vector<8xf32>
    %150 = vector.shape_cast %149 : vector<8xf32> to vector<8x1xf32>
    %c0_60 = arith.constant 0 : index
    %c0_61 = arith.constant 0 : index
    %c17 = arith.constant 17 : index
    %151 = vector.load %arg4[%c0_60, %c0_61, %c17] : memref<1x8x64xf32, #tpu.memory_space<vmem>>, vector<1x8x1xf32>
    %152 = vector.shape_cast %151 : vector<1x8x1xf32> to vector<8x1xf32>
    %153 = vector.shape_cast %150 : vector<8x1xf32> to vector<1x8x1xf32>
    tpu.vector_store %arg4[%c0_60, %c0_61, %c17], %153 {strides = array<i32>} : memref<1x8x64xf32, #tpu.memory_space<vmem>>, vector<1x8x1xf32>,
    %154 = vector.extract_strided_slice %141 {offsets = [0, 12], sizes = [8, 8], strides = [1, 1]} : vector<8x63xf32> to vector<8x8xf32>
    %cst_62 = arith.constant dense<0xFF800000> : vector<8xf32>
    %155 = vector.multi_reduction <maximumf>, %154, %cst_62 [1] : vector<8x8xf32> to vector<8xf32>
    %156 = vector.shape_cast %155 : vector<8xf32> to vector<8x1xf32>
    %c0_63 = arith.constant 0 : index
    %c0_64 = arith.constant 0 : index
    %c18 = arith.constant 18 : index
    %157 = vector.load %arg4[%c0_63, %c0_64, %c18] : memref<1x8x64xf32, #tpu.memory_space<vmem>>, vector<1x8x1xf32>
    %158 = vector.shape_cast %157 : vector<1x8x1xf32> to vector<8x1xf32>
    %159 = vector.shape_cast %156 : vector<8x1xf32> to vector<1x8x1xf32>
    tpu.vector_store %arg4[%c0_63, %c0_64, %c18], %159 {strides = array<i32>} : memref<1x8x64xf32, #tpu.memory_space<vmem>>, vector<1x8x1xf32>,
    %160 = vector.extract_strided_slice %141 {offsets = [0, 20], sizes = [8, 8], strides = [1, 1]} : vector<8x63xf32> to vector<8x8xf32>
    %cst_65 = arith.constant dense<0xFF800000> : vector<8xf32>
    %161 = vector.multi_reduction <maximumf>, %160, %cst_65 [1] : vector<8x8xf32> to vector<8xf32>
    %162 = vector.shape_cast %161 : vector<8xf32> to vector<8x1xf32>
    %c0_66 = arith.constant 0 : index
    %c0_67 = arith.constant 0 : index
    %c19 = arith.constant 19 : index
    %163 = vector.load %arg4[%c0_66, %c0_67, %c19] : memref<1x8x64xf32, #tpu.memory_space<vmem>>, vector<1x8x1xf32>
    %164 = vector.shape_cast %163 : vector<1x8x1xf32> to vector<8x1xf32>
    %165 = vector.shape_cast %162 : vector<8x1xf32> to vector<1x8x1xf32>
    tpu.vector_store %arg4[%c0_66, %c0_67, %c19], %165 {strides = array<i32>} : memref<1x8x64xf32, #tpu.memory_space<vmem>>, vector<1x8x1xf32>,
    %166 = vector.extract_strided_slice %141 {offsets = [0, 28], sizes = [8, 8], strides = [1, 1]} : vector<8x63xf32> to vector<8x8xf32>
    %cst_68 = arith.constant dense<0xFF800000> : vector<8xf32>
    %167 = vector.multi_reduction <maximumf>, %166, %cst_68 [1] : vector<8x8xf32> to vector<8xf32>
    %168 = vector.shape_cast %167 : vector<8xf32> to vector<8x1xf32>
    %c0_69 = arith.constant 0 : index
    %c0_70 = arith.constant 0 : index
    %c20 = arith.constant 20 : index
    %169 = vector.load %arg4[%c0_69, %c0_70, %c20] : memref<1x8x64xf32, #tpu.memory_space<vmem>>, vector<1x8x1xf32>
    %170 = vector.shape_cast %169 : vector<1x8x1xf32> to vector<8x1xf32>
    %171 = vector.shape_cast %168 : vector<8x1xf32> to vector<1x8x1xf32>
    tpu.vector_store %arg4[%c0_69, %c0_70, %c20], %171 {strides = array<i32>} : memref<1x8x64xf32, #tpu.memory_space<vmem>>, vector<1x8x1xf32>,
    %172 = vector.extract_strided_slice %141 {offsets = [0, 36], sizes = [8, 8], strides = [1, 1]} : vector<8x63xf32> to vector<8x8xf32>
    %cst_71 = arith.constant dense<0xFF800000> : vector<8xf32>
    %173 = vector.multi_reduction <maximumf>, %172, %cst_71 [1] : vector<8x8xf32> to vector<8xf32>
    %174 = vector.shape_cast %173 : vector<8xf32> to vector<8x1xf32>
    %c0_72 = arith.constant 0 : index
    %c0_73 = arith.constant 0 : index
    %c21 = arith.constant 21 : index
    %175 = vector.load %arg4[%c0_72, %c0_73, %c21] : memref<1x8x64xf32, #tpu.memory_space<vmem>>, vector<1x8x1xf32>
    %176 = vector.shape_cast %175 : vector<1x8x1xf32> to vector<8x1xf32>
    %177 = vector.shape_cast %174 : vector<8x1xf32> to vector<1x8x1xf32>
    tpu.vector_store %arg4[%c0_72, %c0_73, %c21], %177 {strides = array<i32>} : memref<1x8x64xf32, #tpu.memory_space<vmem>>, vector<1x8x1xf32>,
    %178 = vector.extract_strided_slice %141 {offsets = [0, 44], sizes = [8, 8], strides = [1, 1]} : vector<8x63xf32> to vector<8x8xf32>
    %cst_74 = arith.constant dense<0xFF800000> : vector<8xf32>
    %179 = vector.multi_reduction <maximumf>, %178, %cst_74 [1] : vector<8x8xf32> to vector<8xf32>
    %180 = vector.shape_cast %179 : vector<8xf32> to vector<8x1xf32>
    %c0_75 = arith.constant 0 : index
    %c0_76 = arith.constant 0 : index
    %c22 = arith.constant 22 : index
    %181 = vector.load %arg4[%c0_75, %c0_76, %c22] : memref<1x8x64xf32, #tpu.memory_space<vmem>>, vector<1x8x1xf32>
    %182 = vector.shape_cast %181 : vector<1x8x1xf32> to vector<8x1xf32>
    %183 = vector.shape_cast %180 : vector<8x1xf32> to vector<1x8x1xf32>
    tpu.vector_store %arg4[%c0_75, %c0_76, %c22], %183 {strides = array<i32>} : memref<1x8x64xf32, #tpu.memory_space<vmem>>, vector<1x8x1xf32>,
    %184 = vector.extract_strided_slice %141 {offsets = [0, 52], sizes = [8, 8], strides = [1, 1]} : vector<8x63xf32> to vector<8x8xf32>
    %cst_77 = arith.constant dense<0xFF800000> : vector<8xf32>
    %185 = vector.multi_reduction <maximumf>, %184, %cst_77 [1] : vector<8x8xf32> to vector<8xf32>
    %186 = vector.shape_cast %185 : vector<8xf32> to vector<8x1xf32>
    %c0_78 = arith.constant 0 : index
    %c0_79 = arith.constant 0 : index
    %c23 = arith.constant 23 : index
    %187 = vector.load %arg4[%c0_78, %c0_79, %c23] : memref<1x8x64xf32, #tpu.memory_space<vmem>>, vector<1x8x1xf32>
    %188 = vector.shape_cast %187 : vector<1x8x1xf32> to vector<8x1xf32>
    %189 = vector.shape_cast %186 : vector<8x1xf32> to vector<1x8x1xf32>
    tpu.vector_store %arg4[%c0_78, %c0_79, %c23], %189 {strides = array<i32>} : memref<1x8x64xf32, #tpu.memory_space<vmem>>, vector<1x8x1xf32>,
    %190 = vector.extract_strided_slice %8 {offsets = [0, 1260], sizes = [8, 63], strides = [1, 1]} : vector<8x4096xf32> to vector<8x63xf32>
    %191 = vector.extract_strided_slice %8 {offsets = [0, 1323], sizes = [8, 63], strides = [1, 1]} : vector<8x4096xf32> to vector<8x63xf32>
    %192 = arith.maximumf %190, %191 : vector<8x63xf32>
    %193 = vector.extract_strided_slice %8 {offsets = [0, 1386], sizes = [8, 63], strides = [1, 1]} : vector<8x4096xf32> to vector<8x63xf32>
    %194 = arith.maximumf %192, %193 : vector<8x63xf32>
    %195 = vector.extract_strided_slice %8 {offsets = [0, 1449], sizes = [8, 63], strides = [1, 1]} : vector<8x4096xf32> to vector<8x63xf32>
    %196 = arith.maximumf %194, %195 : vector<8x63xf32>
    %197 = vector.extract_strided_slice %8 {offsets = [0, 1512], sizes = [8, 63], strides = [1, 1]} : vector<8x4096xf32> to vector<8x63xf32>
    %198 = arith.maximumf %196, %197 : vector<8x63xf32>
    %199 = vector.extract_strided_slice %8 {offsets = [0, 1575], sizes = [8, 63], strides = [1, 1]} : vector<8x4096xf32> to vector<8x63xf32>
    %200 = arith.maximumf %198, %199 : vector<8x63xf32>
    %201 = vector.extract_strided_slice %8 {offsets = [0, 1638], sizes = [8, 63], strides = [1, 1]} : vector<8x4096xf32> to vector<8x63xf32>
    %202 = arith.maximumf %200, %201 : vector<8x63xf32>
    %203 = vector.extract_strided_slice %8 {offsets = [0, 1701], sizes = [8, 63], strides = [1, 1]} : vector<8x4096xf32> to vector<8x63xf32>
    %204 = arith.maximumf %202, %203 : vector<8x63xf32>
    %205 = vector.extract_strided_slice %204 {offsets = [0, 0], sizes = [8, 4], strides = [1, 1]} : vector<8x63xf32> to vector<8x4xf32>
    %cst_80 = arith.constant dense<0xFF800000> : vector<8xf32>
    %206 = vector.multi_reduction <maximumf>, %205, %cst_80 [1] : vector<8x4xf32> to vector<8xf32>
    %207 = vector.shape_cast %206 : vector<8xf32> to vector<8x1xf32>
    %c0_81 = arith.constant 0 : index
    %c0_82 = arith.constant 0 : index
    %c24 = arith.constant 24 : index
    %208 = vector.load %arg4[%c0_81, %c0_82, %c24] : memref<1x8x64xf32, #tpu.memory_space<vmem>>, vector<1x8x1xf32>
    %209 = vector.shape_cast %208 : vector<1x8x1xf32> to vector<8x1xf32>
    %210 = vector.shape_cast %207 : vector<8x1xf32> to vector<1x8x1xf32>
    tpu.vector_store %arg4[%c0_81, %c0_82, %c24], %210 {strides = array<i32>} : memref<1x8x64xf32, #tpu.memory_space<vmem>>, vector<1x8x1xf32>,
    %211 = vector.extract_strided_slice %204 {offsets = [0, 4], sizes = [8, 8], strides = [1, 1]} : vector<8x63xf32> to vector<8x8xf32>
    %cst_83 = arith.constant dense<0xFF800000> : vector<8xf32>
    %212 = vector.multi_reduction <maximumf>, %211, %cst_83 [1] : vector<8x8xf32> to vector<8xf32>
    %213 = vector.shape_cast %212 : vector<8xf32> to vector<8x1xf32>
    %c0_84 = arith.constant 0 : index
    %c0_85 = arith.constant 0 : index
    %c25 = arith.constant 25 : index
    %214 = vector.load %arg4[%c0_84, %c0_85, %c25] : memref<1x8x64xf32, #tpu.memory_space<vmem>>, vector<1x8x1xf32>
    %215 = vector.shape_cast %214 : vector<1x8x1xf32> to vector<8x1xf32>
    %216 = vector.shape_cast %213 : vector<8x1xf32> to vector<1x8x1xf32>
    tpu.vector_store %arg4[%c0_84, %c0_85, %c25], %216 {strides = array<i32>} : memref<1x8x64xf32, #tpu.memory_space<vmem>>, vector<1x8x1xf32>,
    %217 = vector.extract_strided_slice %204 {offsets = [0, 12], sizes = [8, 8], strides = [1, 1]} : vector<8x63xf32> to vector<8x8xf32>
    %cst_86 = arith.constant dense<0xFF800000> : vector<8xf32>
    %218 = vector.multi_reduction <maximumf>, %217, %cst_86 [1] : vector<8x8xf32> to vector<8xf32>
    %219 = vector.shape_cast %218 : vector<8xf32> to vector<8x1xf32>
    %c0_87 = arith.constant 0 : index
    %c0_88 = arith.constant 0 : index
    %c26 = arith.constant 26 : index
    %220 = vector.load %arg4[%c0_87, %c0_88, %c26] : memref<1x8x64xf32, #tpu.memory_space<vmem>>, vector<1x8x1xf32>
    %221 = vector.shape_cast %220 : vector<1x8x1xf32> to vector<8x1xf32>
    %222 = vector.shape_cast %219 : vector<8x1xf32> to vector<1x8x1xf32>
    tpu.vector_store %arg4[%c0_87, %c0_88, %c26], %222 {strides = array<i32>} : memref<1x8x64xf32, #tpu.memory_space<vmem>>, vector<1x8x1xf32>,
    %223 = vector.extract_strided_slice %204 {offsets = [0, 20], sizes = [8, 8], strides = [1, 1]} : vector<8x63xf32> to vector<8x8xf32>
    %cst_89 = arith.constant dense<0xFF800000> : vector<8xf32>
    %224 = vector.multi_reduction <maximumf>, %223, %cst_89 [1] : vector<8x8xf32> to vector<8xf32>
    %225 = vector.shape_cast %224 : vector<8xf32> to vector<8x1xf32>
    %c0_90 = arith.constant 0 : index
    %c0_91 = arith.constant 0 : index
    %c27 = arith.constant 27 : index
    %226 = vector.load %arg4[%c0_90, %c0_91, %c27] : memref<1x8x64xf32, #tpu.memory_space<vmem>>, vector<1x8x1xf32>
    %227 = vector.shape_cast %226 : vector<1x8x1xf32> to vector<8x1xf32>
    %228 = vector.shape_cast %225 : vector<8x1xf32> to vector<1x8x1xf32>
    tpu.vector_store %arg4[%c0_90, %c0_91, %c27], %228 {strides = array<i32>} : memref<1x8x64xf32, #tpu.memory_space<vmem>>, vector<1x8x1xf32>,
    %229 = vector.extract_strided_slice %204 {offsets = [0, 28], sizes = [8, 8], strides = [1, 1]} : vector<8x63xf32> to vector<8x8xf32>
    %cst_92 = arith.constant dense<0xFF800000> : vector<8xf32>
    %230 = vector.multi_reduction <maximumf>, %229, %cst_92 [1] : vector<8x8xf32> to vector<8xf32>
    %231 = vector.shape_cast %230 : vector<8xf32> to vector<8x1xf32>
    %c0_93 = arith.constant 0 : index
    %c0_94 = arith.constant 0 : index
    %c28 = arith.constant 28 : index
    %232 = vector.load %arg4[%c0_93, %c0_94, %c28] : memref<1x8x64xf32, #tpu.memory_space<vmem>>, vector<1x8x1xf32>
    %233 = vector.shape_cast %232 : vector<1x8x1xf32> to vector<8x1xf32>
    %234 = vector.shape_cast %231 : vector<8x1xf32> to vector<1x8x1xf32>
    tpu.vector_store %arg4[%c0_93, %c0_94, %c28], %234 {strides = array<i32>} : memref<1x8x64xf32, #tpu.memory_space<vmem>>, vector<1x8x1xf32>,
    %235 = vector.extract_strided_slice %204 {offsets = [0, 36], sizes = [8, 8], strides = [1, 1]} : vector<8x63xf32> to vector<8x8xf32>
    %cst_95 = arith.constant dense<0xFF800000> : vector<8xf32>
    %236 = vector.multi_reduction <maximumf>, %235, %cst_95 [1] : vector<8x8xf32> to vector<8xf32>
    %237 = vector.shape_cast %236 : vector<8xf32> to vector<8x1xf32>
    %c0_96 = arith.constant 0 : index
    %c0_97 = arith.constant 0 : index
    %c29 = arith.constant 29 : index
    %238 = vector.load %arg4[%c0_96, %c0_97, %c29] : memref<1x8x64xf32, #tpu.memory_space<vmem>>, vector<1x8x1xf32>
    %239 = vector.shape_cast %238 : vector<1x8x1xf32> to vector<8x1xf32>
    %240 = vector.shape_cast %237 : vector<8x1xf32> to vector<1x8x1xf32>
    tpu.vector_store %arg4[%c0_96, %c0_97, %c29], %240 {strides = array<i32>} : memref<1x8x64xf32, #tpu.memory_space<vmem>>, vector<1x8x1xf32>,
    %241 = vector.extract_strided_slice %204 {offsets = [0, 44], sizes = [8, 8], strides = [1, 1]} : vector<8x63xf32> to vector<8x8xf32>
    %cst_98 = arith.constant dense<0xFF800000> : vector<8xf32>
    %242 = vector.multi_reduction <maximumf>, %241, %cst_98 [1] : vector<8x8xf32> to vector<8xf32>
    %243 = vector.shape_cast %242 : vector<8xf32> to vector<8x1xf32>
    %c0_99 = arith.constant 0 : index
    %c0_100 = arith.constant 0 : index
    %c30 = arith.constant 30 : index
    %244 = vector.load %arg4[%c0_99, %c0_100, %c30] : memref<1x8x64xf32, #tpu.memory_space<vmem>>, vector<1x8x1xf32>
    %245 = vector.shape_cast %244 : vector<1x8x1xf32> to vector<8x1xf32>
    %246 = vector.shape_cast %243 : vector<8x1xf32> to vector<1x8x1xf32>
    tpu.vector_store %arg4[%c0_99, %c0_100, %c30], %246 {strides = array<i32>} : memref<1x8x64xf32, #tpu.memory_space<vmem>>, vector<1x8x1xf32>,
    %247 = vector.extract_strided_slice %204 {offsets = [0, 52], sizes = [8, 8], strides = [1, 1]} : vector<8x63xf32> to vector<8x8xf32>
    %cst_101 = arith.constant dense<0xFF800000> : vector<8xf32>
    %248 = vector.multi_reduction <maximumf>, %247, %cst_101 [1] : vector<8x8xf32> to vector<8xf32>
    %249 = vector.shape_cast %248 : vector<8xf32> to vector<8x1xf32>
    %c0_102 = arith.constant 0 : index
    %c0_103 = arith.constant 0 : index
    %c31 = arith.constant 31 : index
    %250 = vector.load %arg4[%c0_102, %c0_103, %c31] : memref<1x8x64xf32, #tpu.memory_space<vmem>>, vector<1x8x1xf32>
    %251 = vector.shape_cast %250 : vector<1x8x1xf32> to vector<8x1xf32>
    %252 = vector.shape_cast %249 : vector<8x1xf32> to vector<1x8x1xf32>
    tpu.vector_store %arg4[%c0_102, %c0_103, %c31], %252 {strides = array<i32>} : memref<1x8x64xf32, #tpu.memory_space<vmem>>, vector<1x8x1xf32>,
    %253 = vector.extract_strided_slice %8 {offsets = [0, 1764], sizes = [8, 63], strides = [1, 1]} : vector<8x4096xf32> to vector<8x63xf32>
    %254 = vector.extract_strided_slice %8 {offsets = [0, 1827], sizes = [8, 63], strides = [1, 1]} : vector<8x4096xf32> to vector<8x63xf32>
    %255 = arith.maximumf %253, %254 : vector<8x63xf32>
    %256 = vector.extract_strided_slice %8 {offsets = [0, 1890], sizes = [8, 63], strides = [1, 1]} : vector<8x4096xf32> to vector<8x63xf32>
    %257 = arith.maximumf %255, %256 : vector<8x63xf32>
    %258 = vector.extract_strided_slice %8 {offsets = [0, 1953], sizes = [8, 63], strides = [1, 1]} : vector<8x4096xf32> to vector<8x63xf32>
    %259 = arith.maximumf %257, %258 : vector<8x63xf32>
    %260 = vector.extract_strided_slice %8 {offsets = [0, 2016], sizes = [8, 63], strides = [1, 1]} : vector<8x4096xf32> to vector<8x63xf32>
    %261 = arith.maximumf %259, %260 : vector<8x63xf32>
    %262 = vector.extract_strided_slice %8 {offsets = [0, 2079], sizes = [8, 63], strides = [1, 1]} : vector<8x4096xf32> to vector<8x63xf32>
    %263 = arith.maximumf %261, %262 : vector<8x63xf32>
    %264 = vector.extract_strided_slice %8 {offsets = [0, 2142], sizes = [8, 63], strides = [1, 1]} : vector<8x4096xf32> to vector<8x63xf32>
    %265 = arith.maximumf %263, %264 : vector<8x63xf32>
    %266 = vector.extract_strided_slice %8 {offsets = [0, 2205], sizes = [8, 63], strides = [1, 1]} : vector<8x4096xf32> to vector<8x63xf32>
    %267 = arith.maximumf %265, %266 : vector<8x63xf32>
    %268 = vector.extract_strided_slice %267 {offsets = [0, 0], sizes = [8, 4], strides = [1, 1]} : vector<8x63xf32> to vector<8x4xf32>
    %cst_104 = arith.constant dense<0xFF800000> : vector<8xf32>
    %269 = vector.multi_reduction <maximumf>, %268, %cst_104 [1] : vector<8x4xf32> to vector<8xf32>
    %270 = vector.shape_cast %269 : vector<8xf32> to vector<8x1xf32>
    %c0_105 = arith.constant 0 : index
    %c0_106 = arith.constant 0 : index
    %c32 = arith.constant 32 : index
    %271 = vector.load %arg4[%c0_105, %c0_106, %c32] : memref<1x8x64xf32, #tpu.memory_space<vmem>>, vector<1x8x1xf32>
    %272 = vector.shape_cast %271 : vector<1x8x1xf32> to vector<8x1xf32>
    %273 = vector.shape_cast %270 : vector<8x1xf32> to vector<1x8x1xf32>
    tpu.vector_store %arg4[%c0_105, %c0_106, %c32], %273 {strides = array<i32>} : memref<1x8x64xf32, #tpu.memory_space<vmem>>, vector<1x8x1xf32>,
    %274 = vector.extract_strided_slice %267 {offsets = [0, 4], sizes = [8, 8], strides = [1, 1]} : vector<8x63xf32> to vector<8x8xf32>
    %cst_107 = arith.constant dense<0xFF800000> : vector<8xf32>
    %275 = vector.multi_reduction <maximumf>, %274, %cst_107 [1] : vector<8x8xf32> to vector<8xf32>
    %276 = vector.shape_cast %275 : vector<8xf32> to vector<8x1xf32>
    %c0_108 = arith.constant 0 : index
    %c0_109 = arith.constant 0 : index
    %c33 = arith.constant 33 : index
    %277 = vector.load %arg4[%c0_108, %c0_109, %c33] : memref<1x8x64xf32, #tpu.memory_space<vmem>>, vector<1x8x1xf32>
    %278 = vector.shape_cast %277 : vector<1x8x1xf32> to vector<8x1xf32>
    %279 = vector.shape_cast %276 : vector<8x1xf32> to vector<1x8x1xf32>
    tpu.vector_store %arg4[%c0_108, %c0_109, %c33], %279 {strides = array<i32>} : memref<1x8x64xf32, #tpu.memory_space<vmem>>, vector<1x8x1xf32>,
    %280 = vector.extract_strided_slice %267 {offsets = [0, 12], sizes = [8, 8], strides = [1, 1]} : vector<8x63xf32> to vector<8x8xf32>
    %cst_110 = arith.constant dense<0xFF800000> : vector<8xf32>
    %281 = vector.multi_reduction <maximumf>, %280, %cst_110 [1] : vector<8x8xf32> to vector<8xf32>
    %282 = vector.shape_cast %281 : vector<8xf32> to vector<8x1xf32>
    %c0_111 = arith.constant 0 : index
    %c0_112 = arith.constant 0 : index
    %c34 = arith.constant 34 : index
    %283 = vector.load %arg4[%c0_111, %c0_112, %c34] : memref<1x8x64xf32, #tpu.memory_space<vmem>>, vector<1x8x1xf32>
    %284 = vector.shape_cast %283 : vector<1x8x1xf32> to vector<8x1xf32>
    %285 = vector.shape_cast %282 : vector<8x1xf32> to vector<1x8x1xf32>
    tpu.vector_store %arg4[%c0_111, %c0_112, %c34], %285 {strides = array<i32>} : memref<1x8x64xf32, #tpu.memory_space<vmem>>, vector<1x8x1xf32>,
    %286 = vector.extract_strided_slice %267 {offsets = [0, 20], sizes = [8, 8], strides = [1, 1]} : vector<8x63xf32> to vector<8x8xf32>
    %cst_113 = arith.constant dense<0xFF800000> : vector<8xf32>
    %287 = vector.multi_reduction <maximumf>, %286, %cst_113 [1] : vector<8x8xf32> to vector<8xf32>
    %288 = vector.shape_cast %287 : vector<8xf32> to vector<8x1xf32>
    %c0_114 = arith.constant 0 : index
    %c0_115 = arith.constant 0 : index
    %c35 = arith.constant 35 : index
    %289 = vector.load %arg4[%c0_114, %c0_115, %c35] : memref<1x8x64xf32, #tpu.memory_space<vmem>>, vector<1x8x1xf32>
    %290 = vector.shape_cast %289 : vector<1x8x1xf32> to vector<8x1xf32>
    %291 = vector.shape_cast %288 : vector<8x1xf32> to vector<1x8x1xf32>
    tpu.vector_store %arg4[%c0_114, %c0_115, %c35], %291 {strides = array<i32>} : memref<1x8x64xf32, #tpu.memory_space<vmem>>, vector<1x8x1xf32>,
    %292 = vector.extract_strided_slice %267 {offsets = [0, 28], sizes = [8, 8], strides = [1, 1]} : vector<8x63xf32> to vector<8x8xf32>
    %cst_116 = arith.constant dense<0xFF800000> : vector<8xf32>
    %293 = vector.multi_reduction <maximumf>, %292, %cst_116 [1] : vector<8x8xf32> to vector<8xf32>
    %294 = vector.shape_cast %293 : vector<8xf32> to vector<8x1xf32>
    %c0_117 = arith.constant 0 : index
    %c0_118 = arith.constant 0 : index
    %c36 = arith.constant 36 : index
    %295 = vector.load %arg4[%c0_117, %c0_118, %c36] : memref<1x8x64xf32, #tpu.memory_space<vmem>>, vector<1x8x1xf32>
    %296 = vector.shape_cast %295 : vector<1x8x1xf32> to vector<8x1xf32>
    %297 = vector.shape_cast %294 : vector<8x1xf32> to vector<1x8x1xf32>
    tpu.vector_store %arg4[%c0_117, %c0_118, %c36], %297 {strides = array<i32>} : memref<1x8x64xf32, #tpu.memory_space<vmem>>, vector<1x8x1xf32>,
    %298 = vector.extract_strided_slice %267 {offsets = [0, 36], sizes = [8, 8], strides = [1, 1]} : vector<8x63xf32> to vector<8x8xf32>
    %cst_119 = arith.constant dense<0xFF800000> : vector<8xf32>
    %299 = vector.multi_reduction <maximumf>, %298, %cst_119 [1] : vector<8x8xf32> to vector<8xf32>
    %300 = vector.shape_cast %299 : vector<8xf32> to vector<8x1xf32>
    %c0_120 = arith.constant 0 : index
    %c0_121 = arith.constant 0 : index
    %c37 = arith.constant 37 : index
    %301 = vector.load %arg4[%c0_120, %c0_121, %c37] : memref<1x8x64xf32, #tpu.memory_space<vmem>>, vector<1x8x1xf32>
    %302 = vector.shape_cast %301 : vector<1x8x1xf32> to vector<8x1xf32>
    %303 = vector.shape_cast %300 : vector<8x1xf32> to vector<1x8x1xf32>
    tpu.vector_store %arg4[%c0_120, %c0_121, %c37], %303 {strides = array<i32>} : memref<1x8x64xf32, #tpu.memory_space<vmem>>, vector<1x8x1xf32>,
    %304 = vector.extract_strided_slice %267 {offsets = [0, 44], sizes = [8, 8], strides = [1, 1]} : vector<8x63xf32> to vector<8x8xf32>
    %cst_122 = arith.constant dense<0xFF800000> : vector<8xf32>
    %305 = vector.multi_reduction <maximumf>, %304, %cst_122 [1] : vector<8x8xf32> to vector<8xf32>
    %306 = vector.shape_cast %305 : vector<8xf32> to vector<8x1xf32>
    %c0_123 = arith.constant 0 : index
    %c0_124 = arith.constant 0 : index
    %c38 = arith.constant 38 : index
    %307 = vector.load %arg4[%c0_123, %c0_124, %c38] : memref<1x8x64xf32, #tpu.memory_space<vmem>>, vector<1x8x1xf32>
    %308 = vector.shape_cast %307 : vector<1x8x1xf32> to vector<8x1xf32>
    %309 = vector.shape_cast %306 : vector<8x1xf32> to vector<1x8x1xf32>
    tpu.vector_store %arg4[%c0_123, %c0_124, %c38], %309 {strides = array<i32>} : memref<1x8x64xf32, #tpu.memory_space<vmem>>, vector<1x8x1xf32>,
    %310 = vector.extract_strided_slice %267 {offsets = [0, 52], sizes = [8, 8], strides = [1, 1]} : vector<8x63xf32> to vector<8x8xf32>
    %cst_125 = arith.constant dense<0xFF800000> : vector<8xf32>
    %311 = vector.multi_reduction <maximumf>, %310, %cst_125 [1] : vector<8x8xf32> to vector<8xf32>
    %312 = vector.shape_cast %311 : vector<8xf32> to vector<8x1xf32>
    %c0_126 = arith.constant 0 : index
    %c0_127 = arith.constant 0 : index
    %c39 = arith.constant 39 : index
    %313 = vector.load %arg4[%c0_126, %c0_127, %c39] : memref<1x8x64xf32, #tpu.memory_space<vmem>>, vector<1x8x1xf32>
    %314 = vector.shape_cast %313 : vector<1x8x1xf32> to vector<8x1xf32>
    %315 = vector.shape_cast %312 : vector<8x1xf32> to vector<1x8x1xf32>
    tpu.vector_store %arg4[%c0_126, %c0_127, %c39], %315 {strides = array<i32>} : memref<1x8x64xf32, #tpu.memory_space<vmem>>, vector<1x8x1xf32>,
    %316 = vector.extract_strided_slice %8 {offsets = [0, 2268], sizes = [8, 63], strides = [1, 1]} : vector<8x4096xf32> to vector<8x63xf32>
    %317 = vector.extract_strided_slice %8 {offsets = [0, 2331], sizes = [8, 63], strides = [1, 1]} : vector<8x4096xf32> to vector<8x63xf32>
    %318 = arith.maximumf %316, %317 : vector<8x63xf32>
    %319 = vector.extract_strided_slice %8 {offsets = [0, 2394], sizes = [8, 63], strides = [1, 1]} : vector<8x4096xf32> to vector<8x63xf32>
    %320 = arith.maximumf %318, %319 : vector<8x63xf32>
    %321 = vector.extract_strided_slice %8 {offsets = [0, 2457], sizes = [8, 63], strides = [1, 1]} : vector<8x4096xf32> to vector<8x63xf32>
    %322 = arith.maximumf %320, %321 : vector<8x63xf32>
    %323 = vector.extract_strided_slice %8 {offsets = [0, 2520], sizes = [8, 63], strides = [1, 1]} : vector<8x4096xf32> to vector<8x63xf32>
    %324 = arith.maximumf %322, %323 : vector<8x63xf32>
    %325 = vector.extract_strided_slice %8 {offsets = [0, 2583], sizes = [8, 63], strides = [1, 1]} : vector<8x4096xf32> to vector<8x63xf32>
    %326 = arith.maximumf %324, %325 : vector<8x63xf32>
    %327 = vector.extract_strided_slice %8 {offsets = [0, 2646], sizes = [8, 63], strides = [1, 1]} : vector<8x4096xf32> to vector<8x63xf32>
    %328 = arith.maximumf %326, %327 : vector<8x63xf32>
    %329 = vector.extract_strided_slice %8 {offsets = [0, 2709], sizes = [8, 63], strides = [1, 1]} : vector<8x4096xf32> to vector<8x63xf32>
    %330 = arith.maximumf %328, %329 : vector<8x63xf32>
    %331 = vector.extract_strided_slice %330 {offsets = [0, 0], sizes = [8, 4], strides = [1, 1]} : vector<8x63xf32> to vector<8x4xf32>
    %cst_128 = arith.constant dense<0xFF800000> : vector<8xf32>
    %332 = vector.multi_reduction <maximumf>, %331, %cst_128 [1] : vector<8x4xf32> to vector<8xf32>
    %333 = vector.shape_cast %332 : vector<8xf32> to vector<8x1xf32>
    %c0_129 = arith.constant 0 : index
    %c0_130 = arith.constant 0 : index
    %c40 = arith.constant 40 : index
    %334 = vector.load %arg4[%c0_129, %c0_130, %c40] : memref<1x8x64xf32, #tpu.memory_space<vmem>>, vector<1x8x1xf32>
    %335 = vector.shape_cast %334 : vector<1x8x1xf32> to vector<8x1xf32>
    %336 = vector.shape_cast %333 : vector<8x1xf32> to vector<1x8x1xf32>
    tpu.vector_store %arg4[%c0_129, %c0_130, %c40], %336 {strides = array<i32>} : memref<1x8x64xf32, #tpu.memory_space<vmem>>, vector<1x8x1xf32>,
    %337 = vector.extract_strided_slice %330 {offsets = [0, 4], sizes = [8, 8], strides = [1, 1]} : vector<8x63xf32> to vector<8x8xf32>
    %cst_131 = arith.constant dense<0xFF800000> : vector<8xf32>
    %338 = vector.multi_reduction <maximumf>, %337, %cst_131 [1] : vector<8x8xf32> to vector<8xf32>
    %339 = vector.shape_cast %338 : vector<8xf32> to vector<8x1xf32>
    %c0_132 = arith.constant 0 : index
    %c0_133 = arith.constant 0 : index
    %c41 = arith.constant 41 : index
    %340 = vector.load %arg4[%c0_132, %c0_133, %c41] : memref<1x8x64xf32, #tpu.memory_space<vmem>>, vector<1x8x1xf32>
    %341 = vector.shape_cast %340 : vector<1x8x1xf32> to vector<8x1xf32>
    %342 = vector.shape_cast %339 : vector<8x1xf32> to vector<1x8x1xf32>
    tpu.vector_store %arg4[%c0_132, %c0_133, %c41], %342 {strides = array<i32>} : memref<1x8x64xf32, #tpu.memory_space<vmem>>, vector<1x8x1xf32>,
    %343 = vector.extract_strided_slice %330 {offsets = [0, 12], sizes = [8, 8], strides = [1, 1]} : vector<8x63xf32> to vector<8x8xf32>
    %cst_134 = arith.constant dense<0xFF800000> : vector<8xf32>
    %344 = vector.multi_reduction <maximumf>, %343, %cst_134 [1] : vector<8x8xf32> to vector<8xf32>
    %345 = vector.shape_cast %344 : vector<8xf32> to vector<8x1xf32>
    %c0_135 = arith.constant 0 : index
    %c0_136 = arith.constant 0 : index
    %c42 = arith.constant 42 : index
    %346 = vector.load %arg4[%c0_135, %c0_136, %c42] : memref<1x8x64xf32, #tpu.memory_space<vmem>>, vector<1x8x1xf32>
    %347 = vector.shape_cast %346 : vector<1x8x1xf32> to vector<8x1xf32>
    %348 = vector.shape_cast %345 : vector<8x1xf32> to vector<1x8x1xf32>
    tpu.vector_store %arg4[%c0_135, %c0_136, %c42], %348 {strides = array<i32>} : memref<1x8x64xf32, #tpu.memory_space<vmem>>, vector<1x8x1xf32>,
    %349 = vector.extract_strided_slice %330 {offsets = [0, 20], sizes = [8, 8], strides = [1, 1]} : vector<8x63xf32> to vector<8x8xf32>
    %cst_137 = arith.constant dense<0xFF800000> : vector<8xf32>
    %350 = vector.multi_reduction <maximumf>, %349, %cst_137 [1] : vector<8x8xf32> to vector<8xf32>
    %351 = vector.shape_cast %350 : vector<8xf32> to vector<8x1xf32>
    %c0_138 = arith.constant 0 : index
    %c0_139 = arith.constant 0 : index
    %c43 = arith.constant 43 : index
    %352 = vector.load %arg4[%c0_138, %c0_139, %c43] : memref<1x8x64xf32, #tpu.memory_space<vmem>>, vector<1x8x1xf32>
    %353 = vector.shape_cast %352 : vector<1x8x1xf32> to vector<8x1xf32>
    %354 = vector.shape_cast %351 : vector<8x1xf32> to vector<1x8x1xf32>
    tpu.vector_store %arg4[%c0_138, %c0_139, %c43], %354 {strides = array<i32>} : memref<1x8x64xf32, #tpu.memory_space<vmem>>, vector<1x8x1xf32>,
    %355 = vector.extract_strided_slice %330 {offsets = [0, 28], sizes = [8, 8], strides = [1, 1]} : vector<8x63xf32> to vector<8x8xf32>
    %cst_140 = arith.constant dense<0xFF800000> : vector<8xf32>
    %356 = vector.multi_reduction <maximumf>, %355, %cst_140 [1] : vector<8x8xf32> to vector<8xf32>
    %357 = vector.shape_cast %356 : vector<8xf32> to vector<8x1xf32>
    %c0_141 = arith.constant 0 : index
    %c0_142 = arith.constant 0 : index
    %c44 = arith.constant 44 : index
    %358 = vector.load %arg4[%c0_141, %c0_142, %c44] : memref<1x8x64xf32, #tpu.memory_space<vmem>>, vector<1x8x1xf32>
    %359 = vector.shape_cast %358 : vector<1x8x1xf32> to vector<8x1xf32>
    %360 = vector.shape_cast %357 : vector<8x1xf32> to vector<1x8x1xf32>
    tpu.vector_store %arg4[%c0_141, %c0_142, %c44], %360 {strides = array<i32>} : memref<1x8x64xf32, #tpu.memory_space<vmem>>, vector<1x8x1xf32>,
    %361 = vector.extract_strided_slice %330 {offsets = [0, 36], sizes = [8, 8], strides = [1, 1]} : vector<8x63xf32> to vector<8x8xf32>
    %cst_143 = arith.constant dense<0xFF800000> : vector<8xf32>
    %362 = vector.multi_reduction <maximumf>, %361, %cst_143 [1] : vector<8x8xf32> to vector<8xf32>
    %363 = vector.shape_cast %362 : vector<8xf32> to vector<8x1xf32>
    %c0_144 = arith.constant 0 : index
    %c0_145 = arith.constant 0 : index
    %c45 = arith.constant 45 : index
    %364 = vector.load %arg4[%c0_144, %c0_145, %c45] : memref<1x8x64xf32, #tpu.memory_space<vmem>>, vector<1x8x1xf32>
    %365 = vector.shape_cast %364 : vector<1x8x1xf32> to vector<8x1xf32>
    %366 = vector.shape_cast %363 : vector<8x1xf32> to vector<1x8x1xf32>
    tpu.vector_store %arg4[%c0_144, %c0_145, %c45], %366 {strides = array<i32>} : memref<1x8x64xf32, #tpu.memory_space<vmem>>, vector<1x8x1xf32>,
    %367 = vector.extract_strided_slice %330 {offsets = [0, 44], sizes = [8, 8], strides = [1, 1]} : vector<8x63xf32> to vector<8x8xf32>
    %cst_146 = arith.constant dense<0xFF800000> : vector<8xf32>
    %368 = vector.multi_reduction <maximumf>, %367, %cst_146 [1] : vector<8x8xf32> to vector<8xf32>
    %369 = vector.shape_cast %368 : vector<8xf32> to vector<8x1xf32>
    %c0_147 = arith.constant 0 : index
    %c0_148 = arith.constant 0 : index
    %c46 = arith.constant 46 : index
    %370 = vector.load %arg4[%c0_147, %c0_148, %c46] : memref<1x8x64xf32, #tpu.memory_space<vmem>>, vector<1x8x1xf32>
    %371 = vector.shape_cast %370 : vector<1x8x1xf32> to vector<8x1xf32>
    %372 = vector.shape_cast %369 : vector<8x1xf32> to vector<1x8x1xf32>
    tpu.vector_store %arg4[%c0_147, %c0_148, %c46], %372 {strides = array<i32>} : memref<1x8x64xf32, #tpu.memory_space<vmem>>, vector<1x8x1xf32>,
    %373 = vector.extract_strided_slice %330 {offsets = [0, 52], sizes = [8, 8], strides = [1, 1]} : vector<8x63xf32> to vector<8x8xf32>
    %cst_149 = arith.constant dense<0xFF800000> : vector<8xf32>
    %374 = vector.multi_reduction <maximumf>, %373, %cst_149 [1] : vector<8x8xf32> to vector<8xf32>
    %375 = vector.shape_cast %374 : vector<8xf32> to vector<8x1xf32>
    %c0_150 = arith.constant 0 : index
    %c0_151 = arith.constant 0 : index
    %c47 = arith.constant 47 : index
    %376 = vector.load %arg4[%c0_150, %c0_151, %c47] : memref<1x8x64xf32, #tpu.memory_space<vmem>>, vector<1x8x1xf32>
    %377 = vector.shape_cast %376 : vector<1x8x1xf32> to vector<8x1xf32>
    %378 = vector.shape_cast %375 : vector<8x1xf32> to vector<1x8x1xf32>
    tpu.vector_store %arg4[%c0_150, %c0_151, %c47], %378 {strides = array<i32>} : memref<1x8x64xf32, #tpu.memory_space<vmem>>, vector<1x8x1xf32>,
    %379 = vector.extract_strided_slice %8 {offsets = [0, 2772], sizes = [8, 63], strides = [1, 1]} : vector<8x4096xf32> to vector<8x63xf32>
    %380 = vector.extract_strided_slice %8 {offsets = [0, 2835], sizes = [8, 63], strides = [1, 1]} : vector<8x4096xf32> to vector<8x63xf32>
    %381 = arith.maximumf %379, %380 : vector<8x63xf32>
    %382 = vector.extract_strided_slice %8 {offsets = [0, 2898], sizes = [8, 63], strides = [1, 1]} : vector<8x4096xf32> to vector<8x63xf32>
    %383 = arith.maximumf %381, %382 : vector<8x63xf32>
    %384 = vector.extract_strided_slice %8 {offsets = [0, 2961], sizes = [8, 63], strides = [1, 1]} : vector<8x4096xf32> to vector<8x63xf32>
    %385 = arith.maximumf %383, %384 : vector<8x63xf32>
    %386 = vector.extract_strided_slice %8 {offsets = [0, 3024], sizes = [8, 63], strides = [1, 1]} : vector<8x4096xf32> to vector<8x63xf32>
    %387 = arith.maximumf %385, %386 : vector<8x63xf32>
    %388 = vector.extract_strided_slice %8 {offsets = [0, 3087], sizes = [8, 63], strides = [1, 1]} : vector<8x4096xf32> to vector<8x63xf32>
    %389 = arith.maximumf %387, %388 : vector<8x63xf32>
    %390 = vector.extract_strided_slice %8 {offsets = [0, 3150], sizes = [8, 63], strides = [1, 1]} : vector<8x4096xf32> to vector<8x63xf32>
    %391 = arith.maximumf %389, %390 : vector<8x63xf32>
    %392 = vector.extract_strided_slice %8 {offsets = [0, 3213], sizes = [8, 63], strides = [1, 1]} : vector<8x4096xf32> to vector<8x63xf32>
    %393 = arith.maximumf %391, %392 : vector<8x63xf32>
    %394 = vector.extract_strided_slice %393 {offsets = [0, 0], sizes = [8, 4], strides = [1, 1]} : vector<8x63xf32> to vector<8x4xf32>
    %cst_152 = arith.constant dense<0xFF800000> : vector<8xf32>
    %395 = vector.multi_reduction <maximumf>, %394, %cst_152 [1] : vector<8x4xf32> to vector<8xf32>
    %396 = vector.shape_cast %395 : vector<8xf32> to vector<8x1xf32>
    %c0_153 = arith.constant 0 : index
    %c0_154 = arith.constant 0 : index
    %c48 = arith.constant 48 : index
    %397 = vector.load %arg4[%c0_153, %c0_154, %c48] : memref<1x8x64xf32, #tpu.memory_space<vmem>>, vector<1x8x1xf32>
    %398 = vector.shape_cast %397 : vector<1x8x1xf32> to vector<8x1xf32>
    %399 = vector.shape_cast %396 : vector<8x1xf32> to vector<1x8x1xf32>
    tpu.vector_store %arg4[%c0_153, %c0_154, %c48], %399 {strides = array<i32>} : memref<1x8x64xf32, #tpu.memory_space<vmem>>, vector<1x8x1xf32>,
    %400 = vector.extract_strided_slice %393 {offsets = [0, 4], sizes = [8, 8], strides = [1, 1]} : vector<8x63xf32> to vector<8x8xf32>
    %cst_155 = arith.constant dense<0xFF800000> : vector<8xf32>
    %401 = vector.multi_reduction <maximumf>, %400, %cst_155 [1] : vector<8x8xf32> to vector<8xf32>
    %402 = vector.shape_cast %401 : vector<8xf32> to vector<8x1xf32>
    %c0_156 = arith.constant 0 : index
    %c0_157 = arith.constant 0 : index
    %c49 = arith.constant 49 : index
    %403 = vector.load %arg4[%c0_156, %c0_157, %c49] : memref<1x8x64xf32, #tpu.memory_space<vmem>>, vector<1x8x1xf32>
    %404 = vector.shape_cast %403 : vector<1x8x1xf32> to vector<8x1xf32>
    %405 = vector.shape_cast %402 : vector<8x1xf32> to vector<1x8x1xf32>
    tpu.vector_store %arg4[%c0_156, %c0_157, %c49], %405 {strides = array<i32>} : memref<1x8x64xf32, #tpu.memory_space<vmem>>, vector<1x8x1xf32>,
    %406 = vector.extract_strided_slice %393 {offsets = [0, 12], sizes = [8, 8], strides = [1, 1]} : vector<8x63xf32> to vector<8x8xf32>
    %cst_158 = arith.constant dense<0xFF800000> : vector<8xf32>
    %407 = vector.multi_reduction <maximumf>, %406, %cst_158 [1] : vector<8x8xf32> to vector<8xf32>
    %408 = vector.shape_cast %407 : vector<8xf32> to vector<8x1xf32>
    %c0_159 = arith.constant 0 : index
    %c0_160 = arith.constant 0 : index
    %c50 = arith.constant 50 : index
    %409 = vector.load %arg4[%c0_159, %c0_160, %c50] : memref<1x8x64xf32, #tpu.memory_space<vmem>>, vector<1x8x1xf32>
    %410 = vector.shape_cast %409 : vector<1x8x1xf32> to vector<8x1xf32>
    %411 = vector.shape_cast %408 : vector<8x1xf32> to vector<1x8x1xf32>
    tpu.vector_store %arg4[%c0_159, %c0_160, %c50], %411 {strides = array<i32>} : memref<1x8x64xf32, #tpu.memory_space<vmem>>, vector<1x8x1xf32>,
    %412 = vector.extract_strided_slice %393 {offsets = [0, 20], sizes = [8, 8], strides = [1, 1]} : vector<8x63xf32> to vector<8x8xf32>
    %cst_161 = arith.constant dense<0xFF800000> : vector<8xf32>
    %413 = vector.multi_reduction <maximumf>, %412, %cst_161 [1] : vector<8x8xf32> to vector<8xf32>
    %414 = vector.shape_cast %413 : vector<8xf32> to vector<8x1xf32>
    %c0_162 = arith.constant 0 : index
    %c0_163 = arith.constant 0 : index
    %c51 = arith.constant 51 : index
    %415 = vector.load %arg4[%c0_162, %c0_163, %c51] : memref<1x8x64xf32, #tpu.memory_space<vmem>>, vector<1x8x1xf32>
    %416 = vector.shape_cast %415 : vector<1x8x1xf32> to vector<8x1xf32>
    %417 = vector.shape_cast %414 : vector<8x1xf32> to vector<1x8x1xf32>
    tpu.vector_store %arg4[%c0_162, %c0_163, %c51], %417 {strides = array<i32>} : memref<1x8x64xf32, #tpu.memory_space<vmem>>, vector<1x8x1xf32>,
    %418 = vector.extract_strided_slice %393 {offsets = [0, 28], sizes = [8, 8], strides = [1, 1]} : vector<8x63xf32> to vector<8x8xf32>
    %cst_164 = arith.constant dense<0xFF800000> : vector<8xf32>
    %419 = vector.multi_reduction <maximumf>, %418, %cst_164 [1] : vector<8x8xf32> to vector<8xf32>
    %420 = vector.shape_cast %419 : vector<8xf32> to vector<8x1xf32>
    %c0_165 = arith.constant 0 : index
    %c0_166 = arith.constant 0 : index
    %c52 = arith.constant 52 : index
    %421 = vector.load %arg4[%c0_165, %c0_166, %c52] : memref<1x8x64xf32, #tpu.memory_space<vmem>>, vector<1x8x1xf32>
    %422 = vector.shape_cast %421 : vector<1x8x1xf32> to vector<8x1xf32>
    %423 = vector.shape_cast %420 : vector<8x1xf32> to vector<1x8x1xf32>
    tpu.vector_store %arg4[%c0_165, %c0_166, %c52], %423 {strides = array<i32>} : memref<1x8x64xf32, #tpu.memory_space<vmem>>, vector<1x8x1xf32>,
    %424 = vector.extract_strided_slice %393 {offsets = [0, 36], sizes = [8, 8], strides = [1, 1]} : vector<8x63xf32> to vector<8x8xf32>
    %cst_167 = arith.constant dense<0xFF800000> : vector<8xf32>
    %425 = vector.multi_reduction <maximumf>, %424, %cst_167 [1] : vector<8x8xf32> to vector<8xf32>
    %426 = vector.shape_cast %425 : vector<8xf32> to vector<8x1xf32>
    %c0_168 = arith.constant 0 : index
    %c0_169 = arith.constant 0 : index
    %c53 = arith.constant 53 : index
    %427 = vector.load %arg4[%c0_168, %c0_169, %c53] : memref<1x8x64xf32, #tpu.memory_space<vmem>>, vector<1x8x1xf32>
    %428 = vector.shape_cast %427 : vector<1x8x1xf32> to vector<8x1xf32>
    %429 = vector.shape_cast %426 : vector<8x1xf32> to vector<1x8x1xf32>
    tpu.vector_store %arg4[%c0_168, %c0_169, %c53], %429 {strides = array<i32>} : memref<1x8x64xf32, #tpu.memory_space<vmem>>, vector<1x8x1xf32>,
    %430 = vector.extract_strided_slice %393 {offsets = [0, 44], sizes = [8, 8], strides = [1, 1]} : vector<8x63xf32> to vector<8x8xf32>
    %cst_170 = arith.constant dense<0xFF800000> : vector<8xf32>
    %431 = vector.multi_reduction <maximumf>, %430, %cst_170 [1] : vector<8x8xf32> to vector<8xf32>
    %432 = vector.shape_cast %431 : vector<8xf32> to vector<8x1xf32>
    %c0_171 = arith.constant 0 : index
    %c0_172 = arith.constant 0 : index
    %c54 = arith.constant 54 : index
    %433 = vector.load %arg4[%c0_171, %c0_172, %c54] : memref<1x8x64xf32, #tpu.memory_space<vmem>>, vector<1x8x1xf32>
    %434 = vector.shape_cast %433 : vector<1x8x1xf32> to vector<8x1xf32>
    %435 = vector.shape_cast %432 : vector<8x1xf32> to vector<1x8x1xf32>
    tpu.vector_store %arg4[%c0_171, %c0_172, %c54], %435 {strides = array<i32>} : memref<1x8x64xf32, #tpu.memory_space<vmem>>, vector<1x8x1xf32>,
    %436 = vector.extract_strided_slice %393 {offsets = [0, 52], sizes = [8, 8], strides = [1, 1]} : vector<8x63xf32> to vector<8x8xf32>
    %cst_173 = arith.constant dense<0xFF800000> : vector<8xf32>
    %437 = vector.multi_reduction <maximumf>, %436, %cst_173 [1] : vector<8x8xf32> to vector<8xf32>
    %438 = vector.shape_cast %437 : vector<8xf32> to vector<8x1xf32>
    %c0_174 = arith.constant 0 : index
    %c0_175 = arith.constant 0 : index
    %c55 = arith.constant 55 : index
    %439 = vector.load %arg4[%c0_174, %c0_175, %c55] : memref<1x8x64xf32, #tpu.memory_space<vmem>>, vector<1x8x1xf32>
    %440 = vector.shape_cast %439 : vector<1x8x1xf32> to vector<8x1xf32>
    %441 = vector.shape_cast %438 : vector<8x1xf32> to vector<1x8x1xf32>
    tpu.vector_store %arg4[%c0_174, %c0_175, %c55], %441 {strides = array<i32>} : memref<1x8x64xf32, #tpu.memory_space<vmem>>, vector<1x8x1xf32>,
    %442 = vector.extract_strided_slice %8 {offsets = [0, 3276], sizes = [8, 63], strides = [1, 1]} : vector<8x4096xf32> to vector<8x63xf32>
    %443 = vector.extract_strided_slice %8 {offsets = [0, 3339], sizes = [8, 63], strides = [1, 1]} : vector<8x4096xf32> to vector<8x63xf32>
    %444 = arith.maximumf %442, %443 : vector<8x63xf32>
    %445 = vector.extract_strided_slice %8 {offsets = [0, 3402], sizes = [8, 63], strides = [1, 1]} : vector<8x4096xf32> to vector<8x63xf32>
    %446 = arith.maximumf %444, %445 : vector<8x63xf32>
    %447 = vector.extract_strided_slice %8 {offsets = [0, 3465], sizes = [8, 63], strides = [1, 1]} : vector<8x4096xf32> to vector<8x63xf32>
    %448 = arith.maximumf %446, %447 : vector<8x63xf32>
    %449 = vector.extract_strided_slice %8 {offsets = [0, 3528], sizes = [8, 63], strides = [1, 1]} : vector<8x4096xf32> to vector<8x63xf32>
    %450 = arith.maximumf %448, %449 : vector<8x63xf32>
    %451 = vector.extract_strided_slice %8 {offsets = [0, 3591], sizes = [8, 63], strides = [1, 1]} : vector<8x4096xf32> to vector<8x63xf32>
    %452 = arith.maximumf %450, %451 : vector<8x63xf32>
    %453 = vector.extract_strided_slice %8 {offsets = [0, 3654], sizes = [8, 63], strides = [1, 1]} : vector<8x4096xf32> to vector<8x63xf32>
    %454 = arith.maximumf %452, %453 : vector<8x63xf32>
    %455 = vector.extract_strided_slice %8 {offsets = [0, 3717], sizes = [8, 63], strides = [1, 1]} : vector<8x4096xf32> to vector<8x63xf32>
    %456 = arith.maximumf %454, %455 : vector<8x63xf32>
    %457 = vector.extract_strided_slice %456 {offsets = [0, 0], sizes = [8, 4], strides = [1, 1]} : vector<8x63xf32> to vector<8x4xf32>
    %cst_176 = arith.constant dense<0xFF800000> : vector<8xf32>
    %458 = vector.multi_reduction <maximumf>, %457, %cst_176 [1] : vector<8x4xf32> to vector<8xf32>
    %459 = vector.shape_cast %458 : vector<8xf32> to vector<8x1xf32>
    %c0_177 = arith.constant 0 : index
    %c0_178 = arith.constant 0 : index
    %c56 = arith.constant 56 : index
    %460 = vector.load %arg4[%c0_177, %c0_178, %c56] : memref<1x8x64xf32, #tpu.memory_space<vmem>>, vector<1x8x1xf32>
    %461 = vector.shape_cast %460 : vector<1x8x1xf32> to vector<8x1xf32>
    %462 = vector.shape_cast %459 : vector<8x1xf32> to vector<1x8x1xf32>
    tpu.vector_store %arg4[%c0_177, %c0_178, %c56], %462 {strides = array<i32>} : memref<1x8x64xf32, #tpu.memory_space<vmem>>, vector<1x8x1xf32>,
    %463 = vector.extract_strided_slice %456 {offsets = [0, 4], sizes = [8, 8], strides = [1, 1]} : vector<8x63xf32> to vector<8x8xf32>
    %cst_179 = arith.constant dense<0xFF800000> : vector<8xf32>
    %464 = vector.multi_reduction <maximumf>, %463, %cst_179 [1] : vector<8x8xf32> to vector<8xf32>
    %465 = vector.shape_cast %464 : vector<8xf32> to vector<8x1xf32>
    %c0_180 = arith.constant 0 : index
    %c0_181 = arith.constant 0 : index
    %c57 = arith.constant 57 : index
    %466 = vector.load %arg4[%c0_180, %c0_181, %c57] : memref<1x8x64xf32, #tpu.memory_space<vmem>>, vector<1x8x1xf32>
    %467 = vector.shape_cast %466 : vector<1x8x1xf32> to vector<8x1xf32>
    %468 = vector.shape_cast %465 : vector<8x1xf32> to vector<1x8x1xf32>
    tpu.vector_store %arg4[%c0_180, %c0_181, %c57], %468 {strides = array<i32>} : memref<1x8x64xf32, #tpu.memory_space<vmem>>, vector<1x8x1xf32>,
    %469 = vector.extract_strided_slice %456 {offsets = [0, 12], sizes = [8, 8], strides = [1, 1]} : vector<8x63xf32> to vector<8x8xf32>
    %cst_182 = arith.constant dense<0xFF800000> : vector<8xf32>
    %470 = vector.multi_reduction <maximumf>, %469, %cst_182 [1] : vector<8x8xf32> to vector<8xf32>
    %471 = vector.shape_cast %470 : vector<8xf32> to vector<8x1xf32>
    %c0_183 = arith.constant 0 : index
    %c0_184 = arith.constant 0 : index
    %c58 = arith.constant 58 : index
    %472 = vector.load %arg4[%c0_183, %c0_184, %c58] : memref<1x8x64xf32, #tpu.memory_space<vmem>>, vector<1x8x1xf32>
    %473 = vector.shape_cast %472 : vector<1x8x1xf32> to vector<8x1xf32>
    %474 = vector.shape_cast %471 : vector<8x1xf32> to vector<1x8x1xf32>
    tpu.vector_store %arg4[%c0_183, %c0_184, %c58], %474 {strides = array<i32>} : memref<1x8x64xf32, #tpu.memory_space<vmem>>, vector<1x8x1xf32>,
    %475 = vector.extract_strided_slice %456 {offsets = [0, 20], sizes = [8, 8], strides = [1, 1]} : vector<8x63xf32> to vector<8x8xf32>
    %cst_185 = arith.constant dense<0xFF800000> : vector<8xf32>
    %476 = vector.multi_reduction <maximumf>, %475, %cst_185 [1] : vector<8x8xf32> to vector<8xf32>
    %477 = vector.shape_cast %476 : vector<8xf32> to vector<8x1xf32>
    %c0_186 = arith.constant 0 : index
    %c0_187 = arith.constant 0 : index
    %c59 = arith.constant 59 : index
    %478 = vector.load %arg4[%c0_186, %c0_187, %c59] : memref<1x8x64xf32, #tpu.memory_space<vmem>>, vector<1x8x1xf32>
    %479 = vector.shape_cast %478 : vector<1x8x1xf32> to vector<8x1xf32>
    %480 = vector.shape_cast %477 : vector<8x1xf32> to vector<1x8x1xf32>
    tpu.vector_store %arg4[%c0_186, %c0_187, %c59], %480 {strides = array<i32>} : memref<1x8x64xf32, #tpu.memory_space<vmem>>, vector<1x8x1xf32>,
    %481 = vector.extract_strided_slice %456 {offsets = [0, 28], sizes = [8, 8], strides = [1, 1]} : vector<8x63xf32> to vector<8x8xf32>
    %cst_188 = arith.constant dense<0xFF800000> : vector<8xf32>
    %482 = vector.multi_reduction <maximumf>, %481, %cst_188 [1] : vector<8x8xf32> to vector<8xf32>
    %483 = vector.shape_cast %482 : vector<8xf32> to vector<8x1xf32>
    %c0_189 = arith.constant 0 : index
    %c0_190 = arith.constant 0 : index
    %c60 = arith.constant 60 : index
    %484 = vector.load %arg4[%c0_189, %c0_190, %c60] : memref<1x8x64xf32, #tpu.memory_space<vmem>>, vector<1x8x1xf32>
    %485 = vector.shape_cast %484 : vector<1x8x1xf32> to vector<8x1xf32>
    %486 = vector.shape_cast %483 : vector<8x1xf32> to vector<1x8x1xf32>
    tpu.vector_store %arg4[%c0_189, %c0_190, %c60], %486 {strides = array<i32>} : memref<1x8x64xf32, #tpu.memory_space<vmem>>, vector<1x8x1xf32>,
    %487 = vector.extract_strided_slice %456 {offsets = [0, 36], sizes = [8, 8], strides = [1, 1]} : vector<8x63xf32> to vector<8x8xf32>
    %cst_191 = arith.constant dense<0xFF800000> : vector<8xf32>
    %488 = vector.multi_reduction <maximumf>, %487, %cst_191 [1] : vector<8x8xf32> to vector<8xf32>
    %489 = vector.shape_cast %488 : vector<8xf32> to vector<8x1xf32>
    %c0_192 = arith.constant 0 : index
    %c0_193 = arith.constant 0 : index
    %c61 = arith.constant 61 : index
    %490 = vector.load %arg4[%c0_192, %c0_193, %c61] : memref<1x8x64xf32, #tpu.memory_space<vmem>>, vector<1x8x1xf32>
    %491 = vector.shape_cast %490 : vector<1x8x1xf32> to vector<8x1xf32>
    %492 = vector.shape_cast %489 : vector<8x1xf32> to vector<1x8x1xf32>
    tpu.vector_store %arg4[%c0_192, %c0_193, %c61], %492 {strides = array<i32>} : memref<1x8x64xf32, #tpu.memory_space<vmem>>, vector<1x8x1xf32>,
    %493 = vector.extract_strided_slice %456 {offsets = [0, 44], sizes = [8, 8], strides = [1, 1]} : vector<8x63xf32> to vector<8x8xf32>
    %cst_194 = arith.constant dense<0xFF800000> : vector<8xf32>
    %494 = vector.multi_reduction <maximumf>, %493, %cst_194 [1] : vector<8x8xf32> to vector<8xf32>
    %495 = vector.shape_cast %494 : vector<8xf32> to vector<8x1xf32>
    %c0_195 = arith.constant 0 : index
    %c0_196 = arith.constant 0 : index
    %c62 = arith.constant 62 : index
    %496 = vector.load %arg4[%c0_195, %c0_196, %c62] : memref<1x8x64xf32, #tpu.memory_space<vmem>>, vector<1x8x1xf32>
    %497 = vector.shape_cast %496 : vector<1x8x1xf32> to vector<8x1xf32>
    %498 = vector.shape_cast %495 : vector<8x1xf32> to vector<1x8x1xf32>
    tpu.vector_store %arg4[%c0_195, %c0_196, %c62], %498 {strides = array<i32>} : memref<1x8x64xf32, #tpu.memory_space<vmem>>, vector<1x8x1xf32>,
    %499 = vector.extract_strided_slice %456 {offsets = [0, 52], sizes = [8, 8], strides = [1, 1]} : vector<8x63xf32> to vector<8x8xf32>
    %cst_197 = arith.constant dense<0xFF800000> : vector<8xf32>
    %500 = vector.multi_reduction <maximumf>, %499, %cst_197 [1] : vector<8x8xf32> to vector<8xf32>
    %501 = vector.shape_cast %500 : vector<8xf32> to vector<8x1xf32>
    %c0_198 = arith.constant 0 : index
    %c0_199 = arith.constant 0 : index
    %c63 = arith.constant 63 : index
    %502 = vector.load %arg4[%c0_198, %c0_199, %c63] : memref<1x8x64xf32, #tpu.memory_space<vmem>>, vector<1x8x1xf32>
    %503 = vector.shape_cast %502 : vector<1x8x1xf32> to vector<8x1xf32>
    %504 = vector.shape_cast %501 : vector<8x1xf32> to vector<1x8x1xf32>
    tpu.vector_store %arg4[%c0_198, %c0_199, %c63], %504 {strides = array<i32>} : memref<1x8x64xf32, #tpu.memory_space<vmem>>, vector<1x8x1xf32>,
    return
  }
  func.func @transform_0(%arg0: i32) -> (i32, i32, i32) {
    %c0_i32 = arith.constant 0 : i32
    %c0_i32_0 = arith.constant 0 : i32
    %c0_i32_1 = arith.constant 0 : i32
    return %arg0, %c0_i32, %c0_i32_0 : i32, i32, i32
  }
  func.func @transform_1(%arg0: i32) -> (i32, i32) {
    %c0_i32 = arith.constant 0 : i32
    %c0_i32_0 = arith.constant 0 : i32
    %c0_i32_1 = arith.constant 0 : i32
    return %c0_i32, %c0_i32_0 : i32, i32
  }
  func.func @transform_2(%arg0: i32) -> (i32, i32) {
    %c0_i32 = arith.constant 0 : i32
    %c0_i32_0 = arith.constant 0 : i32
    %c0_i32_1 = arith.constant 0 : i32
    return %c0_i32, %c0_i32_0 : i32, i32
  }
  func.func @transform_3(%arg0: i32) -> (i32, i32, i32) {
    %c0_i32 = arith.constant 0 : i32
    %c0_i32_0 = arith.constant 0 : i32
    %c0_i32_1 = arith.constant 0 : i32
    return %arg0, %c0_i32, %c0_i32_0 : i32, i32, i32
  }
}

module attributes {stable_mosaic.version = 11 : i64} {
  func.func @conv2_dense_kernel(%arg0: i32, %arg1: memref<1x32x128xbf16, #tpu.memory_space<vmem>>, %arg2: memref<16x32xbf16, #tpu.memory_space<vmem>>, %arg3: memref<16x1xf32, #tpu.memory_space<vmem>>, %arg4: memref<9x20x16xf32, #tpu.memory_space<vmem>>, %arg5: memref<20x1xf32, #tpu.memory_space<vmem>>, %arg6: memref<1x20x1xf32, #tpu.memory_space<vmem>>) attributes {dimension_semantics = [#tpu.dimension_semantics<parallel>], iteration_bounds = array<i64: 2>, scalar_prefetch = 0 : i64, scratch_operands = 0 : i64, tpu.core_type = #tpu.core_type<tc>, window_params = [{transform_indices = @transform_0, window_bounds = array<i64: 1, 32, 128>}, {pipeline_mode = #tpu.pipeline_mode<synchronous>, transform_indices = @transform_1, window_bounds = array<i64: 16, 32>}, {pipeline_mode = #tpu.pipeline_mode<synchronous>, transform_indices = @transform_2, window_bounds = array<i64: 16, 1>}, {pipeline_mode = #tpu.pipeline_mode<synchronous>, transform_indices = @transform_3, window_bounds = array<i64: 9, 20, 16>}, {pipeline_mode = #tpu.pipeline_mode<synchronous>, transform_indices = @transform_4, window_bounds = array<i64: 20, 1>}, {transform_indices = @transform_5, window_bounds = array<i64: 1, 20, 1>}]} {
    %c0 = arith.constant 0 : index
    %c0_0 = arith.constant 0 : index
    %0 = vector.load %arg2[%c0, %c0_0] : memref<16x32xbf16, #tpu.memory_space<vmem>>, vector<16x32xbf16>
    %c0_1 = arith.constant 0 : index
    %c0_2 = arith.constant 0 : index
    %c0_3 = arith.constant 0 : index
    %1 = vector.load %arg1[%c0_1, %c0_2, %c0_3] : memref<1x32x128xbf16, #tpu.memory_space<vmem>>, vector<1x32x128xbf16>
    %2 = vector.shape_cast %1 : vector<1x32x128xbf16> to vector<32x128xbf16>
    %cst = arith.constant dense<0.000000e+00> : vector<16x128xf32>
    %3 = tpu.matmul %0, %2, %cst {dimension_numbers = #tpu.dot_dimension_numbers<[1], [0], [0], [1], [0, 0, 1, 1], [], []>} : vector<16x32xbf16>, vector<32x128xbf16>, vector<16x128xf32> -> vector<16x128xf32>
    %c0_4 = arith.constant 0 : index
    %c0_5 = arith.constant 0 : index
    %4 = vector.load %arg3[%c0_4, %c0_5] : memref<16x1xf32, #tpu.memory_space<vmem>>, vector<16x1xf32>
    %5 = vector.broadcast %4 : vector<16x1xf32> to vector<16x128xf32>
    %6 = arith.addf %3, %5 : vector<16x128xf32>
    %cst_6 = arith.constant 0.000000e+00 : f32
    %7 = vector.broadcast %cst_6 : f32 to vector<16x128xf32>
    %8 = arith.maximumf %6, %7 : vector<16x128xf32>
    %c0_7 = arith.constant 0 : index
    %c0_8 = arith.constant 0 : index
    %9 = vector.load %arg5[%c0_7, %c0_8] : memref<20x1xf32, #tpu.memory_space<vmem>>, vector<20x1xf32>
    %10 = vector.extract_strided_slice %8 {offsets = [0, 0], sizes = [16, 9], strides = [1, 1]} : vector<16x128xf32> to vector<16x9xf32>
    %11 = vector.extract_strided_slice %8 {offsets = [0, 9], sizes = [16, 9], strides = [1, 1]} : vector<16x128xf32> to vector<16x9xf32>
    %12 = arith.maximumf %10, %11 : vector<16x9xf32>
    %13 = vector.extract_strided_slice %12 {offsets = [0, 0], sizes = [16, 2], strides = [1, 1]} : vector<16x9xf32> to vector<16x2xf32>
    %cst_9 = arith.constant dense<0xFF800000> : vector<16xf32>
    %14 = vector.multi_reduction <maximumf>, %13, %cst_9 [1] : vector<16x2xf32> to vector<16xf32>
    %15 = vector.shape_cast %14 : vector<16xf32> to vector<16x1xf32>
    %c0_10 = arith.constant 0 : index
    %c0_11 = arith.constant 0 : index
    %c0_12 = arith.constant 0 : index
    %16 = vector.load %arg4[%c0_10, %c0_11, %c0_12] : memref<9x20x16xf32, #tpu.memory_space<vmem>>, vector<1x20x16xf32>
    %17 = vector.shape_cast %16 : vector<1x20x16xf32> to vector<20x16xf32>
    %cst_13 = arith.constant dense<0.000000e+00> : vector<20x1xf32>
    %18 = tpu.matmul %17, %15, %cst_13 {dimension_numbers = #tpu.dot_dimension_numbers<[1], [0], [0], [1], [0, 0, 1, 1], [], []>} : vector<20x16xf32>, vector<16x1xf32>, vector<20x1xf32> -> vector<20x1xf32>
    %19 = arith.addf %9, %18 : vector<20x1xf32>
    %20 = vector.extract_strided_slice %12 {offsets = [0, 2], sizes = [16, 4], strides = [1, 1]} : vector<16x9xf32> to vector<16x4xf32>
    %cst_14 = arith.constant dense<0xFF800000> : vector<16xf32>
    %21 = vector.multi_reduction <maximumf>, %20, %cst_14 [1] : vector<16x4xf32> to vector<16xf32>
    %22 = vector.shape_cast %21 : vector<16xf32> to vector<16x1xf32>
    %c1 = arith.constant 1 : index
    %c0_15 = arith.constant 0 : index
    %c0_16 = arith.constant 0 : index
    %23 = vector.load %arg4[%c1, %c0_15, %c0_16] : memref<9x20x16xf32, #tpu.memory_space<vmem>>, vector<1x20x16xf32>
    %24 = vector.shape_cast %23 : vector<1x20x16xf32> to vector<20x16xf32>
    %cst_17 = arith.constant dense<0.000000e+00> : vector<20x1xf32>
    %25 = tpu.matmul %24, %22, %cst_17 {dimension_numbers = #tpu.dot_dimension_numbers<[1], [0], [0], [1], [0, 0, 1, 1], [], []>} : vector<20x16xf32>, vector<16x1xf32>, vector<20x1xf32> -> vector<20x1xf32>
    %26 = arith.addf %19, %25 : vector<20x1xf32>
    %27 = vector.extract_strided_slice %12 {offsets = [0, 6], sizes = [16, 3], strides = [1, 1]} : vector<16x9xf32> to vector<16x3xf32>
    %cst_18 = arith.constant dense<0xFF800000> : vector<16xf32>
    %28 = vector.multi_reduction <maximumf>, %27, %cst_18 [1] : vector<16x3xf32> to vector<16xf32>
    %29 = vector.shape_cast %28 : vector<16xf32> to vector<16x1xf32>
    %c2 = arith.constant 2 : index
    %c0_19 = arith.constant 0 : index
    %c0_20 = arith.constant 0 : index
    %30 = vector.load %arg4[%c2, %c0_19, %c0_20] : memref<9x20x16xf32, #tpu.memory_space<vmem>>, vector<1x20x16xf32>
    %31 = vector.shape_cast %30 : vector<1x20x16xf32> to vector<20x16xf32>
    %cst_21 = arith.constant dense<0.000000e+00> : vector<20x1xf32>
    %32 = tpu.matmul %31, %29, %cst_21 {dimension_numbers = #tpu.dot_dimension_numbers<[1], [0], [0], [1], [0, 0, 1, 1], [], []>} : vector<20x16xf32>, vector<16x1xf32>, vector<20x1xf32> -> vector<20x1xf32>
    %33 = arith.addf %26, %32 : vector<20x1xf32>
    %34 = vector.extract_strided_slice %8 {offsets = [0, 18], sizes = [16, 9], strides = [1, 1]} : vector<16x128xf32> to vector<16x9xf32>
    %35 = vector.extract_strided_slice %8 {offsets = [0, 27], sizes = [16, 9], strides = [1, 1]} : vector<16x128xf32> to vector<16x9xf32>
    %36 = arith.maximumf %34, %35 : vector<16x9xf32>
    %37 = vector.extract_strided_slice %8 {offsets = [0, 36], sizes = [16, 9], strides = [1, 1]} : vector<16x128xf32> to vector<16x9xf32>
    %38 = arith.maximumf %36, %37 : vector<16x9xf32>
    %39 = vector.extract_strided_slice %8 {offsets = [0, 45], sizes = [16, 9], strides = [1, 1]} : vector<16x128xf32> to vector<16x9xf32>
    %40 = arith.maximumf %38, %39 : vector<16x9xf32>
    %41 = vector.extract_strided_slice %40 {offsets = [0, 0], sizes = [16, 2], strides = [1, 1]} : vector<16x9xf32> to vector<16x2xf32>
    %cst_22 = arith.constant dense<0xFF800000> : vector<16xf32>
    %42 = vector.multi_reduction <maximumf>, %41, %cst_22 [1] : vector<16x2xf32> to vector<16xf32>
    %43 = vector.shape_cast %42 : vector<16xf32> to vector<16x1xf32>
    %c3 = arith.constant 3 : index
    %c0_23 = arith.constant 0 : index
    %c0_24 = arith.constant 0 : index
    %44 = vector.load %arg4[%c3, %c0_23, %c0_24] : memref<9x20x16xf32, #tpu.memory_space<vmem>>, vector<1x20x16xf32>
    %45 = vector.shape_cast %44 : vector<1x20x16xf32> to vector<20x16xf32>
    %cst_25 = arith.constant dense<0.000000e+00> : vector<20x1xf32>
    %46 = tpu.matmul %45, %43, %cst_25 {dimension_numbers = #tpu.dot_dimension_numbers<[1], [0], [0], [1], [0, 0, 1, 1], [], []>} : vector<20x16xf32>, vector<16x1xf32>, vector<20x1xf32> -> vector<20x1xf32>
    %47 = arith.addf %33, %46 : vector<20x1xf32>
    %48 = vector.extract_strided_slice %40 {offsets = [0, 2], sizes = [16, 4], strides = [1, 1]} : vector<16x9xf32> to vector<16x4xf32>
    %cst_26 = arith.constant dense<0xFF800000> : vector<16xf32>
    %49 = vector.multi_reduction <maximumf>, %48, %cst_26 [1] : vector<16x4xf32> to vector<16xf32>
    %50 = vector.shape_cast %49 : vector<16xf32> to vector<16x1xf32>
    %c4 = arith.constant 4 : index
    %c0_27 = arith.constant 0 : index
    %c0_28 = arith.constant 0 : index
    %51 = vector.load %arg4[%c4, %c0_27, %c0_28] : memref<9x20x16xf32, #tpu.memory_space<vmem>>, vector<1x20x16xf32>
    %52 = vector.shape_cast %51 : vector<1x20x16xf32> to vector<20x16xf32>
    %cst_29 = arith.constant dense<0.000000e+00> : vector<20x1xf32>
    %53 = tpu.matmul %52, %50, %cst_29 {dimension_numbers = #tpu.dot_dimension_numbers<[1], [0], [0], [1], [0, 0, 1, 1], [], []>} : vector<20x16xf32>, vector<16x1xf32>, vector<20x1xf32> -> vector<20x1xf32>
    %54 = arith.addf %47, %53 : vector<20x1xf32>
    %55 = vector.extract_strided_slice %40 {offsets = [0, 6], sizes = [16, 3], strides = [1, 1]} : vector<16x9xf32> to vector<16x3xf32>
    %cst_30 = arith.constant dense<0xFF800000> : vector<16xf32>
    %56 = vector.multi_reduction <maximumf>, %55, %cst_30 [1] : vector<16x3xf32> to vector<16xf32>
    %57 = vector.shape_cast %56 : vector<16xf32> to vector<16x1xf32>
    %c5 = arith.constant 5 : index
    %c0_31 = arith.constant 0 : index
    %c0_32 = arith.constant 0 : index
    %58 = vector.load %arg4[%c5, %c0_31, %c0_32] : memref<9x20x16xf32, #tpu.memory_space<vmem>>, vector<1x20x16xf32>
    %59 = vector.shape_cast %58 : vector<1x20x16xf32> to vector<20x16xf32>
    %cst_33 = arith.constant dense<0.000000e+00> : vector<20x1xf32>
    %60 = tpu.matmul %59, %57, %cst_33 {dimension_numbers = #tpu.dot_dimension_numbers<[1], [0], [0], [1], [0, 0, 1, 1], [], []>} : vector<20x16xf32>, vector<16x1xf32>, vector<20x1xf32> -> vector<20x1xf32>
    %61 = arith.addf %54, %60 : vector<20x1xf32>
    %62 = vector.extract_strided_slice %8 {offsets = [0, 54], sizes = [16, 9], strides = [1, 1]} : vector<16x128xf32> to vector<16x9xf32>
    %63 = vector.extract_strided_slice %8 {offsets = [0, 63], sizes = [16, 9], strides = [1, 1]} : vector<16x128xf32> to vector<16x9xf32>
    %64 = arith.maximumf %62, %63 : vector<16x9xf32>
    %65 = vector.extract_strided_slice %8 {offsets = [0, 72], sizes = [16, 9], strides = [1, 1]} : vector<16x128xf32> to vector<16x9xf32>
    %66 = arith.maximumf %64, %65 : vector<16x9xf32>
    %67 = vector.extract_strided_slice %66 {offsets = [0, 0], sizes = [16, 2], strides = [1, 1]} : vector<16x9xf32> to vector<16x2xf32>
    %cst_34 = arith.constant dense<0xFF800000> : vector<16xf32>
    %68 = vector.multi_reduction <maximumf>, %67, %cst_34 [1] : vector<16x2xf32> to vector<16xf32>
    %69 = vector.shape_cast %68 : vector<16xf32> to vector<16x1xf32>
    %c6 = arith.constant 6 : index
    %c0_35 = arith.constant 0 : index
    %c0_36 = arith.constant 0 : index
    %70 = vector.load %arg4[%c6, %c0_35, %c0_36] : memref<9x20x16xf32, #tpu.memory_space<vmem>>, vector<1x20x16xf32>
    %71 = vector.shape_cast %70 : vector<1x20x16xf32> to vector<20x16xf32>
    %cst_37 = arith.constant dense<0.000000e+00> : vector<20x1xf32>
    %72 = tpu.matmul %71, %69, %cst_37 {dimension_numbers = #tpu.dot_dimension_numbers<[1], [0], [0], [1], [0, 0, 1, 1], [], []>} : vector<20x16xf32>, vector<16x1xf32>, vector<20x1xf32> -> vector<20x1xf32>
    %73 = arith.addf %61, %72 : vector<20x1xf32>
    %74 = vector.extract_strided_slice %66 {offsets = [0, 2], sizes = [16, 4], strides = [1, 1]} : vector<16x9xf32> to vector<16x4xf32>
    %cst_38 = arith.constant dense<0xFF800000> : vector<16xf32>
    %75 = vector.multi_reduction <maximumf>, %74, %cst_38 [1] : vector<16x4xf32> to vector<16xf32>
    %76 = vector.shape_cast %75 : vector<16xf32> to vector<16x1xf32>
    %c7 = arith.constant 7 : index
    %c0_39 = arith.constant 0 : index
    %c0_40 = arith.constant 0 : index
    %77 = vector.load %arg4[%c7, %c0_39, %c0_40] : memref<9x20x16xf32, #tpu.memory_space<vmem>>, vector<1x20x16xf32>
    %78 = vector.shape_cast %77 : vector<1x20x16xf32> to vector<20x16xf32>
    %cst_41 = arith.constant dense<0.000000e+00> : vector<20x1xf32>
    %79 = tpu.matmul %78, %76, %cst_41 {dimension_numbers = #tpu.dot_dimension_numbers<[1], [0], [0], [1], [0, 0, 1, 1], [], []>} : vector<20x16xf32>, vector<16x1xf32>, vector<20x1xf32> -> vector<20x1xf32>
    %80 = arith.addf %73, %79 : vector<20x1xf32>
    %81 = vector.extract_strided_slice %66 {offsets = [0, 6], sizes = [16, 3], strides = [1, 1]} : vector<16x9xf32> to vector<16x3xf32>
    %cst_42 = arith.constant dense<0xFF800000> : vector<16xf32>
    %82 = vector.multi_reduction <maximumf>, %81, %cst_42 [1] : vector<16x3xf32> to vector<16xf32>
    %83 = vector.shape_cast %82 : vector<16xf32> to vector<16x1xf32>
    %c8 = arith.constant 8 : index
    %c0_43 = arith.constant 0 : index
    %c0_44 = arith.constant 0 : index
    %84 = vector.load %arg4[%c8, %c0_43, %c0_44] : memref<9x20x16xf32, #tpu.memory_space<vmem>>, vector<1x20x16xf32>
    %85 = vector.shape_cast %84 : vector<1x20x16xf32> to vector<20x16xf32>
    %cst_45 = arith.constant dense<0.000000e+00> : vector<20x1xf32>
    %86 = tpu.matmul %85, %83, %cst_45 {dimension_numbers = #tpu.dot_dimension_numbers<[1], [0], [0], [1], [0, 0, 1, 1], [], []>} : vector<20x16xf32>, vector<16x1xf32>, vector<20x1xf32> -> vector<20x1xf32>
    %87 = arith.addf %80, %86 : vector<20x1xf32>
    %cst_46 = arith.constant 0.000000e+00 : f32
    %88 = vector.broadcast %cst_46 : f32 to vector<20x1xf32>
    %89 = arith.maximumf %87, %88 : vector<20x1xf32>
    %cst_47 = arith.constant dense<0xFF800000> : vector<1xf32>
    %90 = vector.multi_reduction <maximumf>, %89, %cst_47 [0] : vector<20x1xf32> to vector<1xf32>
    %91 = vector.shape_cast %90 : vector<1xf32> to vector<1x1xf32>
    %92 = vector.broadcast %91 : vector<1x1xf32> to vector<20x1xf32>
    %93 = arith.subf %89, %92 : vector<20x1xf32>
    %94 = math.exp %93 : vector<20x1xf32>
    %cst_48 = arith.constant dense<0.000000e+00> : vector<1xf32>
    %95 = vector.multi_reduction <add>, %94, %cst_48 [0] : vector<20x1xf32> to vector<1xf32>
    %96 = vector.shape_cast %95 : vector<1xf32> to vector<1x1xf32>
    %97 = math.log %96 : vector<1x1xf32>
    %98 = vector.broadcast %97 : vector<1x1xf32> to vector<20x1xf32>
    %99 = arith.subf %93, %98 : vector<20x1xf32>
    %c0_49 = arith.constant 0 : index
    %c0_50 = arith.constant 0 : index
    %c0_51 = arith.constant 0 : index
    %100 = vector.load %arg6[%c0_49, %c0_50, %c0_51] : memref<1x20x1xf32, #tpu.memory_space<vmem>>, vector<1x20x1xf32>
    %101 = vector.shape_cast %100 : vector<1x20x1xf32> to vector<20x1xf32>
    %102 = vector.shape_cast %99 : vector<20x1xf32> to vector<1x20x1xf32>
    tpu.vector_store %arg6[%c0_49, %c0_50, %c0_51], %102 {strides = array<i32>} : memref<1x20x1xf32, #tpu.memory_space<vmem>>, vector<1x20x1xf32>,
    return
  }
  func.func @transform_0(%arg0: i32) -> (i32, i32, i32) {
    %c0_i32 = arith.constant 0 : i32
    %c0_i32_0 = arith.constant 0 : i32
    %c0_i32_1 = arith.constant 0 : i32
    return %arg0, %c0_i32, %c0_i32_0 : i32, i32, i32
  }
  func.func @transform_1(%arg0: i32) -> (i32, i32) {
    %c0_i32 = arith.constant 0 : i32
    %c0_i32_0 = arith.constant 0 : i32
    %c0_i32_1 = arith.constant 0 : i32
    return %c0_i32, %c0_i32_0 : i32, i32
  }
  func.func @transform_2(%arg0: i32) -> (i32, i32) {
    %c0_i32 = arith.constant 0 : i32
    %c0_i32_0 = arith.constant 0 : i32
    %c0_i32_1 = arith.constant 0 : i32
    return %c0_i32, %c0_i32_0 : i32, i32
  }
  func.func @transform_3(%arg0: i32) -> (i32, i32, i32) {
    %c0_i32 = arith.constant 0 : i32
    %c0_i32_0 = arith.constant 0 : i32
    %c0_i32_1 = arith.constant 0 : i32
    %c0_i32_2 = arith.constant 0 : i32
    return %c0_i32, %c0_i32_0, %c0_i32_1 : i32, i32, i32
  }
  func.func @transform_4(%arg0: i32) -> (i32, i32) {
    %c0_i32 = arith.constant 0 : i32
    %c0_i32_0 = arith.constant 0 : i32
    %c0_i32_1 = arith.constant 0 : i32
    return %c0_i32, %c0_i32_0 : i32, i32
  }
  func.func @transform_5(%arg0: i32) -> (i32, i32, i32) {
    %c0_i32 = arith.constant 0 : i32
    %c0_i32_0 = arith.constant 0 : i32
    %c0_i32_1 = arith.constant 0 : i32
    return %arg0, %c0_i32, %c0_i32_0 : i32, i32, i32
  }
}

</mosaic_0001>

<bundles_post_ra>
// kernel: cnn_forward.2
= control target key start
LH: loop header
LB: loop body
LE: loop exit
PB: predicated region body
PF: predicated region fallthrough
CT: control target
= control target key end

     0   :  { %s2461_s12 = smov 0   ;;  %s3092_s0 = inlined_call_operand.vmem [shape: bf16[2,48,4096], index: 0, kind: input, shape index: {}]   ;;  %s3093_s1 = inlined_call_operand.vmem [shape: bf16[8,48], index: 1, kind: input, shape index: {}]   ;;  %s3094_s2 = inlined_call_operand.vmem [shape: f32[8,1], index: 2, kind: input, shape index: {}]   ;;  %s3095_s3 = inlined_call_operand.vmem [shape: f32[2,8,64], index: 3, kind: output, shape index: {}]  }
   0x1 LB: > { %s1918_s13 = sadd.s32 4294967295, %s2431_s12   ;;  %p1922_p0 = scmp.ge.s32.totalorder %s2431_s12, 1  ;;  %s2431_s12 = sphi %s2461_s12, %s13_s12  }
   0x2   : > { %p137_p1 = scmp.lt.s32.totalorder %s2431_s12, 3 }
   0x4   : > { %p138_p2 = pnand %p1922_p0, %p137_p1 }
   0x5   : > { %p160_p3 = scmp.lt.s32.totalorder (!%p138_p2), %s1918_s13, 1  ;;  %s2434_s22 = smov (!%p138_p2), 2  }
   0x6   : > { %141 = sbr.rel (%p138_p2) target bundleno = 1076 (0x434), region = 32  ;;  %s2435_s23 = smov (!%p138_p2), 65  }
   0x7   : > { %s2436_s24 = smov (!%p138_p2), 67   ;;  %s2437_s25 = smov (!%p138_p2), 69  }
   0x8   : > { %s2438_s26 = smov (!%p138_p2), 4   ;;  %s2439_s27 = smov (!%p138_p2), 71  }
   0x9   : > { %s2440_s28 = smov (!%p138_p2), 6  }
   0xb   : > { %v261_v0 = vld [vmem:[%s3094_s2] sm:$0xff]  ;;  %v2433_v1 = vmov 0   ;;  %s3101_s13 = smov (!%p160_p3, %s1918_s13), 1  ;;  %vm717_vm0 = vcmask 392192   ;;  %vm1151_vm1 = vcmask 15360   ;;  %vm1171_vm2 = vcmask 162912  }
   0xc   : > { %2424 = vset.pattern.permute.xlu0 %v2433_v1  ;;  %s2407_s16 = smul.u32 768, %s3101_s13  ;;  %v2510_v41 = vld [vmem:[%s3093_s1] sm:$0xf]  ;;  %vm1159_vm3 = vcmask 31744   ;;  %vm1165_vm4 = vcmask 97312   ;;  %vm1195_vm5 = vcmask 425312  }
   0xd   : > { %264 = vperm.xlu0 %2424, %v261_v0   ;;  %vm1177_vm6 = vcmask 228512   ;;  %vm1189_vm7 = vcmask 359712   ;;  %vm1183_vm8 = vcmask 294112   ;;  %vm1248_vm9 = vcmask 48128   ;;  %s1924_s29 = sshll.u32 %s3101_s13, 3 }
   0xe   : > { %s2478_s19 = scalar_lea.vmem %s3092_s0, %s2407_s16  ;;  %vm1259_vm10 = vcmask 1048544   ;;  %vm1201_vm11 = vcmask 490912   ;;  %vm1265_vm12 = vcmask 64512   ;;  %vm1277_vm13 = vcmask 195712   ;;  %s2890_s5 = scalar_lea.vmem %s3095_s3, %s1924_s29 }
   0xf   : > { %v2167_v2 = vld [vmem:[%s2478_s19 + $0x200] sm:$0xf]  ;;  %v2377_v4 = vld [vmem:[%s2478_s19 + $0x204] sm:$0xf]  ;;  %v2175_v7 = vld [vmem:[%s2478_s19 + $0x208] sm:$0xf] }
  0x10   : > { %v2392_v3 = vld [vmem:[%s2478_s19 + $0x27c] sm:$0xf0]  ;;  %v2169_v6 = vld [vmem:[%s2478_s19 + $0x280] sm:$0xf0]  ;;  %v2393_v8 = vld [vmem:[%s2478_s19 + $0x284] sm:$0xf0] }
  0x11   : > { %v2168_v5 = vor.u32 %v2392_v3, %v2167_v2  ;;  %v2172_v9 = vor.u32 %v2377_v4, %v2169_v6  ;;  %v2176_v10 = vor.u32 %v2393_v8, %v2175_v7  ;;  %v2378_v11 = vld [vmem:[%s2478_s19 + $0x20c] sm:$0xf]  ;;  %v2047_v13 = vld [vmem:[%s2478_s19 + $0x100] sm:$0xf]  ;;  %v2347_v16 = vld [vmem:[%s2478_s19 + $0x104] sm:$0xf] }
  0x12   : > { %v2177_v12 = vld [vmem:[%s2478_s19 + $0x288] sm:$0xf0]  ;;  %v2362_v15 = vld [vmem:[%s2478_s19 + $0x17c] sm:$0xf0]  ;;  %v2049_v17 = vld [vmem:[%s2478_s19 + $0x180] sm:$0xf0] }
  0x13   : > { %726 = vmatpush.bf16.msra.mxu0 %v2168_v5  ;;  %v2180_v14 = vor.u32 %v2378_v11, %v2177_v12  ;;  %739 = vmatpush.bf16.msra.mxu1 %v2172_v9  ;;  %v2048_v18 = vor.u32 %v2362_v15, %v2047_v13  ;;  %v2052_v19 = vor.u32 %v2347_v16, %v2049_v17  ;;  %v2055_v20 = vld [vmem:[%s2478_s19 + $0x108] sm:$0xf]  ;;  %v2348_v22 = vld [vmem:[%s2478_s19 + $0x10c] sm:$0xf]  ;;  %v1927_v25 = vld [vmem:[%s2478_s19] sm:$0xf] }
  0x14   : > { %752 = vmatpush.bf16.msra.mxu2 %v2176_v10  ;;  %v2363_v21 = vld [vmem:[%s2478_s19 + $0x184] sm:$0xf0]  ;;  %v2057_v24 = vld [vmem:[%s2478_s19 + $0x188] sm:$0xf0]  ;;  %v2332_v26 = vld [vmem:[%s2478_s19 + $0x7c] sm:$0xf0] }
  0x15   : > { %765 = vmatpush.bf16.msra.mxu3 %v2180_v14  ;;  %v2056_v23 = vor.u32 %v2363_v21, %v2055_v20  ;;  %v2060_v27 = vor.u32 %v2348_v22, %v2057_v24  ;;  %v2317_v28 = vld [vmem:[%s2478_s19 + $0x4] sm:$0xf]  ;;  %v1935_v30 = vld [vmem:[%s2478_s19 + $0x8] sm:$0xf]  ;;  %v1928_v31 = vor.u32 %v2332_v26, %v1927_v25  ;;  %v2318_v33 = vld [vmem:[%s2478_s19 + $0xc] sm:$0xf] }
  0x16   : > { %v1929_v29 = vld [vmem:[%s2478_s19 + $0x80] sm:$0xf0]  ;;  %v2333_v32 = vld [vmem:[%s2478_s19 + $0x84] sm:$0xf0]  ;;  %v1937_v34 = vld [vmem:[%s2478_s19 + $0x88] sm:$0xf0] }
  0x17   : > { %727 = vmatpush.bf16.msra.mxu0 %v2048_v18  ;;  %740 = vmatpush.bf16.msra.mxu1 %v2052_v19  ;;  %v1932_v35 = vor.u32 %v2317_v28, %v1929_v29  ;;  %v1936_v36 = vor.u32 %v2333_v32, %v1935_v30  ;;  %v2183_v37 = vld [vmem:[%s2478_s19 + $0x210] sm:$0xf]  ;;  %v2379_v39 = vld [vmem:[%s2478_s19 + $0x214] sm:$0xf]  ;;  %v1940_v40 = vor.u32 %v2318_v33, %v1937_v34  ;;  %v2191_v44 = vld [vmem:[%s2478_s19 + $0x218] sm:$0xf] }
  0x18   : > { %753 = vmatpush.bf16.msra.mxu2 %v2056_v23  ;;  %v2394_v38 = vld [vmem:[%s2478_s19 + $0x28c] sm:$0xf0]  ;;  %v2185_v43 = vld [vmem:[%s2478_s19 + $0x290] sm:$0xf0]  ;;  %v2395_v45 = vld [vmem:[%s2478_s19 + $0x294] sm:$0xf0] }
  0x19   : > { %766 = vmatpush.bf16.msra.mxu3 %v2060_v27  ;;  %v2184_v42 = vor.u32 %v2394_v38, %v2183_v37  ;;  %v2188_v46 = vor.u32 %v2379_v39, %v2185_v43  ;;  %v2380_v47 = vld [vmem:[%s2478_s19 + $0x21c] sm:$0xf]  ;;  %v2063_v49 = vld [vmem:[%s2478_s19 + $0x110] sm:$0xf]  ;;  %v2349_v51 = vld [vmem:[%s2478_s19 + $0x114] sm:$0xf]  ;;  %v2192_v53 = vor.u32 %v2395_v45, %v2191_v44 }
  0x1a   : > { %v2193_v48 = vld [vmem:[%s2478_s19 + $0x298] sm:$0xf0]  ;;  %v2364_v50 = vld [vmem:[%s2478_s19 + $0x18c] sm:$0xf0]  ;;  %v2065_v52 = vld [vmem:[%s2478_s19 + $0x190] sm:$0xf0] }
  0x1b   : > { %728 = vmatpush.bf16.msra.mxu0 %v1928_v31  ;;  %741 = vmatpush.bf16.msra.mxu1 %v1932_v35  ;;  %v2071_v54 = vld [vmem:[%s2478_s19 + $0x118] sm:$0xf]  ;;  %v2196_v55 = vor.u32 %v2380_v47, %v2193_v48  ;;  %v2064_v56 = vor.u32 %v2364_v50, %v2063_v49  ;;  %v2350_v58 = vld [vmem:[%s2478_s19 + $0x11c] sm:$0xf]  ;;  %v2068_v60 = vor.u32 %v2349_v51, %v2065_v52  ;;  %v1943_v61 = vld [vmem:[%s2478_s19 + $0x10] sm:$0xf] }
  0x1c   : > { %754 = vmatpush.bf16.msra.mxu2 %v1936_v36  ;;  %v2365_v57 = vld [vmem:[%s2478_s19 + $0x194] sm:$0xf0]  ;;  %v2073_v59 = vld [vmem:[%s2478_s19 + $0x198] sm:$0xf0]  ;;  %v2334_v62 = vld [vmem:[%s2478_s19 + $0x8c] sm:$0xf0] }
  0x1d   : > { %767 = vmatpush.bf16.msra.mxu3 %v1940_v40  ;;  %v2319_v63 = vld [vmem:[%s2478_s19 + $0x14] sm:$0xf]  ;;  %v1951_v1 = vld [vmem:[%s2478_s19 + $0x18] sm:$0xf]  ;;  %v2072_v3 = vor.u32 %v2365_v57, %v2071_v54  ;;  %v2199_v4 = vld [vmem:[%s2478_s19 + $0x220] sm:$0xf]  ;;  %v2076_v7 = vor.u32 %v2350_v58, %v2073_v59  ;;  %v1944_v8 = vor.u32 %v2334_v62, %v1943_v61 }
  0x1e   : > { %2285 = vmatmul.msk.bf16.vlgmr.msra.gmra.mxu0 %vm717_vm0, %v2510_v41  ;;  %2286 = vmatmul.msk.bf16.vlgmr.msra.gmra.mxu1 %vm717_vm0, %v2510_v41  ;;  %v1945_v0 = vld [vmem:[%s2478_s19 + $0x90] sm:$0xf0]  ;;  %v2335_v2 = vld [vmem:[%s2478_s19 + $0x94] sm:$0xf0]  ;;  %v2396_v5 = vld [vmem:[%s2478_s19 + $0x29c] sm:$0xf0] }
  0x1f   : > { %778 = vmatpush.bf16.msrb.mxu0 %v2184_v42  ;;  %791 = vmatpush.bf16.msrb.mxu1 %v2188_v46  ;;  %v2381_v6 = vld [vmem:[%s2478_s19 + $0x224] sm:$0xf]  ;;  %v2320_v9 = vld [vmem:[%s2478_s19 + $0x1c] sm:$0xf]  ;;  %v1948_v12 = vor.u32 %v2319_v63, %v1945_v0  ;;  %v2200_v13 = vor.u32 %v2396_v5, %v2199_v4  ;;  %v2207_v14 = vld [vmem:[%s2478_s19 + $0x228] sm:$0xf]  ;;  %v1952_v21 = vor.u32 %v2335_v2, %v1951_v1 }
  0x20   : > { %2287 = vmatmul.msk.bf16.vlgmr.msra.gmra.mxu2 %vm717_vm0, %v2510_v41  ;;  %2288 = vmatmul.msk.bf16.vlgmr.msra.gmra.mxu3 %vm717_vm0, %v2510_v41  ;;  %v1953_v10 = vld [vmem:[%s2478_s19 + $0x98] sm:$0xf0]  ;;  %v2201_v11 = vld [vmem:[%s2478_s19 + $0x2a0] sm:$0xf0]  ;;  %v2397_v15 = vld [vmem:[%s2478_s19 + $0x2a4] sm:$0xf0] }
  0x21   : > { %804 = vmatpush.bf16.msrb.mxu2 %v2192_v53  ;;  %817 = vmatpush.bf16.msrb.mxu3 %v2196_v55  ;;  %v2382_v16 = vld [vmem:[%s2478_s19 + $0x22c] sm:$0xf]  ;;  %v2204_v17 = vor.u32 %v2381_v6, %v2201_v11  ;;  %v2079_v19 = vld [vmem:[%s2478_s19 + $0x120] sm:$0xf]  ;;  %v2351_v22 = vld [vmem:[%s2478_s19 + $0x124] sm:$0xf]  ;;  %v1956_v24 = vor.u32 %v2320_v9, %v1953_v10  ;;  %v2208_v25 = vor.u32 %v2397_v15, %v2207_v14 }
  0x22   : > { %v2209_v18 = vld [vmem:[%s2478_s19 + $0x2a8] sm:$0xf0]  ;;  %v2366_v20 = vld [vmem:[%s2478_s19 + $0x19c] sm:$0xf0]  ;;  %v2081_v23 = vld [vmem:[%s2478_s19 + $0x1a0] sm:$0xf0] }
  0x23   : > { %779 = vmatpush.bf16.msrb.mxu0 %v2064_v56  ;;  %792 = vmatpush.bf16.msrb.mxu1 %v2068_v60  ;;  %v2212_v26 = vor.u32 %v2382_v16, %v2209_v18  ;;  %v2080_v27 = vor.u32 %v2366_v20, %v2079_v19  ;;  %v2087_v28 = vld [vmem:[%s2478_s19 + $0x128] sm:$0xf]  ;;  %v2084_v30 = vor.u32 %v2351_v22, %v2081_v23  ;;  %v2352_v31 = vld [vmem:[%s2478_s19 + $0x12c] sm:$0xf]  ;;  %v1959_v33 = vld [vmem:[%s2478_s19 + $0x20] sm:$0xf] }
  0x24   : > { %v2367_v29 = vld [vmem:[%s2478_s19 + $0x1a4] sm:$0xf0]  ;;  %v2089_v32 = vld [vmem:[%s2478_s19 + $0x1a8] sm:$0xf0]  ;;  %v2336_v34 = vld [vmem:[%s2478_s19 + $0x9c] sm:$0xf0] }
  0x25   : > { %805 = vmatpush.bf16.msrb.mxu2 %v2072_v3  ;;  %818 = vmatpush.bf16.msrb.mxu3 %v2076_v7  ;;  %v2088_v35 = vor.u32 %v2367_v29, %v2087_v28  ;;  %v2321_v36 = vld [vmem:[%s2478_s19 + $0x24] sm:$0xf]  ;;  %v1967_v38 = vld [vmem:[%s2478_s19 + $0x28] sm:$0xf]  ;;  %v2092_v39 = vor.u32 %v2352_v31, %v2089_v32  ;;  %v2322_v42 = vld [vmem:[%s2478_s19 + $0x2c] sm:$0xf]  ;;  %v1960_v47 = vor.u32 %v2336_v34, %v1959_v33 }
  0x26   : > { %v1961_v37 = vld [vmem:[%s2478_s19 + $0xa0] sm:$0xf0]  ;;  %v2337_v40 = vld [vmem:[%s2478_s19 + $0xa4] sm:$0xf0]  ;;  %v1969_v43 = vld [vmem:[%s2478_s19 + $0xa8] sm:$0xf0] }
  0x27   : > { %780 = vmatpush.bf16.msrb.mxu0 %v1944_v8  ;;  %793 = vmatpush.bf16.msrb.mxu1 %v1948_v12  ;;  %v2215_v44 = vld [vmem:[%s2478_s19 + $0x230] sm:$0xf]  ;;  %v2383_v46 = vld [vmem:[%s2478_s19 + $0x234] sm:$0xf]  ;;  %v2223_v49 = vld [vmem:[%s2478_s19 + $0x238] sm:$0xf]  ;;  %v1964_v51 = vor.u32 %v2321_v36, %v1961_v37  ;;  %v1968_v52 = vor.u32 %v2337_v40, %v1967_v38  ;;  %v1972_v55 = vor.u32 %v2322_v42, %v1969_v43 }
  0x28   : > { %v2398_v45 = vld [vmem:[%s2478_s19 + $0x2ac] sm:$0xf0]  ;;  %v2217_v48 = vld [vmem:[%s2478_s19 + $0x2b0] sm:$0xf0]  ;;  %v2399_v50 = vld [vmem:[%s2478_s19 + $0x2b4] sm:$0xf0] }
  0x29   : > { %806 = vmatpush.bf16.msrb.mxu2 %v1952_v21  ;;  %819 = vmatpush.bf16.msrb.mxu3 %v1956_v24  ;;  %v2384_v53 = vld [vmem:[%s2478_s19 + $0x23c] sm:$0xf]  ;;  %v2216_v56 = vor.u32 %v2398_v45, %v2215_v44  ;;  %v2220_v57 = vor.u32 %v2383_v46, %v2217_v48  ;;  %v2224_v58 = vor.u32 %v2399_v50, %v2223_v49  ;;  %v2095_v59 = vld [vmem:[%s2478_s19 + $0x130] sm:$0xf]  ;;  %v2353_v61 = vld [vmem:[%s2478_s19 + $0x134] sm:$0xf] }
  0x2a   : > { %v2225_v54 = vld [vmem:[%s2478_s19 + $0x2b8] sm:$0xf0]  ;;  %v2368_v60 = vld [vmem:[%s2478_s19 + $0x1ac] sm:$0xf0]  ;;  %v2097_v63 = vld [vmem:[%s2478_s19 + $0x1b0] sm:$0xf0] }
  0x2b   : > { %830 = vmatpush.bf16.msra.mxu0 %v2200_v13  ;;  %843 = vmatpush.bf16.msra.mxu1 %v2204_v17  ;;  %v2228_v62 = vor.u32 %v2384_v53, %v2225_v54  ;;  %v2103_v0 = vld [vmem:[%s2478_s19 + $0x138] sm:$0xf]  ;;  %v2354_v2 = vld [vmem:[%s2478_s19 + $0x13c] sm:$0xf]  ;;  %v2096_v4 = vor.u32 %v2368_v60, %v2095_v59  ;;  %v2100_v5 = vor.u32 %v2353_v61, %v2097_v63  ;;  %v1975_v7 = vld [vmem:[%s2478_s19 + $0x30] sm:$0xf] }
  0x2c   : > { %v2369_v1 = vld [vmem:[%s2478_s19 + $0x1b4] sm:$0xf0]  ;;  %v2105_v3 = vld [vmem:[%s2478_s19 + $0x1b8] sm:$0xf0]  ;;  %v2338_v8 = vld [vmem:[%s2478_s19 + $0xac] sm:$0xf0] }
  0x2d   : > { %856 = vmatpush.bf16.msra.mxu2 %v2208_v25  ;;  %869 = vmatpush.bf16.msra.mxu3 %v2212_v26  ;;  %v2104_v6 = vor.u32 %v2369_v1, %v2103_v0  ;;  %v2323_v9 = vld [vmem:[%s2478_s19 + $0x34] sm:$0xf]  ;;  %v2108_v10 = vor.u32 %v2354_v2, %v2105_v3  ;;  %v1983_v12 = vld [vmem:[%s2478_s19 + $0x38] sm:$0xf]  ;;  %v2324_v14 = vld [vmem:[%s2478_s19 + $0x3c] sm:$0xf]  ;;  %v1976_v16 = vor.u32 %v2338_v8, %v1975_v7 }
  0x2e   : > { %2289 = vmatmul.msk.bf16.vlgmr.msrb.gmra.mxu0 %vm717_vm0, %v2510_v41  ;;  %2290 = vmatmul.msk.bf16.vlgmr.msrb.gmra.mxu1 %vm717_vm0, %v2510_v41  ;;  %v1977_v11 = vld [vmem:[%s2478_s19 + $0xb0] sm:$0xf0]  ;;  %v2339_v13 = vld [vmem:[%s2478_s19 + $0xb4] sm:$0xf0]  ;;  %v1985_v15 = vld [vmem:[%s2478_s19 + $0xb8] sm:$0xf0] }
  0x2f   : > { %831 = vmatpush.bf16.msra.mxu0 %v2080_v27  ;;  %844 = vmatpush.bf16.msra.mxu1 %v2084_v30  ;;  %v1980_v17 = vor.u32 %v2323_v9, %v1977_v11  ;;  %v1984_v18 = vor.u32 %v2339_v13, %v1983_v12  ;;  %v1988_v19 = vor.u32 %v2324_v14, %v1985_v15  ;;  %v2231_v20 = vld [vmem:[%s2478_s19 + $0x240] sm:$0xf]  ;;  %v2385_v22 = vld [vmem:[%s2478_s19 + $0x244] sm:$0xf]  ;;  %v2239_v24 = vld [vmem:[%s2478_s19 + $0x248] sm:$0xf] }
  0x30   : > { %2291 = vmatmul.msk.bf16.vlgmr.msrb.gmra.mxu2 %vm717_vm0, %v2510_v41  ;;  %2292 = vmatmul.msk.bf16.vlgmr.msrb.gmra.mxu3 %vm717_vm0, %v2510_v41  ;;  %v2400_v21 = vld [vmem:[%s2478_s19 + $0x2bc] sm:$0xf0]  ;;  %v2233_v23 = vld [vmem:[%s2478_s19 + $0x2c0] sm:$0xf0]  ;;  %v2401_v25 = vld [vmem:[%s2478_s19 + $0x2c4] sm:$0xf0] }
  0x31   : > { %857 = vmatpush.bf16.msra.mxu2 %v2088_v35  ;;  %870 = vmatpush.bf16.msra.mxu3 %v2092_v39  ;;  %v2386_v26 = vld [vmem:[%s2478_s19 + $0x24c] sm:$0xf]  ;;  %v2232_v28 = vor.u32 %v2400_v21, %v2231_v20  ;;  %v2236_v29 = vor.u32 %v2385_v22, %v2233_v23  ;;  %v2240_v30 = vor.u32 %v2401_v25, %v2239_v24  ;;  %v2111_v31 = vld [vmem:[%s2478_s19 + $0x140] sm:$0xf]  ;;  %v2355_v33 = vld [vmem:[%s2478_s19 + $0x144] sm:$0xf] }
  0x32   : > { %v2241_v27 = vld [vmem:[%s2478_s19 + $0x2c8] sm:$0xf0]  ;;  %v2370_v32 = vld [vmem:[%s2478_s19 + $0x1bc] sm:$0xf0]  ;;  %v2113_v35 = vld [vmem:[%s2478_s19 + $0x1c0] sm:$0xf0] }
  0x33   : > { %832 = vmatpush.bf16.msra.mxu0 %v1960_v47  ;;  %845 = vmatpush.bf16.msra.mxu1 %v1964_v51  ;;  %v2244_v34 = vor.u32 %v2386_v26, %v2241_v27  ;;  %v2119_v36 = vld [vmem:[%s2478_s19 + $0x148] sm:$0xf]  ;;  %v2356_v38 = vld [vmem:[%s2478_s19 + $0x14c] sm:$0xf]  ;;  %v2112_v40 = vor.u32 %v2370_v32, %v2111_v31  ;;  %v2116_v42 = vor.u32 %v2355_v33, %v2113_v35  ;;  %v1991_v44 = vld [vmem:[%s2478_s19 + $0x40] sm:$0xf] }
  0x34   : > { %v2371_v37 = vld [vmem:[%s2478_s19 + $0x1c4] sm:$0xf0]  ;;  %v2121_v39 = vld [vmem:[%s2478_s19 + $0x1c8] sm:$0xf0]  ;;  %v2340_v45 = vld [vmem:[%s2478_s19 + $0xbc] sm:$0xf0] }
  0x35   : > { %858 = vmatpush.bf16.msra.mxu2 %v1968_v52  ;;  %871 = vmatpush.bf16.msra.mxu3 %v1972_v55  ;;  %v2120_v43 = vor.u32 %v2371_v37, %v2119_v36  ;;  %v2325_v46 = vld [vmem:[%s2478_s19 + $0x44] sm:$0xf]  ;;  %v2124_v47 = vor.u32 %v2356_v38, %v2121_v39  ;;  %v1999_v49 = vld [vmem:[%s2478_s19 + $0x48] sm:$0xf]  ;;  %v2326_v51 = vld [vmem:[%s2478_s19 + $0x4c] sm:$0xf]  ;;  %v1992_v53 = vor.u32 %v2340_v45, %v1991_v44 }
  0x36   : > { %v1993_v48 = vld [vmem:[%s2478_s19 + $0xc0] sm:$0xf0]  ;;  %v2341_v50 = vld [vmem:[%s2478_s19 + $0xc4] sm:$0xf0]  ;;  %v2001_v52 = vld [vmem:[%s2478_s19 + $0xc8] sm:$0xf0] }
  0x37   : > { %882 = vmatpush.bf16.msrb.mxu0 %v2216_v56  ;;  %895 = vmatpush.bf16.msrb.mxu1 %v2220_v57  ;;  %v1996_v54 = vor.u32 %v2325_v46, %v1993_v48  ;;  %v2000_v55 = vor.u32 %v2341_v50, %v1999_v49  ;;  %v2004_v56 = vor.u32 %v2326_v51, %v2001_v52  ;;  %v2247_v57 = vld [vmem:[%s2478_s19 + $0x250] sm:$0xf]  ;;  %v2387_v59 = vld [vmem:[%s2478_s19 + $0x254] sm:$0xf]  ;;  %v2255_v61 = vld [vmem:[%s2478_s19 + $0x258] sm:$0xf] }
  0x38   : > { %v2249_v60 = vld [vmem:[%s2478_s19 + $0x2d0] sm:$0xf0]  ;;  %v2388_v63 = vld [vmem:[%s2478_s19 + $0x25c] sm:$0xf]  ;;  %v2135_v9 = vld [vmem:[%s2478_s19 + $0x158] sm:$0xf] }
  0x39   : > { %908 = vmatpush.bf16.msrb.mxu2 %v2224_v58  ;;  %921 = vmatpush.bf16.msrb.mxu3 %v2228_v62  ;;  %v2402_v58 = vld [vmem:[%s2478_s19 + $0x2cc] sm:$0xf0]  ;;  %v2403_v62 = vld [vmem:[%s2478_s19 + $0x2d4] sm:$0xf0]  ;;  %v2257_v0 = vld [vmem:[%s2478_s19 + $0x2d8] sm:$0xf0]  ;;  %v2252_v2 = vor.u32 %v2387_v59, %v2249_v60 }
  0x3a   : > { %v2248_v1 = vor.u32 %v2402_v58, %v2247_v57  ;;  %v2256_v3 = vor.u32 %v2403_v62, %v2255_v61  ;;  %v2260_v7 = vor.u32 %v2388_v63, %v2257_v0  ;;  %v2129_v8 = vld [vmem:[%s2478_s19 + $0x1d0] sm:$0xf0]  ;;  %v2358_v11 = vld [vmem:[%s2478_s19 + $0x15c] sm:$0xf]  ;;  %v2015_v21 = vld [vmem:[%s2478_s19 + $0x58] sm:$0xf] }
  0x3b   : > { %883 = vmatpush.bf16.msrb.mxu0 %v2096_v4  ;;  %896 = vmatpush.bf16.msrb.mxu1 %v2100_v5  ;;  %v2127_v4 = vld [vmem:[%s2478_s19 + $0x150] sm:$0xf]  ;;  %v2137_v12 = vld [vmem:[%s2478_s19 + $0x1d8] sm:$0xf0]  ;;  %v2009_v20 = vld [vmem:[%s2478_s19 + $0xd0] sm:$0xf0] }
  0x3c   : > { %v2372_v5 = vld [vmem:[%s2478_s19 + $0x1cc] sm:$0xf0]  ;;  %v2343_v22 = vld [vmem:[%s2478_s19 + $0xd4] sm:$0xf0]  ;;  %v2328_v23 = vld [vmem:[%s2478_s19 + $0x5c] sm:$0xf] }
  0x3d   : > { %909 = vmatpush.bf16.msrb.mxu2 %v2104_v6  ;;  %922 = vmatpush.bf16.msrb.mxu3 %v2108_v10  ;;  %v2357_v6 = vld [vmem:[%s2478_s19 + $0x154] sm:$0xf]  ;;  %v2373_v10 = vld [vmem:[%s2478_s19 + $0x1d4] sm:$0xf0]  ;;  %v2128_v13 = vor.u32 %v2372_v5, %v2127_v4  ;;  %v2017_v24 = vld [vmem:[%s2478_s19 + $0xd8] sm:$0xf0]  ;;  %v2016_v27 = vor.u32 %v2343_v22, %v2015_v21 }
  0x3e   : > { %2293 = vmatmul.msk.bf16.vlgmr.msra.gmra.mxu0 %vm717_vm0, %v2510_v41  ;;  %2294 = vmatmul.msk.bf16.vlgmr.msra.gmra.mxu1 %vm717_vm0, %v2510_v41  ;;  %v2132_v14 = vor.u32 %v2357_v6, %v2129_v8  ;;  %v2136_v15 = vor.u32 %v2373_v10, %v2135_v9  ;;  %v2389_v31 = vld [vmem:[%s2478_s19 + $0x264] sm:$0xf]  ;;  %v2271_v33 = vld [vmem:[%s2478_s19 + $0x268] sm:$0xf]  ;;  %v2390_v35 = vld [vmem:[%s2478_s19 + $0x26c] sm:$0xf] }
  0x3f   : > { %884 = vmatpush.bf16.msrb.mxu0 %v1976_v16  ;;  %897 = vmatpush.bf16.msrb.mxu1 %v1980_v17  ;;  %v2007_v16 = vld [vmem:[%s2478_s19 + $0x50] sm:$0xf]  ;;  %v2265_v32 = vld [vmem:[%s2478_s19 + $0x2e0] sm:$0xf0]  ;;  %v2273_v36 = vld [vmem:[%s2478_s19 + $0x2e8] sm:$0xf0] }
  0x40   : > { %2295 = vmatmul.msk.bf16.vlgmr.msra.gmra.mxu2 %vm717_vm0, %v2510_v41  ;;  %2296 = vmatmul.msk.bf16.vlgmr.msra.gmra.mxu3 %vm717_vm0, %v2510_v41  ;;  %v2342_v17 = vld [vmem:[%s2478_s19 + $0xcc] sm:$0xf0]  ;;  %v2268_v38 = vor.u32 %v2389_v31, %v2265_v32  ;;  %v2276_v44 = vor.u32 %v2390_v35, %v2273_v36  ;;  %v2145_v45 = vld [vmem:[%s2478_s19 + $0x1e0] sm:$0xf0]  ;;  %v2151_v46 = vld [vmem:[%s2478_s19 + $0x168] sm:$0xf] }
  0x41   : > { %910 = vmatpush.bf16.msrb.mxu2 %v1984_v18  ;;  %923 = vmatpush.bf16.msrb.mxu3 %v1988_v19  ;;  %v2327_v18 = vld [vmem:[%s2478_s19 + $0x54] sm:$0xf]  ;;  %v2140_v19 = vor.u32 %v2358_v11, %v2137_v12  ;;  %v2008_v25 = vor.u32 %v2342_v17, %v2007_v16  ;;  %v2360_v48 = vld [vmem:[%s2478_s19 + $0x16c] sm:$0xf]  ;;  %v2025_v57 = vld [vmem:[%s2478_s19 + $0xe0] sm:$0xf0] }
  0x42   : > { %v2012_v26 = vor.u32 %v2327_v18, %v2009_v20  ;;  %v2153_v49 = vld [vmem:[%s2478_s19 + $0x1e8] sm:$0xf0]  ;;  %v2031_v58 = vld [vmem:[%s2478_s19 + $0x68] sm:$0xf]  ;;  %v2391_v4 = vld [vmem:[%s2478_s19 + $0x274] sm:$0xf] }
  0x43   : > { %934 = vmatpush.bf16.msra.mxu0 %v2232_v28  ;;  %947 = vmatpush.bf16.msra.mxu1 %v2236_v29  ;;  %v2020_v28 = vor.u32 %v2328_v23, %v2017_v24  ;;  %v2263_v29 = vld [vmem:[%s2478_s19 + $0x260] sm:$0xf]  ;;  %v2345_v59 = vld [vmem:[%s2478_s19 + $0xe4] sm:$0xf0]  ;;  %v2330_v60 = vld [vmem:[%s2478_s19 + $0x6c] sm:$0xf] }
  0x44   : > { %v2033_v61 = vld [vmem:[%s2478_s19 + $0xe8] sm:$0xf0]  ;;  %v2032_v0 = vor.u32 %v2345_v59, %v2031_v58  ;;  %v2281_v5 = vld [vmem:[%s2478_s19 + $0x2f0] sm:$0xf0]  ;;  %v2159_v8 = vld [vmem:[%s2478_s19 + $0x170] sm:$0xf] }
  0x45   : > { %960 = vmatpush.bf16.msra.mxu2 %v2240_v30  ;;  %973 = vmatpush.bf16.msra.mxu3 %v2244_v34  ;;  %v2404_v30 = vld [vmem:[%s2478_s19 + $0x2dc] sm:$0xf0]  ;;  %v2405_v34 = vld [vmem:[%s2478_s19 + $0x2e4] sm:$0xf0]  ;;  %v2376_v9 = vld [vmem:[%s2478_s19 + $0x1ec] sm:$0xf0] }
  0x46   : > { %v2264_v37 = vor.u32 %v2404_v30, %v2263_v29  ;;  %v2272_v39 = vor.u32 %v2405_v34, %v2271_v33  ;;  %v2361_v10 = vld [vmem:[%s2478_s19 + $0x174] sm:$0xf]  ;;  %v2160_v12 = vor.u32 %v2376_v9, %v2159_v8  ;;  %vm3096_vm14 = vcmask 130112  }
  0x47   : > { %935 = vmatpush.bf16.msra.mxu0 %v2112_v40  ;;  %948 = vmatpush.bf16.msra.mxu1 %v2116_v42  ;;  %v2143_v40 = vld [vmem:[%s2478_s19 + $0x160] sm:$0xf]  ;;  %v2161_v11 = vld [vmem:[%s2478_s19 + $0x1f0] sm:$0xf0]  ;;  %vm1283_vm15 = vcmask 261312  }
  0x48   : > { %v2374_v42 = vld [vmem:[%s2478_s19 + $0x1dc] sm:$0xf0]  ;;  %v2331_v16 = vld [vmem:[%s2478_s19 + $0x74] sm:$0xf] }
  0x49   : > { %961 = vmatpush.bf16.msra.mxu2 %v2120_v43  ;;  %974 = vmatpush.bf16.msra.mxu3 %v2124_v47  ;;  %v2359_v43 = vld [vmem:[%s2478_s19 + $0x164] sm:$0xf]  ;;  %v2375_v47 = vld [vmem:[%s2478_s19 + $0x1e4] sm:$0xf0]  ;;  %v2144_v50 = vor.u32 %v2374_v42, %v2143_v40  ;;  %v2041_v17 = vld [vmem:[%s2478_s19 + $0xf0] sm:$0xf0] }
  0x4a   : > { %v2148_v51 = vor.u32 %v2359_v43, %v2145_v45  ;;  %v2152_v52 = vor.u32 %v2375_v47, %v2151_v46 }
  0x4b   : > { %936 = vmatpush.bf16.msra.mxu0 %v1992_v53  ;;  %949 = vmatpush.bf16.msra.mxu1 %v1996_v54  ;;  %v2023_v53 = vld [vmem:[%s2478_s19 + $0x60] sm:$0xf] }
  0x4c   : > { %v2344_v54 = vld [vmem:[%s2478_s19 + $0xdc] sm:$0xf0] }
  0x4d   : > { %962 = vmatpush.bf16.msra.mxu2 %v2000_v55  ;;  %975 = vmatpush.bf16.msra.mxu3 %v2004_v56  ;;  %v2329_v55 = vld [vmem:[%s2478_s19 + $0x64] sm:$0xf]  ;;  %v2156_v56 = vor.u32 %v2360_v48, %v2153_v49  ;;  %v2024_v62 = vor.u32 %v2344_v54, %v2023_v53 }
  0x4e   : > { %2297 = vmatmul.msk.bf16.vlgmr.msrb.gmra.mxu0 %vm717_vm0, %v2510_v41  ;;  %2298 = vmatmul.msk.bf16.vlgmr.msrb.gmra.mxu1 %vm717_vm0, %v2510_v41  ;;  %v2028_v63 = vor.u32 %v2329_v55, %v2025_v57 }
  0x4f   : > { %986 = vmatpush.bf16.msrb.mxu0 %v2248_v1  ;;  %999 = vmatpush.bf16.msrb.mxu1 %v2252_v2  ;;  %v2036_v1 = vor.u32 %v2330_v60, %v2033_v61  ;;  %v2279_v2 = vld [vmem:[%s2478_s19 + $0x270] sm:$0xf] }
  0x50   : > { %2299 = vmatmul.msk.bf16.vlgmr.msrb.gmra.mxu2 %vm717_vm0, %v2510_v41  ;;  %2300 = vmatmul.msk.bf16.vlgmr.msrb.gmra.mxu3 %vm717_vm0, %v2510_v41 }
  0x51   : > { %1012 = vmatpush.bf16.msrb.mxu2 %v2256_v3  ;;  %1025 = vmatpush.bf16.msrb.mxu3 %v2260_v7  ;;  %v2406_v3 = vld [vmem:[%s2478_s19 + $0x2ec] sm:$0xf0]  ;;  %v2284_v7 = vor.u32 %v2391_v4, %v2281_v5 }
  0x52   : > { %v2280_v6 = vor.u32 %v2406_v3, %v2279_v2 }
  0x53   : > { %987 = vmatpush.bf16.msrb.mxu0 %v2128_v13  ;;  %1000 = vmatpush.bf16.msrb.mxu1 %v2132_v14  ;;  %v2164_v13 = vor.u32 %v2361_v10, %v2161_v11  ;;  %v2039_v14 = vld [vmem:[%s2478_s19 + $0x70] sm:$0xf] }
  0x55   : > { %1013 = vmatpush.bf16.msrb.mxu2 %v2136_v15  ;;  %1026 = vmatpush.bf16.msrb.mxu3 %v2140_v19  ;;  %v2346_v15 = vld [vmem:[%s2478_s19 + $0xec] sm:$0xf0]  ;;  %v2044_v19 = vor.u32 %v2331_v16, %v2041_v17 }
  0x56   : > { %v2040_v18 = vor.u32 %v2346_v15, %v2039_v14 }
  0x57   : > { %988 = vmatpush.bf16.msrb.mxu0 %v2008_v25  ;;  %1001 = vmatpush.bf16.msrb.mxu1 %v2012_v26 }
  0x59   : > { %1014 = vmatpush.bf16.msrb.mxu2 %v2016_v27  ;;  %1027 = vmatpush.bf16.msrb.mxu3 %v2020_v28 }
  0x5e   : > { %2301 = vmatmul.msk.bf16.vlgmr.msra.gmra.mxu0 %vm717_vm0, %v2510_v41  ;;  %2302 = vmatmul.msk.bf16.vlgmr.msra.gmra.mxu1 %vm717_vm0, %v2510_v41 }
  0x5f   : > { %1038 = vmatpush.bf16.msra.mxu0 %v2264_v37  ;;  %1051 = vmatpush.bf16.msra.mxu1 %v2268_v38 }
  0x60   : > { %2303 = vmatmul.msk.bf16.vlgmr.msra.gmra.mxu2 %vm717_vm0, %v2510_v41  ;;  %2304 = vmatmul.msk.bf16.vlgmr.msra.gmra.mxu3 %vm717_vm0, %v2510_v41 }
  0x61   : > { %1064 = vmatpush.bf16.msra.mxu2 %v2272_v39  ;;  %1077 = vmatpush.bf16.msra.mxu3 %v2276_v44 }
  0x63   : > { %1039 = vmatpush.bf16.msra.mxu0 %v2144_v50  ;;  %1052 = vmatpush.bf16.msra.mxu1 %v2148_v51 }
  0x65   : > { %1065 = vmatpush.bf16.msra.mxu2 %v2152_v52  ;;  %1078 = vmatpush.bf16.msra.mxu3 %v2156_v56 }
  0x67   : > { %1040 = vmatpush.bf16.msra.mxu0 %v2024_v62  ;;  %1053 = vmatpush.bf16.msra.mxu1 %v2028_v63 }
  0x69   : > { %1066 = vmatpush.bf16.msra.mxu2 %v2032_v0  ;;  %1079 = vmatpush.bf16.msra.mxu3 %v2036_v1 }
  0x6e   : > { %2305 = vmatmul.msk.bf16.vlgmr.msrb.gmra.mxu0 %vm717_vm0, %v2510_v41  ;;  %2306 = vmatmul.msk.bf16.vlgmr.msrb.gmra.mxu1 %vm717_vm0, %v2510_v41 }
  0x6f   : > { %1090 = vmatpush.bf16.msrb.mxu0 %v2280_v6  ;;  %1103 = vmatpush.bf16.msrb.mxu1 %v2284_v7 }
  0x70   : > { %2307 = vmatmul.msk.bf16.vlgmr.msrb.gmra.mxu2 %vm717_vm0, %v2510_v41  ;;  %2308 = vmatmul.msk.bf16.vlgmr.msrb.gmra.mxu3 %vm717_vm0, %v2510_v41 }
  0x73   : > { %1091 = vmatpush.bf16.msrb.mxu0 %v2160_v12  ;;  %1104 = vmatpush.bf16.msrb.mxu1 %v2164_v13 }
  0x77   : > { %1092 = vmatpush.bf16.msrb.mxu0 %v2040_v18  ;;  %1105 = vmatpush.bf16.msrb.mxu1 %v2044_v19 }
  0x7e   : > { %2309 = vmatmul.msk.bf16.vlgmr.msra.gmra.mxu0 %vm717_vm0, %v2510_v41  ;;  %2310 = vmatmul.msk.bf16.vlgmr.msra.gmra.mxu1 %vm717_vm0, %v2510_v41 }
  0x7f   : > { %v2725_v20 = vpop.permute.xlu0 %264 }
  0x80   : > { %2311 = vmatmul.msk.bf16.vlgmr.msra.gmra.mxu2 %vm717_vm0, %v2510_v41  ;;  %2312 = vmatmul.msk.bf16.vlgmr.msra.gmra.mxu3 %vm717_vm0, %v2510_v41 }
  0x8e   : > { %2313 = vmatmul.msk.bf16.vlgmr.msrb.gmra.mxu0 %vm717_vm0, %v2510_v41  ;;  %2314 = vmatmul.msk.bf16.vlgmr.msrb.gmra.mxu1 %vm717_vm0, %v2510_v41  ;;  %vm1295_vm0 = vcmask 392512  }
  0x9b   : > { %v730_v21 = vpop.f32.mrf.mxu0  ;;  %v743_v23 = vpop.f32.mrf.mxu1 }
  0x9c   : > { %v731_v22 = vadd.f32 %v730_v21, %v2725_v20  ;;  %v744_v24 = vadd.f32 %v743_v23, %v2725_v20 }
  0x9e   : > { %v2729_v25 = vmax.f32 %v731_v22, 0.0  ;;  %v2731_v26 = vmax.f32 %v744_v24, 0.0 }
  0xa0   : > { %1147 = vrot.lane.b32.xlu1 %v2729_v25, %s2434_s22  ;;  %1142 = vrot.lane.b32.xlu0 %v2729_v25, %s2435_s23 }
  0xa1   : > { %1155 = vrot.lane.b32.xlu2 %v2731_v26, %s2436_s24 }
  0xa3   : > { %v756_v41 = vpop.f32.mrf.mxu2  ;;  %v769_v28 = vpop.f32.mrf.mxu3 }
  0xa4   : > { %v757_v27 = vadd.f32 %v756_v41, %v2725_v20  ;;  %v732_v29 = vpop.f32.mrf.mxu0  ;;  %v770_v30 = vadd.f32 %v769_v28, %v2725_v20  ;;  %v745_v31 = vpop.f32.mrf.mxu1 }
  0xa6   : > { %v2741_v32 = vmax.f32 %v757_v27, 0.0  ;;  %v1114_v33 = vmax.f32 %v770_v30, 0.0 }
  0xa8   : > { %1208 = vrot.lane.b32.xlu0 %v2741_v32, %s2435_s23  ;;  %1149 = vrot.lane.b32.xlu1 %v2731_v26, %s2434_s22 }
  0xa9   : > { %1216 = vrot.lane.b32.xlu2 %v1114_v33, %s2434_s22 }
  0xab   : > { %v758_v34 = vpop.f32.mrf.mxu2  ;;  %v771_v35 = vpop.f32.mrf.mxu3 }
  0xac   : > { %v782_v36 = vpop.f32.mrf.mxu0  ;;  %v795_v38 = vpop.f32.mrf.mxu1 }
  0xad   : > { %v783_v37 = vadd.f32 %v782_v36, %v2725_v20  ;;  %v796_v42 = vadd.f32 %v795_v38, %v2725_v20 }
  0xaf   : > { %v1115_v39 = vmax.f32 %v783_v37, 0.0  ;;  %v2754_v46 = vmax.f32 %v796_v42, 0.0 }
  0xb0   : > { %1223 = vrot.lane.b32.xlu0 %v1114_v33, %s2436_s24  ;;  %1214 = vrot.lane.b32.xlu1 %v2741_v32, %s2434_s22 }
  0xb1   : > { %1238 = vrot.lane.b32.xlu2 %v1115_v39, %s2437_s25 }
  0xb3   : > { %v808_v40 = vpop.f32.mrf.mxu2  ;;  %v821_v43 = vpop.f32.mrf.mxu3 }
  0xb4   : > { %v784_v44 = vpop.f32.mrf.mxu0  ;;  %v797_v45 = vpop.f32.mrf.mxu1  ;;  %v809_v48 = vadd.f32 %v808_v40, %v2725_v20  ;;  %v822_v53 = vadd.f32 %v821_v43, %v2725_v20 }
  0xb6   : > { %v2761_v52 = vmax.f32 %v809_v48, 0.0  ;;  %v1118_v58 = vmax.f32 %v822_v53, 0.0 }
  0xb8   : > { %1231 = vrot.lane.b32.xlu0 %v1115_v39, %s2438_s26  ;;  %1229 = vrot.lane.b32.xlu1 %v1114_v33, %s2438_s26 }
  0xb9   : > { %1254 = vrot.lane.b32.xlu2 %v2754_v46, %s2439_s27 }
  0xbb   : > { %v810_v47 = vpop.f32.mrf.mxu2  ;;  %v823_v49 = vpop.f32.mrf.mxu3 }
  0xbc   : > { %v834_v50 = vpop.f32.mrf.mxu0  ;;  %v847_v51 = vpop.f32.mrf.mxu1 }
  0xbd   : > { %v835_v59 = vadd.f32 %v834_v50, %v2725_v20  ;;  %v848_v1 = vadd.f32 %v847_v51, %v2725_v20 }
  0xbf   : > { %v1119_v0 = vmax.f32 %v835_v59, 0.0  ;;  %v2782_v6 = vmax.f32 %v848_v1, 0.0 }
  0xc0   : > { %1246 = vrot.lane.b32.xlu0 %v2754_v46, %s2440_s28  ;;  %1244 = vrot.lane.b32.xlu1 %v1115_v39, %s2440_s28 }
  0xc1   : > { %1308 = vrot.lane.b32.xlu2 %v2761_v52, %s2435_s23 }
  0xc3   : > { %v860_v54 = vpop.f32.mrf.mxu2  ;;  %v873_v55 = vpop.f32.mrf.mxu3 }
  0xc4   : > { %v836_v56 = vpop.f32.mrf.mxu0  ;;  %v849_v57 = vpop.f32.mrf.mxu1  ;;  %v861_v7 = vadd.f32 %v860_v54, %v2725_v20  ;;  %v874_v8 = vadd.f32 %v873_v55, %v2725_v20 }
  0xc6   : > { %v2795_v13 = vmax.f32 %v861_v7, 0.0  ;;  %v1122_v14 = vmax.f32 %v874_v8, 0.0 }
  0xc8   : > { %1316 = vrot.lane.b32.xlu0 %v1118_v58, %s2434_s22  ;;  %1314 = vrot.lane.b32.xlu1 %v2761_v52, %s2434_s22 }
  0xc9   : > { %1323 = vrot.lane.b32.xlu2 %v1118_v58, %s2436_s24 }
  0xcb   : > { %v862_v60 = vpop.f32.mrf.mxu2  ;;  %v875_v61 = vpop.f32.mrf.mxu3 }
  0xcc   : > { %v886_v62 = vpop.f32.mrf.mxu0  ;;  %v899_v63 = vpop.f32.mrf.mxu1 }
  0xcd   : > { %v887_v15 = vadd.f32 %v886_v62, %v2725_v20  ;;  %v900_v22 = vadd.f32 %v899_v63, %v2725_v20 }
  0xcf   : > { %v1123_v21 = vmax.f32 %v887_v15, 0.0  ;;  %v2815_v28 = vmax.f32 %v900_v22, 0.0 }
  0xd0   : > { %1329 = vrot.lane.b32.xlu0 %v1118_v58, %s2438_s26  ;;  %1331 = vrot.lane.b32.xlu1 %v1119_v0, %s2438_s26 }
  0xd1   : > { %1338 = vrot.lane.b32.xlu2 %v1119_v0, %s2437_s25 }
  0xd3   : > { %v2778_v2 = vpop.f32.mrf.mxu2  ;;  %v2780_v3 = vpop.f32.mrf.mxu3 }
  0xd4   : > { %v888_v4 = vpop.f32.mrf.mxu0  ;;  %v901_v5 = vpop.f32.mrf.mxu1 }
  0xd8   : > { %1344 = vrot.lane.b32.xlu0 %v1119_v0, %s2440_s28  ;;  %1346 = vrot.lane.b32.xlu1 %v2782_v6, %s2440_s28 }
  0xd9   : > { %1353 = vrot.lane.b32.xlu2 %v2782_v6, %s2439_s27 }
  0xdb   : > { %v914_v9 = vpop.f32.mrf.mxu2  ;;  %v927_v10 = vpop.f32.mrf.mxu3 }
  0xdc   : > { %v2791_v11 = vpop.f32.mrf.mxu0  ;;  %v2793_v12 = vpop.f32.mrf.mxu1 }
  0xe0   : > { %1407 = vrot.lane.b32.xlu0 %v2795_v13, %s2434_s22  ;;  %1409 = vrot.lane.b32.xlu1 %v1122_v14, %s2434_s22 }
  0xe1   : > { %1401 = vrot.lane.b32.xlu2 %v2795_v13, %s2435_s23 }
  0xe3   : > { %v2803_v16 = vpop.f32.mrf.mxu2  ;;  %v2805_v17 = vpop.f32.mrf.mxu3 }
  0xe4   : > { %v940_v18 = vpop.f32.mrf.mxu0  ;;  %v953_v19 = vpop.f32.mrf.mxu1 }
  0xe8   : > { %1416 = vrot.lane.b32.xlu0 %v1122_v14, %s2436_s24  ;;  %1424 = vrot.lane.b32.xlu1 %v1123_v21, %s2438_s26 }
  0xe9   : > { %1422 = vrot.lane.b32.xlu2 %v1122_v14, %s2438_s26 }
  0xeb   : > { %v966_v23 = vpop.f32.mrf.mxu2  ;;  %v979_v24 = vpop.f32.mrf.mxu3 }
  0xec   : > { %v2811_v41 = vpop.f32.mrf.mxu0  ;;  %v2813_v27 = vpop.f32.mrf.mxu1 }
  0xf0   : > { %1431 = vrot.lane.b32.xlu0 %v1123_v21, %s2437_s25  ;;  %1439 = vrot.lane.b32.xlu1 %v2815_v28, %s2440_s28 }
  0xf1   : > { %1437 = vrot.lane.b32.xlu2 %v1123_v21, %s2440_s28 }
  0xf3   : > { %v2821_v29 = vpop.f32.mrf.mxu2  ;;  %v2823_v30 = vpop.f32.mrf.mxu3 }
  0xf4   : > { %v992_v31 = vpop.f32.mrf.mxu0  ;;  %v1005_v33 = vpop.f32.mrf.mxu1 }
  0xf8   : > { %1446 = vrot.lane.b32.xlu0 %v2815_v28, %s2439_s27 }
  0xfb   : > { %v1018_v34 = vpop.f32.mrf.mxu2  ;;  %v1031_v35 = vpop.f32.mrf.mxu3 }
  0xfc   : > { %v2827_v36 = vpop.f32.mrf.mxu0  ;;  %v2829_v37 = vpop.f32.mrf.mxu1 }
  0xfd   : > { %v1156_v39 = vpop.permute.xlu2 %1155 }
 0x103   : > { %v2831_v38 = vpop.f32.mrf.mxu2  ;;  %v2833_v40 = vpop.f32.mrf.mxu3 }
 0x104   : > { %v1044_v42 = vpop.f32.mrf.mxu0  ;;  %v1057_v43 = vpop.f32.mrf.mxu1 }
 0x105   : > { %v1217_v49 = vpop.permute.xlu2 %1216 }
 0x10b   : > { %v1070_v44 = vpop.f32.mrf.mxu2  ;;  %v1083_v45 = vpop.f32.mrf.mxu3 }
 0x10c   : > { %v2835_v47 = vpop.f32.mrf.mxu0  ;;  %v2837_v48 = vpop.f32.mrf.mxu1 }
 0x10d   : > { %v1239_v55 = vpop.permute.xlu2 %1238 }
 0x112   : > { %v1148_v50 = vpop.permute.xlu1 %1147  ;;  %v1143_v51 = vpop.permute.xlu0 %1142 }
 0x113   : > { %v1145_v56 = vmax.f32 %v2729_v25, %v1143_v51 }
 0x114   : > { %v1096_v53 = vpop.f32.mrf.mxu0  ;;  %v1109_v54 = vpop.f32.mrf.mxu1 }
 0x115   : > { %v1255_v1 = vpop.permute.xlu2 %1254 }
 0x11a   : > { %v1209_v57 = vpop.permute.xlu0 %1208  ;;  %v1150_v58 = vpop.permute.xlu1 %1149 }
 0x11b   : > { %v1152_v59 = vsel %vm1151_vm1, %v1148_v50, %v1150_v58  ;;  %v1211_v25 = vmax.f32 %v2731_v26, %v1209_v57  ;;  %v1212_v8 = vmax.f32 %v2741_v32, %v1209_v57 }
 0x11c   : > { %v1154_v60 = vmax.f32 %v1145_v56, %v1152_v59 }
 0x11d   : > { %v1309_v22 = vpop.permute.xlu2 %1308 }
 0x11e   : > { %v1158_v61 = vmax.f32 %v1154_v60, %v1156_v39  ;;  %v1311_v58 = vmax.f32 %v2754_v46, %v1309_v22  ;;  %v1312_v60 = vmax.f32 %v2761_v52, %v1309_v22 }
 0x120   : > { %v1172_v62 = vsel %vm1171_vm2, %v1158_v61, -inf  ;;  %v1160_v63 = vsel %vm1159_vm3, %v1158_v61, -inf  ;;  %v1166_v0 = vsel %vm1165_vm4, %v1158_v61, -inf  ;;  %v1196_v14 = vsel %vm1195_vm5, %v1158_v61, -inf }
 0x121   : > { %1173 = vmax.xlane.f32.xlu1 %v1172_v62  ;;  %1161 = vmax.xlane.f32.xlu2 %v1160_v63  ;;  %v1178_v15 = vsel %vm1177_vm6, %v1158_v61, -inf  ;;  %v1190_v18 = vsel %vm1189_vm7, %v1158_v61, -inf  ;;  %v1184_v32 = vsel %vm1183_vm8, %v1158_v61, -inf  ;;  %v1202_v54 = vsel %vm1201_vm11, %v1158_v61, -inf }
 0x122   : > { %v1224_v4 = vpop.permute.xlu0 %1223  ;;  %1167 = vmax.xlane.f32.xlu0 %v1166_v0  ;;  %v1215_v5 = vpop.permute.xlu1 %1214  ;;  %vm1289_vm2 = vcmask 326912   ;;  %vm1301_vm4 = vcmask 458112   ;;  %vm1364_vm5 = vcmask 1048512   ;;  %vm1358_vm6 = vcmask 982944  }
 0x123   : > { %v1218_v7 = vsel %vm1151_vm1, %v1215_v5, %v1217_v49  ;;  %v1221_v9 = vmax.f32 %v1211_v25, %v1215_v5  ;;  %vm1451_vm7 = vcmask 917344   ;;  %vm1457_vm8 = vcmask 982912  }
 0x124   : > { %v1222_v10 = vmax.f32 %v1212_v8, %v1218_v7  ;;  %vm1169_vm11 = vcmask 15368  }
 0x125   : > { %v1226_v23 = vmax.f32 %v1221_v9, %v1224_v4  ;;  %v1324_v49 = vpop.permute.xlu2 %1323 }
 0x126   : > { %v1227_v24 = vmax.f32 %v1222_v10, %v1224_v4 }
 0x129   : > { %1197 = vmax.xlane.f32.xlu1 %v1196_v14  ;;  %1179 = vmax.xlane.f32.xlu2 %v1178_v15 }
 0x12a   : > { %v1232_v19 = vpop.permute.xlu0 %1231  ;;  %1191 = vmax.xlane.f32.xlu0 %v1190_v18  ;;  %v1230_v21 = vpop.permute.xlu1 %1229 }
 0x12b   : > { %v1233_v26 = vsel %vm1159_vm3, %v1230_v21, %v1232_v19  ;;  %v1236_v31 = vmax.f32 %v1226_v23, %v1230_v21 }
 0x12c   : > { %v1237_v33 = vmax.f32 %v1227_v24, %v1233_v26 }
 0x12d   : > { %v1241_v34 = vmax.f32 %v1236_v31, %v1239_v55  ;;  %v1339_v62 = vpop.permute.xlu2 %1338 }
 0x12e   : > { %v1242_v39 = vmax.f32 %v1237_v33, %v1239_v55 }
 0x131   : > { %1185 = vmax.xlane.f32.xlu2 %v1184_v32 }
 0x132   : > { %v1247_v35 = vpop.permute.xlu0 %1246  ;;  %v1245_v42 = vpop.permute.xlu1 %1244 }
 0x133   : > { %v1249_v43 = vsel %vm1248_vm9, %v1245_v42, %v1247_v35  ;;  %v1252_v44 = vmax.f32 %v1241_v34, %v1245_v42 }
 0x134   : > { %v1253_v45 = vmax.f32 %v1242_v39, %v1249_v43 }
 0x135   : > { %v1257_v50 = vmax.f32 %v1252_v44, %v1255_v1  ;;  %v1354_v18 = vpop.permute.xlu2 %1353 }
 0x136   : > { %v1258_v51 = vmax.f32 %v1253_v45, %v1255_v1 }
 0x137   : > { %v1260_v53 = vsel %vm1259_vm10, %v1257_v50, -inf  ;;  %vm1163_vm10 = vcmask 7168  }
 0x138   : > { %1261 = vmax.xlane.f32.xlu1 %v1260_v53  ;;  %v1266_v56 = vsel %vm1265_vm12, %v1258_v51, -inf  ;;  %v1278_v0 = vsel %vm1277_vm13, %v1258_v51, -inf  ;;  %v1272_v1 = vsel %vm3096_vm14, %v1258_v51, -inf  ;;  %v1284_v4 = vsel %vm1283_vm15, %v1258_v51, -inf }
 0x139   : > { %1203 = vmax.xlane.f32.xlu2 %v1202_v54  ;;  %1267 = vmax.xlane.f32.xlu0 %v1266_v56  ;;  %v1296_v10 = vsel %vm1295_vm0, %v1258_v51, -inf  ;;  %v1290_v14 = vsel %vm1289_vm2, %v1258_v51, -inf  ;;  %v1302_v15 = vsel %vm1301_vm4, %v1258_v51, -inf  ;;  %vm1187_vm4 = vcmask 39968  }
 0x13a   : > { %v1317_v57 = vpop.permute.xlu0 %1316  ;;  %v1315_v55 = vpop.permute.xlu1 %1314 }
 0x13b   : > { %v1318_v59 = vsel %vm1151_vm1, %v1315_v55, %v1317_v57  ;;  %v1321_v63 = vmax.f32 %v1311_v58, %v1315_v55 }
 0x13c   : > { %v1322_v61 = vmax.f32 %v1312_v60, %v1318_v59 }
 0x13d   : > { %v1326_v25 = vmax.f32 %v1321_v63, %v1324_v49  ;;  %v1402_v43 = vpop.permute.xlu2 %1401 }
 0x13e   : > { %v1327_v8 = vmax.f32 %v1322_v61, %v1324_v49  ;;  %v1404_v53 = vmax.f32 %v2782_v6, %v1402_v43 }
 0x140   : > { %1279 = vmax.xlane.f32.xlu1 %v1278_v0 }
 0x141   : > { %1273 = vmax.xlane.f32.xlu2 %v1272_v1  ;;  %1285 = vmax.xlane.f32.xlu0 %v1284_v4 }
 0x142   : > { %v1330_v5 = vpop.permute.xlu0 %1329  ;;  %v1332_v46 = vpop.permute.xlu1 %1331 }
 0x143   : > { %v1333_v7 = vsel %vm1159_vm3, %v1330_v5, %v1332_v46  ;;  %v1336_v52 = vmax.f32 %v1326_v25, %v1330_v5 }
 0x144   : > { %v1337_v9 = vmax.f32 %v1327_v8, %v1333_v7 }
 0x145   : > { %v1341_v19 = vmax.f32 %v1336_v52, %v1339_v62  ;;  %v1423_v56 = vpop.permute.xlu2 %1422 }
 0x146   : > { %v1342_v22 = vmax.f32 %v1337_v9, %v1339_v62  ;;  %v1405_v62 = vmax.f32 %v2795_v13, %v1402_v43 }
 0x148   : > { %1297 = vmax.xlane.f32.xlu1 %v1296_v10 }
 0x149   : > { %1291 = vmax.xlane.f32.xlu2 %v1290_v14  ;;  %1303 = vmax.xlane.f32.xlu0 %v1302_v15 }
 0x14a   : > { %v1345_v21 = vpop.permute.xlu0 %1344  ;;  %v1347_v23 = vpop.permute.xlu1 %1346 }
 0x14b   : > { %v1351_v26 = vmax.f32 %v1341_v19, %v1345_v21  ;;  %v1348_v24 = vsel %vm1248_vm9, %v1345_v21, %v1347_v23 }
 0x14c   : > { %v1352_v31 = vmax.f32 %v1342_v22, %v1348_v24 }
 0x14d   : > { %v1356_v33 = vmax.f32 %v1351_v26, %v1354_v18  ;;  %v1438_v5 = vpop.permute.xlu2 %1437 }
 0x14e   : > { %v1357_v32 = vmax.f32 %v1352_v31, %v1354_v18  ;;  %v913_v31 = vadd.f32 %v2778_v2, %v2725_v20  ;;  %v939_v2 = vadd.f32 %v2791_v11, %v2725_v20  ;;  %v952_v11 = vadd.f32 %v2793_v12, %v2725_v20 }
 0x14f   : > { %v1365_v34 = vsel %vm1364_vm5, %v1356_v33, -inf  ;;  %v1359_v35 = vsel %vm1358_vm6, %v1356_v33, -inf  ;;  %vm1193_vm6 = vcmask 48168  }
 0x150   : > { %1366 = vmax.xlane.f32.xlu1 %v1365_v34  ;;  %v1370_v39 = vsel %vm1265_vm12, %v1357_v32, -inf  ;;  %v1380_v45 = vsel %vm1277_vm13, %v1357_v32, -inf  ;;  %v1375_v49 = vsel %vm3096_vm14, %v1357_v32, -inf  ;;  %v1385_v50 = vsel %vm1283_vm15, %v1357_v32, -inf }
 0x151   : > { %1360 = vmax.xlane.f32.xlu0 %v1359_v35  ;;  %1371 = vmax.xlane.f32.xlu2 %v1370_v39  ;;  %v1395_v58 = vsel %vm1295_vm0, %v1357_v32, -inf  ;;  %v1390_v60 = vsel %vm1289_vm2, %v1357_v32, -inf  ;;  %v2879_v33 = vmax.f32 %v913_v31, 0.0  ;;  %v926_v32 = vadd.f32 %v2780_v3, %v2725_v20 }
 0x152   : > { %v1408_v42 = vpop.permute.xlu0 %1407  ;;  %v1410_v44 = vpop.permute.xlu1 %1409  ;;  %vm1175_vm0 = vcmask 23568  }
 0x153   : > { %v1414_v54 = vmax.f32 %v1404_v53, %v1408_v42  ;;  %v1411_v59 = vsel %vm1151_vm1, %v1408_v42, %v1410_v44  ;;  %v1126_v34 = vmax.f32 %v926_v32, 0.0  ;;  %v1127_v42 = vmax.f32 %v939_v2, 0.0 }
 0x154   : > { %v1415_v0 = vmax.f32 %v1405_v62, %v1411_v59  ;;  %v2905_v44 = vmax.f32 %v952_v11, 0.0 }
 0x158   : > { %1381 = vmax.xlane.f32.xlu1 %v1380_v45 }
 0x159   : > { %1376 = vmax.xlane.f32.xlu0 %v1375_v49  ;;  %1386 = vmax.xlane.f32.xlu2 %v1385_v50 }
 0x15a   : > { %v1417_v51 = vpop.permute.xlu0 %1416  ;;  %v1425_v55 = vpop.permute.xlu1 %1424 }
 0x15b   : > { %v1419_v57 = vmax.f32 %v1414_v54, %v1417_v51  ;;  %v1420_v1 = vmax.f32 %v1415_v0, %v1417_v51  ;;  %v1426_v6 = vsel %vm1159_vm3, %v1423_v56, %v1425_v55 }
 0x15d   : > { %v1429_v61 = vmax.f32 %v1419_v57, %v1423_v56  ;;  %v1430_v46 = vmax.f32 %v1420_v1, %v1426_v6 }
 0x160   : > { %1396 = vmax.xlane.f32.xlu1 %v1395_v58 }
 0x161   : > { %1391 = vmax.xlane.f32.xlu0 %v1390_v60 }
 0x162   : > { %v1432_v63 = vpop.permute.xlu0 %1431  ;;  %v1440_v25 = vpop.permute.xlu1 %1439 }
 0x163   : > { %v1434_v4 = vmax.f32 %v1429_v61, %v1432_v63  ;;  %v1435_v52 = vmax.f32 %v1430_v46, %v1432_v63  ;;  %v1441_v10 = vsel %vm1248_vm9, %v1438_v5, %v1440_v25 }
 0x165   : > { %v1444_v7 = vmax.f32 %v1434_v4, %v1438_v5  ;;  %v1445_v18 = vmax.f32 %v1435_v52, %v1441_v10 }
 0x16a   : > { %v1447_v8 = vpop.permute.xlu0 %1446 }
 0x16b   : > { %v1449_v9 = vmax.f32 %v1444_v7, %v1447_v8  ;;  %v1450_v19 = vmax.f32 %v1445_v18, %v1447_v8 }
 0x16d   : > { %v1463_v13 = vsel %vm1364_vm5, %v1449_v9, -inf  ;;  %v1452_v14 = vsel %vm1451_vm7, %v1449_v9, -inf  ;;  %v1458_v15 = vsel %vm1457_vm8, %v1449_v9, -inf  ;;  %v1478_v21 = vsel %vm1277_vm13, %v1450_v19, -inf }
 0x16e   : > { %1464 = vmax.xlane.f32.xlu0 %v1463_v13  ;;  %1453 = vmax.xlane.f32.xlu2 %v1452_v14  ;;  %v1468_v22 = vsel %vm1265_vm12, %v1450_v19, -inf  ;;  %v1473_v23 = vsel %vm3096_vm14, %v1450_v19, -inf  ;;  %v1483_v26 = vsel %vm1283_vm15, %v1450_v19, -inf  ;;  %v1488_v24 = vsel %vm1289_vm2, %v1450_v19, -inf }
 0x16f   : > { %1459 = vmax.xlane.f32.xlu1 %v1458_v15  ;;  %vm1181_vm2 = vcmask 31768   ;;  %vm1199_vm7 = vcmask 56368   ;;  %vm1383_vm14 = vcmask 171168  }
 0x176   : > { %1479 = vmax.xlane.f32.xlu0 %v1478_v21  ;;  %1469 = vmax.xlane.f32.xlu2 %v1468_v22 }
 0x177   : > { %1474 = vmax.xlane.f32.xlu1 %v1473_v23 }
 0x17e   : > { %1484 = vmax.xlane.f32.xlu2 %v1483_v26 }
 0x17f   : > { %1489 = vmax.xlane.f32.xlu1 %v1488_v24 }
 0x18a   : > { %1494 = vrot.lane.b32.xlu0 %v2879_v33, %s2435_s23 }
 0x192   : > { %1509 = vrot.lane.b32.xlu0 %v1126_v34, %s2436_s24 }
 0x194   : > { %v1162_v35 = vpop.xlane.xlu2 %1161  ;;  %v1174_v39 = vpop.xlane.xlu1 %1173 }
 0x195   : > { %1164 = vst.msk [vmem:[%s2890_s5] sm:$0xff] %vm1163_vm10, %v1162_v35  ;;  %v1168_v3 = vpop.xlane.xlu0 %1167  ;;  %vm1205_vm10 = vcmask 64568  }
 0x196   : > { %1170 = vst.msk [vmem:[%s2890_s5] sm:$0xff] %vm1169_vm11, %v1168_v3  ;;  %1500 = vrot.lane.b32.xlu2 %v2879_v33, %s2434_s22  ;;  %vm1263_vm11 = vcmask 72768  }
 0x197   : > { %1176 = vst.msk [vmem:[%s2890_s5] sm:$0xff] %vm1175_vm0, %v1174_v39  ;;  %vm1269_vm0 = vcmask 80968  }
 0x198   : > { %1502 = vrot.lane.b32.xlu1 %v1126_v34, %s2434_s22 }
 0x19a   : > { %1517 = vrot.lane.b32.xlu0 %v1127_v42, %s2438_s26 }
 0x19c   : > { %v1180_v43 = vpop.xlane.xlu2 %1179  ;;  %v1198_v45 = vpop.xlane.xlu1 %1197 }
 0x19d   : > { %1182 = vst.msk [vmem:[%s2890_s5] sm:$0xff] %vm1181_vm2, %v1180_v43  ;;  %v1192_v49 = vpop.xlane.xlu0 %1191  ;;  %vm1275_vm2 = vcmask 89168  }
 0x19e   : > { %1515 = vrot.lane.b32.xlu2 %v1126_v34, %s2438_s26 }
 0x1a0   : > { %1524 = vrot.lane.b32.xlu1 %v1127_v42, %s2437_s25 }
 0x1a2   : > { %1532 = vrot.lane.b32.xlu0 %v2905_v44, %s2440_s28 }
 0x1a4   : > { %v1186_v12 = vpop.xlane.xlu2 %1185 }
 0x1a5   : > { %1188 = vst.msk [vmem:[%s2890_s5] sm:$0xff] %vm1187_vm4, %v1186_v12  ;;  %vm1281_vm4 = vcmask 97368  }
 0x1a6   : > { %1194 = vst.msk [vmem:[%s2890_s5] sm:$0xff] %vm1193_vm6, %v1192_v49  ;;  %1530 = vrot.lane.b32.xlu2 %v1127_v42, %s2440_s28  ;;  %vm1287_vm6 = vcmask 105568  }
 0x1a7   : > { %1200 = vst.msk [vmem:[%s2890_s5] sm:$0xff] %vm1199_vm7, %v1198_v45  ;;  %vm1293_vm7 = vcmask 113768  }
 0x1a8   : > { %1539 = vrot.lane.b32.xlu1 %v2905_v44, %s2439_s27 }
 0x1ab   : > { %v1262_v50 = vpop.xlane.xlu1 %1261 }
 0x1ac   : > { %v1204_v51 = vpop.xlane.xlu2 %1203  ;;  %v1268_v53 = vpop.xlane.xlu0 %1267 }
 0x1ad   : > { %1206 = vst.msk [vmem:[%s2890_s5] sm:$0xff] %vm1205_vm10, %v1204_v51  ;;  %vm1299_vm10 = vcmask 121968  }
 0x1ae   : > { %1264 = vst.msk [vmem:[%s2890_s5] sm:$0xff] %vm1263_vm11, %v1262_v50  ;;  %vm1305_vm11 = vcmask 130168  }
 0x1af   : > { %1270 = vst.msk [vmem:[%s2890_s5] sm:$0xff] %vm1269_vm0, %v1268_v53  ;;  %vm1362_vm0 = vcmask 138368  }
 0x1b3   : > { %v1280_v54 = vpop.xlane.xlu1 %1279 }
 0x1b4   : > { %v1274_v56 = vpop.xlane.xlu2 %1273  ;;  %v1286_v57 = vpop.xlane.xlu0 %1285 }
 0x1b5   : > { %1276 = vst.msk [vmem:[%s2890_s5] sm:$0xff] %vm1275_vm2, %v1274_v56  ;;  %vm1368_vm2 = vcmask 146568  }
 0x1b6   : > { %1282 = vst.msk [vmem:[%s2890_s5] sm:$0xff] %vm1281_vm4, %v1280_v54  ;;  %vm1373_vm4 = vcmask 154768  }
 0x1b7   : > { %1288 = vst.msk [vmem:[%s2890_s5] sm:$0xff] %vm1287_vm6, %v1286_v57  ;;  %vm1378_vm6 = vcmask 162968  }
 0x1bb   : > { %v1298_v55 = vpop.xlane.xlu1 %1297 }
 0x1bc   : > { %v1292_v58 = vpop.xlane.xlu2 %1291  ;;  %v1304_v59 = vpop.xlane.xlu0 %1303 }
 0x1bd   : > { %1294 = vst.msk [vmem:[%s2890_s5] sm:$0xff] %vm1293_vm7, %v1292_v58  ;;  %vm1388_vm7 = vcmask 179368  }
 0x1be   : > { %1300 = vst.msk [vmem:[%s2890_s5] sm:$0xff] %vm1299_vm10, %v1298_v55  ;;  %vm1393_vm10 = vcmask 187568  }
 0x1bf   : > { %1306 = vst.msk [vmem:[%s2890_s5] sm:$0xff] %vm1305_vm11, %v1304_v59  ;;  %vm1398_vm11 = vcmask 195768  }
 0x1c3   : > { %v1367_v60 = vpop.xlane.xlu1 %1366 }
 0x1c4   : > { %v1361_v62 = vpop.xlane.xlu0 %1360  ;;  %v1372_v63 = vpop.xlane.xlu2 %1371 }
 0x1c5   : > { %1363 = vst.msk [vmem:[%s2890_s5] sm:$0xff] %vm1362_vm0, %v1361_v62  ;;  %vm1455_vm0 = vcmask 203968   ;;  %v965_v62 = vadd.f32 %v2803_v16, %v2725_v20  ;;  %v1004_v16 = vadd.f32 %v2813_v27, %v2725_v20 }
 0x1c6   : > { %1369 = vst.msk [vmem:[%s2890_s5] sm:$0xff] %vm1368_vm2, %v1367_v60  ;;  %vm1461_vm2 = vcmask 212168  }
 0x1c7   : > { %1374 = vst.msk [vmem:[%s2890_s5] sm:$0xff] %vm1373_vm4, %v1372_v63  ;;  %vm1466_vm4 = vcmask 220368   ;;  %v978_v63 = vadd.f32 %v2805_v17, %v2725_v20  ;;  %v2966_v17 = vmax.f32 %v1004_v16, 0.0 }
 0x1cb   : > { %v1382_v0 = vpop.xlane.xlu1 %1381 }
 0x1cc   : > { %v1377_v61 = vpop.xlane.xlu0 %1376  ;;  %v1387_v1 = vpop.xlane.xlu2 %1386 }
 0x1cd   : > { %1379 = vst.msk [vmem:[%s2890_s5] sm:$0xff] %vm1378_vm6, %v1377_v61  ;;  %vm1476_vm6 = vcmask 236768   ;;  %v1130_v61 = vmax.f32 %v978_v63, 0.0 }
 0x1ce   : > { %1384 = vst.msk [vmem:[%s2890_s5] sm:$0xff] %vm1383_vm14, %v1382_v0  ;;  %vm1471_vm14 = vcmask 228568   ;;  %v1129_v0 = vmax.f32 %v965_v62, 0.0  ;;  %v1043_v62 = vadd.f32 %v2827_v36, %v2725_v20  ;;  %v1069_v36 = vadd.f32 %v2831_v38, %v2725_v20 }
 0x1cf   : > { %1389 = vst.msk [vmem:[%s2890_s5] sm:$0xff] %vm1388_vm7, %v1387_v1  ;;  %vm1481_vm7 = vcmask 244968   ;;  %v991_v1 = vadd.f32 %v2811_v41, %v2725_v20  ;;  %v1095_v38 = vadd.f32 %v2835_v47, %v2725_v20 }
 0x1d3   : > { %v1397_v6 = vpop.xlane.xlu1 %1396 }
 0x1d4   : > { %v1392_v4 = vpop.xlane.xlu0 %1391 }
 0x1d5   : > { %1394 = vst.msk [vmem:[%s2890_s5] sm:$0xff] %vm1393_vm10, %v1392_v4  ;;  %vm1486_vm10 = vcmask 253168   ;;  %v1131_v4 = vmax.f32 %v991_v1, 0.0  ;;  %v1139_v1 = vmax.f32 %v1095_v38, 0.0 }
 0x1d6   : > { %1399 = vst.msk [vmem:[%s2890_s5] sm:$0xff] %vm1398_vm11, %v1397_v6  ;;  %vm1491_vm11 = vcmask 261368  }
 0x1e1   : > { %v1465_v5 = vpop.xlane.xlu0 %1464  ;;  %v1454_v46 = vpop.xlane.xlu2 %1453 }
 0x1e2   : > { %1456 = vst.msk [vmem:[%s2890_s5] sm:$0xff] %vm1455_vm0, %v1454_v46  ;;  %v1460_v25 = vpop.xlane.xlu1 %1459  ;;  %vm1550_vm0 = vcmask 917312  }
 0x1e3   : > { %1462 = vst.msk [vmem:[%s2890_s5] sm:$0xff] %vm1461_vm2, %v1460_v25  ;;  %vm1544_vm2 = vcmask 851744  }
 0x1e4   : > { %1467 = vst.msk [vmem:[%s2890_s5] sm:$0xff] %vm1466_vm4, %v1465_v5  ;;  %vm3097_vm4 = vcmask 130112  }
 0x1e9   : > { %v1470_v7 = vpop.xlane.xlu2 %1469  ;;  %v1480_v52 = vpop.xlane.xlu0 %1479 }
 0x1ea   : > { %1472 = vst.msk [vmem:[%s2890_s5] sm:$0xff] %vm1471_vm14, %v1470_v7  ;;  %v1475_v8 = vpop.xlane.xlu1 %1474  ;;  %vm1554_vm14 = vcmask 277768  }
 0x1eb   : > { %1477 = vst.msk [vmem:[%s2890_s5] sm:$0xff] %vm1476_vm6, %v1475_v8  ;;  %vm1559_vm6 = vcmask 285968  }
 0x1ec   : > { %1482 = vst.msk [vmem:[%s2890_s5] sm:$0xff] %vm1481_vm7, %v1480_v52  ;;  %vm1564_vm7 = vcmask 294168  }
 0x1f1   : > { %v1485_v9 = vpop.xlane.xlu2 %1484 }
 0x1f2   : > { %1487 = vst.msk [vmem:[%s2890_s5] sm:$0xff] %vm1486_vm10, %v1485_v9  ;;  %v1490_v10 = vpop.xlane.xlu1 %1489  ;;  %vm1569_vm10 = vcmask 302368  }
 0x1f3   : > { %1492 = vst.msk [vmem:[%s2890_s5] sm:$0xff] %vm1491_vm11, %v1490_v10  ;;  %vm1574_vm11 = vcmask 310568  }
 0x1f9   : > { %v1501_v14 = vpop.permute.xlu2 %1500 }
 0x1fc   : > { %v1495_v13 = vpop.permute.xlu0 %1494 }
 0x1fd   : > { %v1497_v18 = vmax.f32 %v2815_v28, %v1495_v13  ;;  %v1498_v26 = vmax.f32 %v2879_v33, %v1495_v13 }
 0x1ff   : > { %v1507_v21 = vmax.f32 %v1497_v18, %v1501_v14 }
 0x201   : > { %v1516_v22 = vpop.permute.xlu2 %1515 }
 0x204   : > { %v1510_v15 = vpop.permute.xlu0 %1509 }
 0x205   : > { %v1512_v24 = vmax.f32 %v1507_v21, %v1510_v15 }
 0x207   : > { %v1522_v2 = vmax.f32 %v1512_v24, %v1516_v22 }
 0x209   : > { %v1531_v42 = vpop.permute.xlu2 %1530 }
 0x20a   : > { %v1503_v19 = vpop.permute.xlu1 %1502 }
 0x20b   : > { %v1504_v23 = vsel %vm1151_vm1, %v1501_v14, %v1503_v19 }
 0x20c   : > { %v1518_v31 = vpop.permute.xlu0 %1517  ;;  %v1508_v32 = vmax.f32 %v1498_v26, %v1504_v23 }
 0x20d   : > { %v1519_v39 = vsel %vm1159_vm3, %v1516_v22, %v1518_v31 }
 0x20e   : > { %v1513_v35 = vmax.f32 %v1508_v32, %v1510_v15 }
 0x210   : > { %v1523_v11 = vmax.f32 %v1513_v35, %v1519_v39 }
 0x212   : > { %v1525_v34 = vpop.permute.xlu1 %1524 }
 0x213   : > { %v1527_v3 = vmax.f32 %v1522_v2, %v1525_v34  ;;  %v1528_v33 = vmax.f32 %v1523_v11, %v1525_v34 }
 0x214   : > { %v1533_v43 = vpop.permute.xlu0 %1532 }
 0x215   : > { %v1537_v28 = vmax.f32 %v1527_v3, %v1531_v42  ;;  %v1534_v12 = vsel %vm1248_vm9, %v1531_v42, %v1533_v43 }
 0x216   : > { %v1538_v54 = vmax.f32 %v1528_v33, %v1534_v12 }
 0x21a   : > { %v1540_v45 = vpop.permute.xlu1 %1539 }
 0x21b   : > { %v1542_v49 = vmax.f32 %v1537_v28, %v1540_v45  ;;  %v1543_v56 = vmax.f32 %v1538_v54, %v1540_v45 }
 0x21d   : > { %v1556_v50 = vsel %vm1457_vm8, %v1542_v49, -inf  ;;  %v1551_v51 = vsel %vm1550_vm0, %v1542_v49, -inf  ;;  %v1545_v53 = vsel %vm1544_vm2, %v1542_v49, -inf  ;;  %v1576_v57 = vsel %vm1277_vm13, %v1543_v56, -inf }
 0x21e   : > { %1557 = vmax.xlane.f32.xlu1 %v1556_v50  ;;  %1552 = vmax.xlane.f32.xlu0 %v1551_v51  ;;  %v1566_v55 = vsel %vm1265_vm12, %v1543_v56, -inf  ;;  %v1561_v58 = vsel %vm1364_vm5, %v1542_v49, -inf  ;;  %v1581_v59 = vsel %vm1283_vm15, %v1543_v56, -inf  ;;  %v1571_v60 = vsel %vm3097_vm4, %v1543_v56, -inf }
 0x21f   : > { %1546 = vmax.xlane.f32.xlu2 %v1545_v53  ;;  %vm1548_vm15 = vcmask 269568   ;;  %vm1579_vm2 = vcmask 318768   ;;  %vm1584_vm4 = vcmask 326968  }
 0x226   : > { %1577 = vmax.xlane.f32.xlu1 %v1576_v57  ;;  %1567 = vmax.xlane.f32.xlu0 %v1566_v55  ;;  %v1017_v55 = vadd.f32 %v2821_v29, %v2725_v20  ;;  %v1135_v29 = vmax.f32 %v1043_v62, 0.0 }
 0x227   : > { %1562 = vmax.xlane.f32.xlu2 %v1561_v58 }
 0x228   : > { %v2996_v58 = vmax.f32 %v1017_v55, 0.0 }
 0x22e   : > { %1582 = vmax.xlane.f32.xlu0 %v1581_v59  ;;  %v1030_v59 = vadd.f32 %v2823_v30, %v2725_v20  ;;  %v1056_v30 = vadd.f32 %v2829_v37, %v2725_v20  ;;  %v1082_v37 = vadd.f32 %v2833_v40, %v2725_v20  ;;  %v1108_v40 = vadd.f32 %v2837_v48, %v2725_v20 }
 0x22f   : > { %1572 = vmax.xlane.f32.xlu2 %v1571_v60 }
 0x230   : > { %v1134_v60 = vmax.f32 %v1030_v59, 0.0  ;;  %v3014_v63 = vmax.f32 %v1056_v30, 0.0 }
 0x23f   : > { %1593 = vrot.lane.b32.xlu1 %v1129_v0, %s2434_s22 }
 0x242   : > { %1595 = vrot.lane.b32.xlu0 %v1130_v61, %s2434_s22 }
 0x247   : > { %1587 = vrot.lane.b32.xlu2 %v1129_v0, %s2435_s23  ;;  %1610 = vrot.lane.b32.xlu1 %v1131_v4, %s2438_s26 }
 0x24a   : > { %1608 = vrot.lane.b32.xlu0 %v1130_v61, %s2438_s26 }
 0x24f   : > { %1602 = vrot.lane.b32.xlu2 %v1130_v61, %s2436_s24  ;;  %1625 = vrot.lane.b32.xlu1 %v2966_v17, %s2440_s28  ;;  %v1138_v61 = vmax.f32 %v1082_v37, 0.0 }
 0x252   : > { %1623 = vrot.lane.b32.xlu0 %v1131_v4, %s2440_s28 }
 0x257   : > { %1617 = vrot.lane.b32.xlu2 %v1131_v4, %s2437_s25  ;;  %v1140_v4 = vmax.f32 %v1108_v40, 0.0 }
 0x25f   : > { %1632 = vrot.lane.b32.xlu2 %v2966_v17, %s2439_s27 }
 0x291   : > { %v1553_v41 = vpop.xlane.xlu0 %1552  ;;  %v1558_v6 = vpop.xlane.xlu1 %1557 }
 0x292   : > { %v1547_v27 = vpop.xlane.xlu2 %1546 }
 0x293   : > { %1549 = vst.msk [vmem:[%s2890_s5] sm:$0xff] %vm1548_vm15, %v1547_v27  ;;  %vm1643_vm15 = vcmask 851712  }
 0x294   : > { %1555 = vst.msk [vmem:[%s2890_s5] sm:$0xff] %vm1554_vm14, %v1553_v41  ;;  %vm1637_vm14 = vcmask 786144  }
 0x295   : > { %1560 = vst.msk [vmem:[%s2890_s5] sm:$0xff] %vm1559_vm6, %v1558_v6  ;;  %vm3098_vm6 = vcmask 130112  }
 0x299   : > { %v1568_v5 = vpop.xlane.xlu0 %1567  ;;  %v1578_v7 = vpop.xlane.xlu1 %1577 }
 0x29a   : > { %v1563_v46 = vpop.xlane.xlu2 %1562 }
 0x29b   : > { %1565 = vst.msk [vmem:[%s2890_s5] sm:$0xff] %vm1564_vm7, %v1563_v46  ;;  %vm1647_vm7 = vcmask 343368  }
 0x29c   : > { %1570 = vst.msk [vmem:[%s2890_s5] sm:$0xff] %vm1569_vm10, %v1568_v5  ;;  %vm1652_vm10 = vcmask 351568  }
 0x2a1   : > { %v1583_v8 = vpop.xlane.xlu0 %1582 }
 0x2a2   : > { %v1573_v25 = vpop.xlane.xlu2 %1572 }
 0x2a3   : > { %1575 = vst.msk [vmem:[%s2890_s5] sm:$0xff] %vm1574_vm11, %v1573_v25  ;;  %vm1657_vm11 = vcmask 359768  }
 0x2a4   : > { %1580 = vst.msk [vmem:[%s2890_s5] sm:$0xff] %vm1579_vm2, %v1578_v7  ;;  %vm1662_vm2 = vcmask 367968  }
 0x2a5   : > { %1585 = vst.msk [vmem:[%s2890_s5] sm:$0xff] %vm1584_vm4, %v1583_v8  ;;  %vm1667_vm4 = vcmask 376168  }
 0x2aa   : > { %v1588_v52 = vpop.permute.xlu2 %1587 }
 0x2ab   : > { %v1590_v14 = vmax.f32 %v2905_v44, %v1588_v52  ;;  %v1591_v19 = vmax.f32 %v1129_v0, %v1588_v52  ;;  %v3022_v0 = vmax.f32 %v1069_v36, 0.0 }
 0x2b1   : > { %v1594_v9 = vpop.permute.xlu1 %1593 }
 0x2b2   : > { %v1603_v10 = vpop.permute.xlu2 %1602  ;;  %v1600_v15 = vmax.f32 %v1590_v14, %v1594_v9 }
 0x2b4   : > { %v1596_v13 = vpop.permute.xlu0 %1595  ;;  %v1605_v26 = vmax.f32 %v1600_v15, %v1603_v10 }
 0x2b5   : > { %v1597_v18 = vsel %vm1151_vm1, %v1594_v9, %v1596_v13 }
 0x2b6   : > { %v1601_v24 = vmax.f32 %v1591_v19, %v1597_v18 }
 0x2b8   : > { %v1606_v34 = vmax.f32 %v1601_v24, %v1603_v10 }
 0x2b9   : > { %v1611_v21 = vpop.permute.xlu1 %1610 }
 0x2ba   : > { %v1618_v22 = vpop.permute.xlu2 %1617 }
 0x2bc   : > { %v1609_v23 = vpop.permute.xlu0 %1608 }
 0x2bd   : > { %v1615_v31 = vmax.f32 %v1605_v26, %v1609_v23  ;;  %v1612_v32 = vsel %vm1159_vm3, %v1609_v23, %v1611_v21 }
 0x2be   : > { %v1616_v2 = vmax.f32 %v1606_v34, %v1612_v32 }
 0x2bf   : > { %v1620_v35 = vmax.f32 %v1615_v31, %v1618_v22 }
 0x2c0   : > { %v1621_v43 = vmax.f32 %v1616_v2, %v1618_v22 }
 0x2c1   : > { %v1626_v39 = vpop.permute.xlu1 %1625 }
 0x2c2   : > { %v1633_v11 = vpop.permute.xlu2 %1632 }
 0x2c4   : > { %v1624_v3 = vpop.permute.xlu0 %1623 }
 0x2c5   : > { %v1630_v42 = vmax.f32 %v1620_v35, %v1624_v3  ;;  %v1627_v44 = vsel %vm1248_vm9, %v1624_v3, %v1626_v39 }
 0x2c6   : > { %v1631_v45 = vmax.f32 %v1621_v43, %v1627_v44 }
 0x2c7   : > { %v1635_v28 = vmax.f32 %v1630_v42, %v1633_v11 }
 0x2c8   : > { %v1636_v50 = vmax.f32 %v1631_v45, %v1633_v11 }
 0x2c9   : > { %v1649_v49 = vsel %vm1550_vm0, %v1635_v28, -inf  ;;  %v1644_v12 = vsel %vm1643_vm15, %v1635_v28, -inf  ;;  %v1638_v33 = vsel %vm1637_vm14, %v1635_v28, -inf  ;;  %v1659_v53 = vsel %vm1364_vm5, %v1635_v28, -inf }
 0x2ca   : > { %1650 = vmax.xlane.f32.xlu2 %v1649_v49  ;;  %1645 = vmax.xlane.f32.xlu1 %v1644_v12  ;;  %v1664_v51 = vsel %vm1265_vm12, %v1636_v50, -inf  ;;  %v1654_v54 = vsel %vm1457_vm8, %v1635_v28, -inf  ;;  %v1674_v56 = vsel %vm1277_vm13, %v1636_v50, -inf  ;;  %v1669_v57 = vsel %vm3098_vm6, %v1636_v50, -inf }
 0x2cb   : > { %1639 = vmax.xlane.f32.xlu0 %v1638_v33  ;;  %vm1641_vm13 = vcmask 335168   ;;  %vm1672_vm14 = vcmask 384368   ;;  %vm1677_vm6 = vcmask 392568  }
 0x2d2   : > { %1665 = vmax.xlane.f32.xlu2 %v1664_v51  ;;  %1660 = vmax.xlane.f32.xlu1 %v1659_v53 }
 0x2d3   : > { %1655 = vmax.xlane.f32.xlu0 %v1654_v54 }
 0x2da   : > { %1675 = vmax.xlane.f32.xlu1 %v1674_v56 }
 0x2db   : > { %1670 = vmax.xlane.f32.xlu0 %v1669_v57 }
 0x2ea   : > { %1680 = vrot.lane.b32.xlu2 %v2996_v58, %s2435_s23 }
 0x2ef   : > { %1686 = vrot.lane.b32.xlu0 %v2996_v58, %s2434_s22 }
 0x2f2   : > { %1701 = vrot.lane.b32.xlu2 %v1134_v60, %s2438_s26 }
 0x2f3   : > { %1688 = vrot.lane.b32.xlu1 %v1134_v60, %s2434_s22 }
 0x2f7   : > { %1695 = vrot.lane.b32.xlu0 %v1134_v60, %s2436_s24 }
 0x2fa   : > { %1716 = vrot.lane.b32.xlu2 %v1135_v29, %s2440_s28 }
 0x2fb   : > { %1703 = vrot.lane.b32.xlu1 %v1135_v29, %s2438_s26 }
 0x2ff   : > { %1710 = vrot.lane.b32.xlu0 %v1135_v29, %s2437_s25 }
 0x303   : > { %1718 = vrot.lane.b32.xlu1 %v3014_v63, %s2440_s28 }
 0x307   : > { %1725 = vrot.lane.b32.xlu0 %v3014_v63, %s2439_s27 }
 0x30b   : > { %1773 = vrot.lane.b32.xlu1 %v3022_v0, %s2435_s23 }
 0x30f   : > { %1779 = vrot.lane.b32.xlu0 %v3022_v0, %s2434_s22 }
 0x313   : > { %1788 = vrot.lane.b32.xlu1 %v1138_v61, %s2436_s24 }
 0x317   : > { %1794 = vrot.lane.b32.xlu0 %v1138_v61, %s2438_s26 }
 0x31b   : > { %1781 = vrot.lane.b32.xlu1 %v1138_v61, %s2434_s22 }
 0x31f   : > { %1803 = vrot.lane.b32.xlu0 %v1139_v1, %s2437_s25 }
 0x323   : > { %1809 = vrot.lane.b32.xlu1 %v1139_v1, %s2440_s28 }
 0x327   : > { %1796 = vrot.lane.b32.xlu0 %v1139_v1, %s2438_s26 }
 0x32b   : > { %1818 = vrot.lane.b32.xlu1 %v1140_v4, %s2439_s27 }
 0x32f   : > { %1811 = vrot.lane.b32.xlu0 %v1140_v4, %s2440_s28 }
 0x33d   : > { %v1646_v47 = vpop.xlane.xlu1 %1645  ;;  %v1651_v16 = vpop.xlane.xlu2 %1650 }
 0x33e   : > { %v1640_v41 = vpop.xlane.xlu0 %1639 }
 0x33f   : > { %1642 = vst.msk [vmem:[%s2890_s5] sm:$0xff] %vm1641_vm13, %v1640_v41  ;;  %vm1730_vm13 = vcmask 720544  }
 0x340   : > { %1648 = vst.msk [vmem:[%s2890_s5] sm:$0xff] %vm1647_vm7, %v1646_v47  ;;  %vm1736_vm7 = vcmask 786112  }
 0x341   : > { %1653 = vst.msk [vmem:[%s2890_s5] sm:$0xff] %vm1652_vm10, %v1651_v16  ;;  %vm1829_vm10 = vcmask 720512  }
 0x345   : > { %v1661_v20 = vpop.xlane.xlu1 %1660  ;;  %v1666_v27 = vpop.xlane.xlu2 %1665 }
 0x346   : > { %v1656_v48 = vpop.xlane.xlu0 %1655 }
 0x347   : > { %1658 = vst.msk [vmem:[%s2890_s5] sm:$0xff] %vm1657_vm11, %v1656_v48  ;;  %vm1750_vm11 = vcmask 425368  }
 0x348   : > { %1663 = vst.msk [vmem:[%s2890_s5] sm:$0xff] %vm1662_vm2, %v1661_v20  ;;  %vm1770_vm2 = vcmask 458168  }
 0x349   : > { %1668 = vst.msk [vmem:[%s2890_s5] sm:$0xff] %vm1667_vm4, %v1666_v27  ;;  %vm1827_vm4 = vcmask 466368  }
 0x34d   : > { %v1676_v6 = vpop.xlane.xlu1 %1675  ;;  %v1681_v25 = vpop.permute.xlu2 %1680 }
 0x34e   : > { %v1671_v5 = vpop.xlane.xlu0 %1670  ;;  %v1683_v52 = vmax.f32 %v2966_v17, %v1681_v25  ;;  %v1684_v42 = vmax.f32 %v2996_v58, %v1681_v25 }
 0x34f   : > { %1673 = vst.msk [vmem:[%s2890_s5] sm:$0xff] %vm1672_vm14, %v1671_v5  ;;  %vm1833_vm14 = vcmask 474568  }
 0x350   : > { %1678 = vst.msk [vmem:[%s2890_s5] sm:$0xff] %vm1677_vm6, %v1676_v6  ;;  %vm1838_vm6 = vcmask 482768  }
 0x355   : > { %v1702_v10 = vpop.permute.xlu2 %1701 }
 0x35d   : > { %v1717_v22 = vpop.permute.xlu2 %1716 }
 0x361   : > { %v1687_v46 = vpop.permute.xlu0 %1686 }
 0x362   : > { %v1693_v9 = vmax.f32 %v1683_v52, %v1687_v46 }
 0x365   : > { %v1689_v7 = vpop.permute.xlu1 %1688 }
 0x366   : > { %v1690_v39 = vsel %vm1151_vm1, %v1687_v46, %v1689_v7 }
 0x367   : > { %v1694_v11 = vmax.f32 %v1684_v42, %v1690_v39 }
 0x369   : > { %v1696_v8 = vpop.permute.xlu0 %1695 }
 0x36a   : > { %v1698_v14 = vmax.f32 %v1693_v9, %v1696_v8  ;;  %v1699_v28 = vmax.f32 %v1694_v11, %v1696_v8 }
 0x36c   : > { %v1708_v18 = vmax.f32 %v1698_v14, %v1702_v10 }
 0x36d   : > { %v1704_v13 = vpop.permute.xlu1 %1703 }
 0x36e   : > { %v1705_v43 = vsel %vm1159_vm3, %v1702_v10, %v1704_v13 }
 0x36f   : > { %v1709_v33 = vmax.f32 %v1699_v28, %v1705_v43 }
 0x371   : > { %v1711_v15 = vpop.permute.xlu0 %1710 }
 0x372   : > { %v1713_v19 = vmax.f32 %v1708_v18, %v1711_v15  ;;  %v1714_v54 = vmax.f32 %v1709_v33, %v1711_v15 }
 0x374   : > { %v1723_v23 = vmax.f32 %v1713_v19, %v1717_v22 }
 0x375   : > { %v1719_v21 = vpop.permute.xlu1 %1718 }
 0x376   : > { %v1720_v51 = vsel %vm1248_vm9, %v1717_v22, %v1719_v21 }
 0x377   : > { %v1724_v57 = vmax.f32 %v1714_v54, %v1720_v51 }
 0x379   : > { %v1726_v26 = vpop.permute.xlu0 %1725 }
 0x37a   : > { %v1728_v24 = vmax.f32 %v1723_v23, %v1726_v26  ;;  %v1729_v60 = vmax.f32 %v1724_v57, %v1726_v26 }
 0x37c   : > { %v1747_v31 = vsel %vm1550_vm0, %v1728_v24, -inf  ;;  %v1742_v32 = vsel %vm1643_vm15, %v1728_v24, -inf  ;;  %v1731_v34 = vsel %vm1730_vm13, %v1728_v24, -inf  ;;  %v1737_v35 = vsel %vm1736_vm7, %v1728_v24, -inf }
 0x37d   : > { %1748 = vmax.xlane.f32.xlu0 %v1747_v31  ;;  %1743 = vmax.xlane.f32.xlu1 %v1742_v32  ;;  %v1774_v17 = vpop.permute.xlu1 %1773  ;;  %v1752_v45 = vsel %vm1457_vm8, %v1728_v24, -inf  ;;  %v1757_v55 = vsel %vm1364_vm5, %v1728_v24, -inf  ;;  %v1762_v61 = vsel %vm1265_vm12, %v1729_v60, -inf  ;;  %vm1843_vm13 = vcmask 490968  }
 0x37e   : > { %1732 = vmax.xlane.f32.xlu2 %v1731_v34  ;;  %v1776_v12 = vmax.f32 %v3014_v63, %v1774_v17  ;;  %v1777_v30 = vmax.f32 %v3022_v0, %v1774_v17 }
 0x381   : > { %v1780_v2 = vpop.permute.xlu0 %1779 }
 0x382   : > { %v1786_v53 = vmax.f32 %v1776_v12, %v1780_v2 }
 0x385   : > { %v1789_v3 = vpop.permute.xlu1 %1788 }
 0x386   : > { %1738 = vmax.xlane.f32.xlu2 %v1737_v35  ;;  %v1791_v56 = vmax.f32 %v1786_v53, %v1789_v3 }
 0x389   : > { %v1795_v44 = vpop.permute.xlu0 %1794 }
 0x38a   : > { %v1801_v59 = vmax.f32 %v1791_v56, %v1795_v44 }
 0x38d   : > { %v1782_v49 = vpop.permute.xlu1 %1781 }
 0x38e   : > { %1753 = vmax.xlane.f32.xlu2 %v1752_v45  ;;  %v1783_v62 = vsel %vm1151_vm1, %v1780_v2, %v1782_v49  ;;  %vm3099_vm1 = vcmask 130112  }
 0x38f   : > { %v1787_v36 = vmax.f32 %v1777_v30, %v1783_v62  ;;  %v1767_v48 = vsel %vm3099_vm1, %v1729_v60, -inf  ;;  %vm1858_vm1 = vcmask 515568  }
 0x391   : > { %v1804_v50 = vpop.permute.xlu0 %1803  ;;  %v1792_v4 = vmax.f32 %v1787_v36, %v1789_v3 }
 0x392   : > { %v1806_v63 = vmax.f32 %v1801_v59, %v1804_v50 }
 0x395   : > { %v1810_v58 = vpop.permute.xlu1 %1809 }
 0x396   : > { %1758 = vmax.xlane.f32.xlu2 %v1757_v55  ;;  %v1816_v37 = vmax.f32 %v1806_v63, %v1810_v58 }
 0x399   : > { %v1797_v29 = vpop.permute.xlu0 %1796 }
 0x39a   : > { %v1798_v40 = vsel %vm1159_vm3, %v1795_v44, %v1797_v29  ;;  %vm1823_vm3 = vcmask 654944  }
 0x39b   : > { %v1802_v41 = vmax.f32 %v1792_v4, %v1798_v40 }
 0x39d   : > { %v1819_v38 = vpop.permute.xlu1 %1818  ;;  %v1807_v27 = vmax.f32 %v1802_v41, %v1804_v50 }
 0x39e   : > { %1763 = vmax.xlane.f32.xlu2 %v1762_v61  ;;  %v1821_v1 = vmax.f32 %v1816_v37, %v1819_v38 }
 0x3a0   : > { %v1835_v47 = vsel %vm1736_vm7, %v1821_v1, -inf  ;;  %v1830_v16 = vsel %vm1829_vm10, %v1821_v1, -inf  ;;  %v1850_v5 = vsel %vm1457_vm8, %v1821_v1, -inf  ;;  %v1845_v46 = vsel %vm1550_vm0, %v1821_v1, -inf }
 0x3a1   : > { %1836 = vmax.xlane.f32.xlu0 %v1835_v47  ;;  %1831 = vmax.xlane.f32.xlu1 %v1830_v16  ;;  %v1812_v20 = vpop.permute.xlu0 %1811  ;;  %v1824_v7 = vsel %vm1823_vm3, %v1821_v1, -inf  ;;  %v1840_v52 = vsel %vm1643_vm15, %v1821_v1, -inf  ;;  %v1855_v9 = vsel %vm1364_vm5, %v1821_v1, -inf  ;;  %vm1740_vm8 = vcmask 408968  }
 0x3a2   : > { %v1813_v0 = vsel %vm1248_vm9, %v1810_v58, %v1812_v20  ;;  %vm1734_vm9 = vcmask 400768   ;;  %vm1745_vm0 = vcmask 417168   ;;  %vm1760_vm5 = vcmask 441768  }
 0x3a3   : > { %v1817_v6 = vmax.f32 %v1807_v27, %v1813_v0  ;;  %vm1765_vm15 = vcmask 449968   ;;  %vm1848_vm7 = vcmask 499168   ;;  %vm1853_vm10 = vcmask 507368  }
 0x3a4   : > { %vm1863_vm3 = vcmask 523768  }
 0x3a5   : > { %v1822_v25 = vmax.f32 %v1817_v6, %v1819_v38 }
 0x3a6   : > { %1768 = vmax.xlane.f32.xlu2 %v1767_v48 }
 0x3a7   : > { %v1860_v8 = vsel %vm1265_vm12, %v1822_v25, -inf  ;;  %vm1755_vm12 = vcmask 433568  }
 0x3a9   : > { %1851 = vmax.xlane.f32.xlu0 %v1850_v5  ;;  %1846 = vmax.xlane.f32.xlu1 %v1845_v46 }
 0x3ae   : > { %1825 = vmax.xlane.f32.xlu2 %v1824_v7 }
 0x3b1   : > { %1861 = vmax.xlane.f32.xlu1 %v1860_v8 }
 0x3b6   : > { %1841 = vmax.xlane.f32.xlu2 %v1840_v52 }
 0x3be   : > { %1856 = vmax.xlane.f32.xlu2 %v1855_v9 }
 0x3f0   : > { %v1744_v14 = vpop.xlane.xlu1 %1743  ;;  %v1749_v15 = vpop.xlane.xlu0 %1748 }
 0x3f1   : > { %v1733_v10 = vpop.xlane.xlu2 %1732 }
 0x3f2   : > { %1735 = vst.msk [vmem:[%s2890_s5] sm:$0xff] %vm1734_vm9, %v1733_v10 }
 0x3f9   : > { %v1739_v13 = vpop.xlane.xlu2 %1738 }
 0x3fa   : > { %1741 = vst.msk [vmem:[%s2890_s5] sm:$0xff] %vm1740_vm8, %v1739_v13 }
 0x3fb   : > { %1746 = vst.msk [vmem:[%s2890_s5] sm:$0xff] %vm1745_vm0, %v1744_v14 }
 0x3fc   : > { %1751 = vst.msk [vmem:[%s2890_s5] sm:$0xff] %vm1750_vm11, %v1749_v15 }
 0x401   : > { %v1754_v18 = vpop.xlane.xlu2 %1753 }
 0x402   : > { %1756 = vst.msk [vmem:[%s2890_s5] sm:$0xff] %vm1755_vm12, %v1754_v18 }
 0x409   : > { %v1759_v19 = vpop.xlane.xlu2 %1758 }
 0x40a   : > { %1761 = vst.msk [vmem:[%s2890_s5] sm:$0xff] %vm1760_vm5, %v1759_v19 }
 0x411   : > { %v1764_v21 = vpop.xlane.xlu2 %1763 }
 0x412   : > { %1766 = vst.msk [vmem:[%s2890_s5] sm:$0xff] %vm1765_vm15, %v1764_v21 }
 0x414   : > { %v1832_v23 = vpop.xlane.xlu1 %1831  ;;  %v1837_v26 = vpop.xlane.xlu0 %1836 }
 0x419   : > { %v1769_v22 = vpop.xlane.xlu2 %1768 }
 0x41a   : > { %1771 = vst.msk [vmem:[%s2890_s5] sm:$0xff] %vm1770_vm2, %v1769_v22 }
 0x41c   : > { %v1847_v31 = vpop.xlane.xlu1 %1846  ;;  %v1852_v34 = vpop.xlane.xlu0 %1851 }
 0x421   : > { %v1826_v24 = vpop.xlane.xlu2 %1825 }
 0x422   : > { %1828 = vst.msk [vmem:[%s2890_s5] sm:$0xff] %vm1827_vm4, %v1826_v24 }
 0x423   : > { %1834 = vst.msk [vmem:[%s2890_s5] sm:$0xff] %vm1833_vm14, %v1832_v23 }
 0x424   : > { %1839 = vst.msk [vmem:[%s2890_s5] sm:$0xff] %vm1838_vm6, %v1837_v26  ;;  %v1862_v2 = vpop.xlane.xlu1 %1861 }
 0x429   : > { %v1842_v32 = vpop.xlane.xlu2 %1841 }
 0x42a   : > { %1844 = vst.msk [vmem:[%s2890_s5] sm:$0xff] %vm1843_vm13, %v1842_v32 }
 0x42b   : > { %1849 = vst.msk [vmem:[%s2890_s5] sm:$0xff] %vm1848_vm7, %v1847_v31 }
 0x42c   : > { %1854 = vst.msk [vmem:[%s2890_s5] sm:$0xff] %vm1853_vm10, %v1852_v34 }
 0x431   : > { %v1857_v17 = vpop.xlane.xlu2 %1856 }
 0x432   : > { %1859 = vst.msk [vmem:[%s2890_s5] sm:$0xff] %vm1858_vm1, %v1857_v17 }
 0x433   : > { %1864 = vst.msk [vmem:[%s2890_s5] sm:$0xff] %vm1863_vm3, %v1862_v2 }
 0x434 PF: > { %s13_s12 = sadd.s32 1, %s2431_s12  }
 0x435   : > { %p10_p4 = scmp.ge.s32.totalorder %s13_s12, 4  }
 0x437   :  { %12 = sbr.rel (!%p10_p4) target bundleno = 1 (0x1), region = 62 }

// kernel: cnn_forward.3
= control target key start
LH: loop header
LB: loop body
LE: loop exit
PB: predicated region body
PF: predicated region fallthrough
CT: control target
= control target key end

     0   :  { %s1011_s18 = smov 0   ;;  %s1175_s0 = inlined_call_operand.vmem [shape: bf16[2,32,128], index: 0, kind: input, shape index: {}]   ;;  %s1176_s1 = inlined_call_operand.vmem [shape: bf16[16,32], index: 1, kind: input, shape index: {}]   ;;  %s1177_s2 = inlined_call_operand.vmem [shape: f32[16,1], index: 2, kind: input, shape index: {}]   ;;  %s1178_s3 = inlined_call_operand.vmem [shape: f32[9,20,16], index: 3, kind: input, shape index: {}]   ;;  %s1179_s4 = inlined_call_operand.vmem [shape: f32[20,1], index: 4, kind: input, shape index: {}]   ;;  %s1180_s5 = inlined_call_operand.vmem [shape: f32[2,20,1], index: 5, kind: output, shape index: {}]  }
   0x1 LB: > { %s850_s19 = sadd.s32 4294967295, %s975_s18   ;;  %p854_p0 = scmp.ge.s32.totalorder %s975_s18, 1  ;;  %s975_s18 = sphi %s1011_s18, %s15_s18  }
   0x2   : > { %p187_p1 = scmp.lt.s32.totalorder %s975_s18, 3 }
   0x4   : > { %p188_p2 = pnand %p854_p0, %p187_p1 }
   0x5   : > { %p215_p3 = scmp.lt.s32.totalorder (!%p188_p2), %s850_s19, 1  ;;  %s978_s30 = smov (!%p188_p2), 101  }
   0x6   : > { %191 = sbr.rel (%p188_p2) target bundleno = 658 (0x292), region = 40  ;;  %s979_s6 = smov (!%p188_p2), 119  }
   0x7   : > { %s980_s7 = smov (!%p188_p2), 110  }
   0xb   : > { %v233_v0 = vld [vmem:[%s1177_s2 + $0x8] sm:$0xff]  ;;  %v977_v1 = vmov 0   ;;  %s1182_s19 = smov (!%p215_p3, %s850_s19), 1  ;;  %v232_v3 = vld [vmem:[%s1177_s2] sm:$0xff]  ;;  %vm261_vm0 = vcmask 261120   ;;  %vm294_vm1 = vcmask 15360  }
   0xc   : > { %945 = vset.pattern.permute.xlu0 %v977_v1  ;;  %s924_s22 = sshll.u32 %s1182_s19, 4  ;;  %v925_v5 = vld [vmem:[%s1176_s1] sm:$0xff]  ;;  %vm392_vm2 = vcmask 72752   ;;  %vm343_vm3 = vcmask 48144   ;;  %vm506_vm4 = vcmask 195744   ;;  %vm457_vm5 = vcmask 162960  }
   0xd   : > { %241 = vperm.xlu0 %945, %v233_v0   ;;  %s219_s25 = scalar_lea.vmem %s1175_s0, %s924_s22  ;;  %vm555_vm6 = vcmask 220352   ;;  %vm604_vm7 = vcmask 458160   ;;  %vm653_vm8 = vcmask 490944   ;;  %vm702_vm9 = vcmask 515552   ;;  %v302_v51 = vld [vmem:[%s1178_s3 + $0x8] sm:$0xff]  ;;  %v301_v52 = vld [vmem:[%s1178_s3] sm:$0xff] }
   0xe   : > { %v927_v2 = vld [vmem:[%s219_s25 + $0x8] sm:$0xff]  ;;  %v926_v4 = vld [vmem:[%s219_s25] sm:$0xff]  ;;  %vm304_vm10 = vcmask 130048   ;;  %v880_v54 = vld [vmem:[%s1178_s3 + $0x30] sm:$0xff]  ;;  %vm754_vm11 = vcmask 7168   ;;  %vm757_vm12 = vcmask 3072  }
   0xf   : > { %271 = vmatpush.bf16.msra.mxu0 %v927_v2  ;;  %v303_v57 = vld [vmem:[%s1178_s3 + $0x10] sm:$0xf]  ;;  %v881_v60 = vld [vmem:[%s1178_s3 + $0x38] sm:$0xff]  ;;  %v886_v63 = vld [vmem:[%s1178_s3 + $0x48] sm:$0xff]  ;;  %s932_s24 = smul.u32 24, %s1182_s19 }
  0x10   : > { %v874_v62 = vld [vmem:[%s1178_s3 + $0x18] sm:$0xff]  ;;  %v892_v1 = vld [vmem:[%s1178_s3 + $0x60] sm:$0xff] }
  0x11   : > { %s224_s27 = scalar_lea.vmem %s1180_s5, %s932_s24 }
  0x13   : > { %272 = vmatpush.bf16.msra.mxu0 %v926_v4 }
  0x15   : > { %236 = vperm.xlu0 %945, %v232_v3   ;;  %v882_v3 = vld [vmem:[%s1178_s3 + $0x40] sm:$0xf] }
  0x16   : > { %870 = vmatmul.msk.bf16.vlgmr.msra.gmra.mxu0 %vm261_vm0, %v925_v5  ;;  %v875_v5 = vld [vmem:[%s1178_s3 + $0x20] sm:$0xff] }
  0x7f   : > { %v242_v6 = vpop.permute.xlu0 %241 }
  0x87   : > { %v237_v8 = vpop.permute.xlu0 %236 }
  0x93   : > { %v274_v7 = vpop.f32.mrf.mxu0 }
  0x94   : > { %v275_v9 = vadd.f32 %v274_v7, %v237_v8  ;;  %v893_v8 = vld [vmem:[%s1178_s3 + $0x68] sm:$0xff] }
  0x96   : > { %v279_v12 = vmax.f32 %v275_v9, 0.0 }
  0x9b   : > { %v276_v10 = vpop.f32.mrf.mxu0 }
  0x9c   : > { %v277_v11 = vadd.f32 %v276_v10, %v242_v6  ;;  %v887_v6 = vld [vmem:[%s1178_s3 + $0x50] sm:$0xff]  ;;  %v888_v10 = vld [vmem:[%s1178_s3 + $0x58] sm:$0xf] }
  0x9e   : > { %v280_v13 = vmax.f32 %v277_v11, 0.0 }
  0xa0   : > { %v956_v14 = vpack.i.bf16 %v279_v12, %v280_v13 }
  0xa2   : > { %957 = vrot.lane.b32.xlu2 %v956_v14, %s978_s30  ;;  %947 = vrot.lane.b32.xlu1 %v956_v14, %s979_s6 }
  0xaa   : > { %952 = vrot.lane.b32.xlu1 %v956_v14, %s980_s7  ;;  %v894_v14 = vld [vmem:[%s1178_s3 + $0x70] sm:$0xf] }
  0xfc   : > { %v958_v23 = vpop.permute.xlu2 %957 }
  0xfd   : > { %v959_v26 = vunpack.i.l.bf16 %v958_v23  ;;  %v960_v34 = vunpack.i.h.bf16 %v958_v23 }
 0x114   : > { %v948_v15 = vpop.permute.xlu1 %947 }
 0x115   : > { %v950_v16 = vunpack.i.h.bf16 %v948_v15  ;;  %v949_v17 = vunpack.i.l.bf16 %v948_v15 }
 0x117   : > { %v292_v18 = vmax.f32 %v279_v12, %v950_v16  ;;  %v293_v19 = vmax.f32 %v280_v13, %v949_v17  ;;  %v876_v12 = vld [vmem:[%s1178_s3 + $0x28] sm:$0xf]  ;;  %v904_v16 = vld [vmem:[%s1178_s3 + $0x90] sm:$0xff]  ;;  %v898_v17 = vld [vmem:[%s1178_s3 + $0x78] sm:$0xff] }
 0x118   : > { %v910_v13 = vld [vmem:[%s1178_s3 + $0xa8] sm:$0xff] }
 0x119   : > { %v295_v20 = vsel %vm294_vm1, %v292_v18, -inf  ;;  %v396_v21 = vsel %vm392_vm2, %v293_v19, -inf  ;;  %v298_v22 = vsel %vm294_vm1, %v293_v19, -inf  ;;  %v344_v29 = vsel %vm343_vm3, %v292_v18, -inf }
 0x11a   : > { %296 = vmax.xlane.f32.xlu0 %v295_v20  ;;  %397 = vmax.xlane.f32.xlu1 %v396_v21  ;;  %v393_v31 = vsel %vm392_vm2, %v292_v18, -inf  ;;  %v347_v37 = vsel %vm343_vm3, %v293_v19, -inf  ;;  %v905_v20 = vld [vmem:[%s1178_s3 + $0x98] sm:$0xff]  ;;  %v899_v21 = vld [vmem:[%s1178_s3 + $0x80] sm:$0xff] }
 0x11b   : > { %299 = vmax.xlane.f32.xlu2 %v298_v22  ;;  %v916_v22 = vld [vmem:[%s1178_s3 + $0xc0] sm:$0xff] }
 0x11c   : > { %v953_v24 = vpop.permute.xlu1 %952 }
 0x11d   : > { %v954_v25 = vunpack.i.l.bf16 %v953_v24  ;;  %v955_v27 = vunpack.i.h.bf16 %v953_v24  ;;  %v912_v24 = vld [vmem:[%s1178_s3 + $0xb8] sm:$0xf] }
 0x11f   : > { %v448_v28 = vmax.f32 %v293_v19, %v954_v25  ;;  %v447_v32 = vmax.f32 %v292_v18, %v955_v27  ;;  %v911_v18 = vld [vmem:[%s1178_s3 + $0xb0] sm:$0xff]  ;;  %v906_v25 = vld [vmem:[%s1178_s3 + $0xa0] sm:$0xf]  ;;  %v917_v27 = vld [vmem:[%s1178_s3 + $0xc8] sm:$0xff] }
 0x121   : > { %v456_v30 = vmax.f32 %v448_v28, %v959_v26  ;;  %v455_v35 = vmax.f32 %v447_v32, %v960_v34  ;;  %v608_v41 = vsel %vm604_vm7, %v448_v28, -inf  ;;  %v657_v42 = vsel %vm653_vm8, %v448_v28, -inf  ;;  %v900_v26 = vld [vmem:[%s1178_s3 + $0x88] sm:$0xf] }
 0x122   : > { %345 = vmax.xlane.f32.xlu0 %v344_v29  ;;  %v654_v44 = vsel %vm653_vm8, %v447_v32, -inf  ;;  %v703_v45 = vsel %vm702_vm9, %v447_v32, -inf  ;;  %v605_v46 = vsel %vm604_vm7, %v447_v32, -inf  ;;  %v706_v47 = vsel %vm702_vm9, %v448_v28, -inf  ;;  %v918_v28 = vld [vmem:[%s1178_s3 + $0xd0] sm:$0xf] }
 0x123   : > { %394 = vmax.xlane.f32.xlu2 %v393_v31  ;;  %v510_v33 = vsel %vm506_vm4, %v456_v30, -inf  ;;  %v461_v36 = vsel %vm457_vm5, %v456_v30, -inf  ;;  %v458_v38 = vsel %vm457_vm5, %v455_v35, -inf  ;;  %v556_v39 = vsel %vm555_vm6, %v455_v35, -inf }
 0x124   : > { %511 = vmax.xlane.f32.xlu1 %v510_v33  ;;  %v507_v40 = vsel %vm506_vm4, %v455_v35, -inf  ;;  %v559_v43 = vsel %vm555_vm6, %v456_v30, -inf }
 0x12a   : > { %462 = vmax.xlane.f32.xlu0 %v461_v36 }
 0x12b   : > { %348 = vmax.xlane.f32.xlu2 %v347_v37 }
 0x12c   : > { %459 = vmax.xlane.f32.xlu1 %v458_v38  ;;  %v281_v38 = vld [vmem:[%s1179_s4] sm:$0xff] }
 0x132   : > { %557 = vmax.xlane.f32.xlu0 %v556_v39 }
 0x133   : > { %508 = vmax.xlane.f32.xlu2 %v507_v40 }
 0x134   : > { %609 = vmax.xlane.f32.xlu1 %v608_v41 }
 0x13a   : > { %658 = vmax.xlane.f32.xlu0 %v657_v42  ;;  %v282_v42 = vld [vmem:[%s1179_s4 + $0x8] sm:$0xff] }
 0x13b   : > { %560 = vmax.xlane.f32.xlu2 %v559_v43 }
 0x13c   : > { %655 = vmax.xlane.f32.xlu1 %v654_v44 }
 0x142   : > { %704 = vmax.xlane.f32.xlu0 %v703_v45 }
 0x143   : > { %606 = vmax.xlane.f32.xlu2 %v605_v46 }
 0x14b   : > { %707 = vmax.xlane.f32.xlu2 %v706_v47 }
 0x18d   : > { %v297_v48 = vpop.xlane.xlu0 %296  ;;  %v398_v49 = vpop.xlane.xlu1 %397 }
 0x18e   : > { %v300_v50 = vpop.xlane.xlu2 %299  ;;  %426 = vmatpush.msra.mxu3 %v398_v49 }
 0x18f   : > { %328 = vmatpush.msra.mxu1 %v300_v50  ;;  %928 = vmatpush.msra.mxu2 %v300_v50 }
 0x191   : > { %329 = vmatpush.msra.mxu1 %v297_v48  ;;  %929 = vmatpush.msra.mxu2 %v297_v48 }
 0x192   : > { %872 = vmatmul.msk.f32.vlgmr.msra.gmra.mxu2 %vm304_vm10, %v302_v51  ;;  %871 = vmatmul.msk.f32.vlgmr.msra.gmra.mxu1 %vm304_vm10, %v301_v52  ;;  %v283_v51 = vld [vmem:[%s1179_s4 + $0x10] sm:$0xf] }
 0x195   : > { %v346_v53 = vpop.xlane.xlu0 %345 }
 0x196   : > { %v395_v55 = vpop.xlane.xlu2 %394 }
 0x197   : > { %427 = vmatpush.msra.mxu3 %v395_v55  ;;  %v512_v56 = vpop.xlane.xlu1 %511 }
 0x198   : > { %540 = vmatpush.msrb.mxu1 %v512_v56  ;;  %883 = vmatmul.msk.f32.vlgmr.msra.gmra.mxu3 %vm304_vm10, %v880_v54 }
 0x19a   : > { %873 = vmatmul.msk.f32.gmra.mxu2 %vm304_vm10, %v303_v57 }
 0x19d   : > { %v463_v58 = vpop.xlane.xlu0 %462 }
 0x19e   : > { %v349_v59 = vpop.xlane.xlu2 %348  ;;  %491 = vmatpush.msrb.mxu0 %v463_v58  ;;  %930 = vmatpush.msrb.mxu3 %v463_v58 }
 0x19f   : > { %377 = vmatpush.msrb.mxu2 %v349_v59  ;;  %v460_v61 = vpop.xlane.xlu1 %459 }
 0x1a0   : > { %492 = vmatpush.msrb.mxu0 %v460_v61  ;;  %931 = vmatpush.msrb.mxu3 %v460_v61 }
 0x1a1   : > { %378 = vmatpush.msrb.mxu2 %v346_v53  ;;  %884 = vmatmul.msk.f32.gmra.mxu3 %vm304_vm10, %v881_v60 }
 0x1a2   : > { %877 = vmatmul.msk.f32.vlgmr.msrb.gmra.mxu2 %vm304_vm10, %v874_v62  ;;  %889 = vmatmul.msk.f32.vlgmr.msrb.gmra.mxu0 %vm304_vm10, %v886_v63 }
 0x1a5   : > { %v558_v0 = vpop.xlane.xlu0 %557 }
 0x1a6   : > { %v509_v2 = vpop.xlane.xlu2 %508 }
 0x1a7   : > { %541 = vmatpush.msrb.mxu1 %v509_v2  ;;  %v610_v4 = vpop.xlane.xlu1 %609 }
 0x1a8   : > { %638 = vmatpush.msra.mxu3 %v610_v4  ;;  %895 = vmatmul.msk.f32.vlgmr.msrb.gmra.mxu1 %vm304_vm10, %v892_v1 }
 0x1a9   : > { %885 = vmatmul.msk.f32.gmra.mxu3 %vm304_vm10, %v882_v3 }
 0x1aa   : > { %878 = vmatmul.msk.f32.gmra.mxu2 %vm304_vm10, %v875_v5  ;;  %890 = vmatmul.msk.f32.gmra.mxu0 %vm304_vm10, %v887_v6 }
 0x1ad   : > { %v659_v7 = vpop.xlane.xlu0 %658 }
 0x1ae   : > { %v561_v9 = vpop.xlane.xlu2 %560  ;;  %687 = vmatpush.msra.mxu0 %v659_v7 }
 0x1af   : > { %589 = vmatpush.msra.mxu2 %v561_v9  ;;  %v656_v11 = vpop.xlane.xlu1 %655 }
 0x1b0   : > { %688 = vmatpush.msra.mxu0 %v656_v11  ;;  %896 = vmatmul.msk.f32.gmra.mxu1 %vm304_vm10, %v893_v8 }
 0x1b1   : > { %590 = vmatpush.msra.mxu2 %v558_v0  ;;  %891 = vmatmul.msk.f32.vlgmr.msrb.gmra.mxu3 %vm304_vm10, %v888_v10 }
 0x1b2   : > { %879 = vmatmul.msk.f32.gmra.mxu2 %vm304_vm10, %v876_v12  ;;  %913 = vmatmul.msk.f32.vlgmr.msra.gmra.mxu0 %vm304_vm10, %v910_v13 }
 0x1b5   : > { %v705_v23 = vpop.xlane.xlu0 %704 }
 0x1b6   : > { %v607_v15 = vpop.xlane.xlu2 %606 }
 0x1b7   : > { %639 = vmatpush.msra.mxu3 %v607_v15 }
 0x1b8   : > { %897 = vmatmul.msk.f32.gmra.mxu1 %vm304_vm10, %v894_v14 }
 0x1b9   : > { %907 = vmatmul.msk.f32.vlgmr.msra.gmra.mxu3 %vm304_vm10, %v904_v16 }
 0x1ba   : > { %901 = vmatmul.msk.f32.vlgmr.msra.gmra.mxu2 %vm304_vm10, %v898_v17  ;;  %914 = vmatmul.msk.f32.gmra.mxu0 %vm304_vm10, %v911_v18 }
 0x1be   : > { %v708_v19 = vpop.xlane.xlu2 %707 }
 0x1bf   : > { %736 = vmatpush.msra.mxu1 %v708_v19 }
 0x1c1   : > { %737 = vmatpush.msra.mxu1 %v705_v23  ;;  %908 = vmatmul.msk.f32.gmra.mxu3 %vm304_vm10, %v905_v20 }
 0x1c2   : > { %902 = vmatmul.msk.f32.gmra.mxu2 %vm304_vm10, %v899_v21  ;;  %919 = vmatmul.msk.f32.vlgmr.msra.gmra.mxu1 %vm304_vm10, %v916_v22 }
 0x1c3   : > { %915 = vmatmul.msk.f32.gmra.mxu0 %vm304_vm10, %v912_v24 }
 0x1c9   : > { %909 = vmatmul.msk.f32.gmra.mxu3 %vm304_vm10, %v906_v25 }
 0x1ca   : > { %903 = vmatmul.msk.f32.gmra.mxu2 %vm304_vm10, %v900_v26  ;;  %920 = vmatmul.msk.f32.gmra.mxu1 %vm304_vm10, %v917_v27 }
 0x1d2   : > { %921 = vmatmul.msk.f32.gmra.mxu1 %vm304_vm10, %v918_v28 }
 0x20f   : > { %v331_v31 = vpop.f32.mrf.mxu1 }
 0x210   : > { %v340_v41 = vadd.f32 %v331_v31, %v281_v38 }
 0x215   : > { %v334_v29 = vpop.f32.mrf.mxu2 }
 0x216   : > { %v341_v48 = vadd.f32 %v334_v29, %v282_v42 }
 0x21b   : > { %v429_v30 = vpop.f32.mrf.mxu3 }
 0x21d   : > { %v337_v32 = vpop.f32.mrf.mxu2 }
 0x21e   : > { %v342_v57 = vadd.f32 %v337_v32, %v283_v51 }
 0x21f   : > { %v494_v36 = vpop.f32.mrf.mxu0 }
 0x224   : > { %v432_v33 = vpop.f32.mrf.mxu3 }
 0x225   : > { %v380_v34 = vpop.f32.mrf.mxu2  ;;  %v543_v35 = vpop.f32.mrf.mxu1 }
 0x226   : > { %v389_v44 = vadd.f32 %v380_v34, %v340_v41 }
 0x227   : > { %v497_v43 = vpop.f32.mrf.mxu0 }
 0x228   : > { %v438_v49 = vadd.f32 %v429_v30, %v389_v44 }
 0x22a   : > { %v503_v53 = vadd.f32 %v494_v36, %v438_v49 }
 0x22c   : > { %v435_v37 = vpop.f32.mrf.mxu3  ;;  %v552_v59 = vadd.f32 %v543_v35, %v503_v53 }
 0x22d   : > { %v383_v39 = vpop.f32.mrf.mxu2  ;;  %v546_v40 = vpop.f32.mrf.mxu1 }
 0x22e   : > { %v390_v50 = vadd.f32 %v383_v39, %v341_v48 }
 0x22f   : > { %v690_v52 = vpop.f32.mrf.mxu0 }
 0x230   : > { %v439_v54 = vadd.f32 %v432_v33, %v390_v50 }
 0x232   : > { %v504_v60 = vadd.f32 %v497_v43, %v439_v54 }
 0x234   : > { %v500_v45 = vpop.f32.mrf.mxu3  ;;  %v553_v63 = vadd.f32 %v546_v40, %v504_v60 }
 0x235   : > { %v386_v46 = vpop.f32.mrf.mxu2  ;;  %v549_v47 = vpop.f32.mrf.mxu1 }
 0x236   : > { %v391_v61 = vadd.f32 %v386_v46, %v342_v57 }
 0x237   : > { %v693_v3 = vpop.f32.mrf.mxu0 }
 0x238   : > { %v440_v0 = vadd.f32 %v435_v37, %v391_v61 }
 0x23a   : > { %v505_v7 = vadd.f32 %v500_v45, %v440_v0 }
 0x23c   : > { %v641_v55 = vpop.f32.mrf.mxu3  ;;  %v554_v11 = vadd.f32 %v549_v47, %v505_v7 }
 0x23d   : > { %v592_v56 = vpop.f32.mrf.mxu2 }
 0x23e   : > { %v601_v62 = vadd.f32 %v592_v56, %v552_v59 }
 0x23f   : > { %v739_v58 = vpop.f32.mrf.mxu1 }
 0x240   : > { %v650_v4 = vadd.f32 %v641_v55, %v601_v62  ;;  %v696_v17 = vpop.f32.mrf.mxu0 }
 0x242   : > { %v699_v9 = vadd.f32 %v690_v52, %v650_v4 }
 0x244   : > { %v644_v1 = vpop.f32.mrf.mxu3  ;;  %v748_v15 = vadd.f32 %v739_v58, %v699_v9 }
 0x245   : > { %v595_v2 = vpop.f32.mrf.mxu2 }
 0x246   : > { %v602_v5 = vadd.f32 %v595_v2, %v553_v63  ;;  %v751_v21 = vmax.f32 %v748_v15, 0.0 }
 0x247   : > { %v742_v6 = vpop.f32.mrf.mxu1 }
 0x248   : > { %v651_v8 = vadd.f32 %v644_v1, %v602_v5  ;;  %v755_v25 = vsel %vm754_vm11, %v751_v21, -inf }
 0x24a   : > { %v700_v10 = vadd.f32 %v693_v3, %v651_v8 }
 0x24c   : > { %v749_v12 = vadd.f32 %v742_v6, %v700_v10  ;;  %v647_v14 = vpop.f32.mrf.mxu3 }
 0x24d   : > { %v598_v13 = vpop.f32.mrf.mxu2 }
 0x24e   : > { %v603_v16 = vadd.f32 %v598_v13, %v554_v11  ;;  %v752_v18 = vmax.f32 %v749_v12, 0.0 }
 0x24f   : > { %v745_v20 = vpop.f32.mrf.mxu1 }
 0x250   : > { %v652_v19 = vadd.f32 %v647_v14, %v603_v16  ;;  %v756_v23 = vsel %vm754_vm11, %v752_v18, -inf }
 0x251   : > { %v759_v27 = vmax.f32 %v755_v25, %v756_v23 }
 0x252   : > { %v701_v22 = vadd.f32 %v696_v17, %v652_v19 }
 0x254   : > { %v750_v24 = vadd.f32 %v745_v20, %v701_v22 }
 0x256   : > { %v753_v26 = vmax.f32 %v750_v24, 0.0 }
 0x258   : > { %v758_v28 = vsel %vm757_vm12, %v753_v26, -inf }
 0x259   : > { %v760_v29 = vmax.f32 %v759_v27, %v758_v28 }
 0x25b   : > { %v761_v30 = vrot.slane %v760_v29, 4 }
 0x25d   : > { %v762_v31 = vmax.f32 %v760_v29, %v761_v30 }
 0x25f   : > { %v763_v32 = vrot.slane %v762_v31, 2 }
 0x261   : > { %v764_v33 = vmax.f32 %v762_v31, %v763_v32 }
 0x263   : > { %v765_v34 = vrot.slane %v764_v33, 1 }
 0x265   : > { %v766_v35 = vmax.f32 %v764_v33, %v765_v34 }
 0x267   : > { %v767_v36 = vsub.f32 %v751_v21, %v766_v35  ;;  %v768_v37 = vsub.f32 %v752_v18, %v766_v35  ;;  %v769_v38 = vsub.f32 %v753_v26, %v766_v35 }
 0x269   : > { %v770_v39 = vmul.f32 1.442695, %v767_v36  ;;  %v772_v40 = vmul.f32 1.442695, %v768_v37  ;;  %v774_v41 = vmul.f32 1.442695, %v769_v38 }
 0x26b   : > { %961 = vpow2.f32 %v770_v39 }
 0x26c   : > { %963 = vpow2.f32 %v772_v40 }
 0x26d   : > { %965 = vpow2.f32 %v774_v41 }
 0x271   : > { %v962_v42 = vpop.eup %961 }
 0x272   : > { %v964_v43 = vpop.eup %963  ;;  %v776_v44 = vsel %vm754_vm11, %v962_v42, 0.0 }
 0x273   : > { %v966_v45 = vpop.eup %965  ;;  %v777_v46 = vsel %vm754_vm11, %v964_v43, 0.0 }
 0x274   : > { %v778_v47 = vadd.f32 %v777_v46, %v776_v44  ;;  %v779_v48 = vsel %vm757_vm12, %v966_v45, 0.0 }
 0x276   : > { %v780_v49 = vadd.f32 %v779_v48, %v778_v47 }
 0x278   : > { %v781_v50 = vrot.slane %v780_v49, 4 }
 0x27a   : > { %v782_v51 = vadd.f32 %v781_v50, %v780_v49 }
 0x27c   : > { %v783_v52 = vrot.slane %v782_v51, 2 }
 0x27e   : > { %v784_v53 = vadd.f32 %v783_v52, %v782_v51 }
 0x280   : > { %v785_v54 = vrot.slane %v784_v53, 1 }
 0x282   : > { %v786_v55 = vadd.f32 %v785_v54, %v784_v53 }
 0x284   : > { %967 = vlog2.f32 %v786_v55 }
 0x28a   : > { %v968_v56 = vpop.eup %967 }
 0x28b   : > { %v788_v57 = vmul.f32 0.6931472, %v968_v56 }
 0x28d   : > { %v789_v58 = vsub.f32 %v767_v36, %v788_v57  ;;  %v790_v59 = vsub.f32 %v768_v37, %v788_v57  ;;  %v791_v60 = vsub.f32 %v769_v38, %v788_v57 }
 0x28f   : > { %792 = vst.msk [vmem:[%s224_s27] sm:$0xff] %vm754_vm11, %v789_v58 }
 0x290   : > { %793 = vst.msk [vmem:[%s224_s27 + $0x8] sm:$0xff] %vm754_vm11, %v790_v59 }
 0x291   : > { %794 = vst.msk [vmem:[%s224_s27 + $0x10] sm:$0xf] %vm757_vm12, %v791_v60 }
 0x292 PF: > { %s15_s18 = sadd.s32 1, %s975_s18  }
 0x293   : > { %p12_p4 = scmp.ge.s32.totalorder %s15_s18, 4  }
 0x295   :  { %14 = sbr.rel (!%p12_p4) target bundleno = 1 (0x1), region = 78 }

</bundles_post_ra>
